<compile_context>
chip_gen: v7x
topology: tpu7x:2x2x1
jax: 0.10.0
libtpu: 0.0.40
codegen_flags: <defaults>
</compile_context>

<pallas_src>
import functools

import numpy as np
import jax
import jax.numpy as jnp
from jax.experimental import pallas as pl
from jax.experimental.pallas import tpu as pltpu

CLAMP = 2.0
NUM_INV_BLOCKS = 2

# tap offsets (dh, dw) for a 3x3 "same" conv, enumerated row-major.
_OFFS = [(dh, dw) for dh in (-1, 0, 1) for dw in (-1, 0, 1)]


def _round_up(n, m):
    return (n + m - 1) // m * m


# ----------------------------------------------------------------------------
# Host-side helpers: boundary masks and weight repacking.
# ----------------------------------------------------------------------------
def _host_tap_masks(H, W, Bb):
    """(9, Bb*H*W) f32 boundary masks, one row per 3x3 tap, tiled across the Bb
    batch elements folded into the lane axis.  Built with numpy so it is a pure
    constant under jit (no in-kernel iota/div/mod per grid step)."""
    S = H * W
    hh, ww = np.divmod(np.arange(S), W)
    rows = []
    for dh, dw in _OFFS:
        valid = ((hh + dh >= 0) & (hh + dh < H) &
                 (ww + dw >= 0) & (ww + dw < W)).astype(np.float32)
        rows.append(np.tile(valid, Bb))
    return jnp.asarray(np.stack(rows, axis=0))


def _pack_conv(key, cin, cout, scale=0.1):
    """PyTorch-convention (Cout, Cin, 3, 3) conv weight + bias, repacked once on
    the host into a single bf16 (Cout, K_pad) matrix:
        columns [tap-major / cin-minor weights | bias column | zero pad to 8]."""
    kw, kb = jax.random.split(key)
    w4 = scale * jax.random.normal(kw, (cout, cin, 3, 3), jnp.float32)
    b = scale * jax.random.normal(kb, (cout,), jnp.float32)
    K = 9 * cin
    Kp = _round_up(K + 1, 8)
    w2 = jnp.transpose(w4, (0, 2, 3, 1)).reshape(cout, K)       # col = tap*Cin + c
    w2 = jnp.concatenate(
        [w2, b[:, None], jnp.zeros((cout, Kp - K - 1), jnp.float32)], axis=1)
    return w2.astype(jnp.bfloat16)


def init_params(key, C):
    Ch = C // 2
    keys = iter(jax.random.split(key, 2 * 3 + NUM_INV_BLOCKS * 3))

    def compressnet():
        return {"w": jnp.stack([_pack_conv(next(keys), C, C) for _ in range(3)])}

    rel_f = compressnet()
    rel_b = compressnet()

    wf, wrt = [], []
    for _ in range(NUM_INV_BLOCKS):
        wf.append(_pack_conv(next(keys), Ch, Ch))
        wr = _pack_conv(next(keys), Ch, Ch)
        wy = _pack_conv(next(keys), Ch, Ch)
        wrt.append(jnp.concatenate([wr, wy], axis=0))            # stacked [Wr; Wy]
    hinet = {"wf": jnp.stack(wf), "wrt": jnp.stack(wrt)}
    return dict(rel_f=rel_f, rel_b=rel_b, hinet=hinet)


# ----------------------------------------------------------------------------
# Fused kernel: CompressNet + all invertible blocks, forward or inverse.
# ----------------------------------------------------------------------------
def _vhnet_kernel(mask_ref, x_ref, wc_ref, wf_ref, wrt_ref, o_ref,
                  *, H, W, Ch, Bb, rev):
    S = H * W
    N = Bb * S
    C = 2 * Ch

    # Boundary masks loaded once per kernel invocation and reused by every conv.
    masks = [mask_ref[pl.ds(t, 1), :] for t in range(9)]         # 9 x (1, N) f32

    # Constant tail (bias ones-row + zero K-padding), hoisted so it is built once
    # per distinct Cin instead of once per conv (broadcasts are not CSE'd).
    def _tail(cin):
        kp = _round_up(9 * cin + 1, 8)
        return jnp.concatenate(
            [jnp.ones((1, N), jnp.bfloat16),
             jnp.zeros((kp - 9 * cin - 1, N), jnp.bfloat16)], axis=0)

    tails = {C: _tail(C), Ch: _tail(Ch)}

    def im2col(x, cin):
        """(K_pad, N) bf16 patches for a 3x3 'same' conv built from lane rolls
        (XLU) + host boundary masks (VPU).  The masks also zero any cross-image
        contamination from folding batch into the lane axis."""
        taps = []
        for t, (dh, dw) in enumerate(_OFFS):
            off = dh * W + dw
            shifted = x if off == 0 else pltpu.roll(x, shift=(-off) % N, axis=1)
            taps.append((shifted * masks[t]).astype(jnp.bfloat16))
        return jnp.concatenate(taps + [tails[cin]], axis=0)

    def conv(x, w, cin, relu=False):
        # Bias + K-padding are baked into the packed bf16 weight, so one bf16
        # MXU matmul with f32 accumulation does the whole conv.
        out = jnp.dot(w, im2col(x, cin), preferred_element_type=jnp.float32)
        return jnp.maximum(out, 0.0) if relu else out

    def compressnet(h):
        h = conv(h, wc_ref[0], C, relu=True)
        h = conv(h, wc_ref[1], C, relu=True)
        return conv(h, wc_ref[2], C, relu=False)

    # Fold the Bb batch elements of this grid step into the lane axis.
    if Bb == 1:
        x = x_ref[0]                                             # (C, S)
    else:
        x = jnp.concatenate([x_ref[b] for b in range(Bb)], axis=1)   # (C, Bb*S)

    if not rev:
        h = compressnet(x)
        x1, x2 = h[0:Ch], h[Ch:C]
        for i in range(NUM_INV_BLOCKS):
            y1 = x1 + conv(x2, wf_ref[i], Ch)
            # shared y1 im2col; one matmul against stacked [Wr; Wy].
            rt = jnp.dot(wrt_ref[i], im2col(y1, Ch),
                         preferred_element_type=jnp.float32)
            r, t = rt[0:Ch], rt[Ch:C]
            s = CLAMP * (2.0 * jax.nn.sigmoid(r) - 1.0)
            x1, x2 = y1, x2 * jnp.exp(s) + t
        out1, out2 = x1, x2
    else:
        y1, y2 = x[0:Ch], x[Ch:C]
        for i in reversed(range(NUM_INV_BLOCKS)):
            rt = jnp.dot(wrt_ref[i], im2col(y1, Ch),
                         preferred_element_type=jnp.float32)
            r, t = rt[0:Ch], rt[Ch:C]
            s = CLAMP * (2.0 * jax.nn.sigmoid(r) - 1.0)
            x2 = (y2 - t) * jnp.exp(-s)
            x1 = y1 - conv(x2, wf_ref[i], Ch)
            y1, y2 = x1, x2
        h = compressnet(jnp.concatenate([y1, y2], axis=0))
        out1, out2 = h[0:Ch], h[Ch:C]

    # Direct sub-slice stores (no output-side channel concat); lane slices are
    # 256-aligned so they stay clean.
    for b in range(Bb):
        o_ref[b, 0:Ch, :] = out1[:, b * S:(b + 1) * S]
        o_ref[b, Ch:C, :] = out2[:, b * S:(b + 1) * S]


# ----------------------------------------------------------------------------
# Wrapper: grid choice + pallas_call.
# ----------------------------------------------------------------------------
def _grid_steps(B):
    """2 'parallel' grid steps on chips with 2 TensorCores (v7x / megacore) so
    both cores get work; fully collapsed grid on single-TC chips (v5e/v6e),
    where the grid is just a sequential loop and one big step is cheapest."""
    try:
        kind = jax.devices()[0].device_kind.lower()
    except Exception:
        kind = ""
    two_cores = any(tag in kind for tag in ("v7", "v4", "v3"))
    if two_cores and B >= 2 and B % 2 == 0:
        return 2
    return 1


def _vhnet_pallas_call(x, wc, wf, wrt, H, W, rev):
    B, C, S = x.shape
    G = _grid_steps(B)
    Bb = B // G
    masks = _host_tap_masks(H, W, Bb)                            # (9, Bb*S) f32
    kern = functools.partial(_vhnet_kernel, H=H, W=W, Ch=C // 2, Bb=Bb, rev=rev)
    full = lambda a: pl.BlockSpec(a.shape, lambda g: (0,) * a.ndim)
    # TODO(synk): when the real DenseBlock/DWT VHNet (larger weights, 4x channels)
    # replaces the stand-in convs, set vmem_limit_bytes explicitly and re-check
    # the whole-image-resident block against v7x's 64 MiB VMEM.
    return pl.pallas_call(
        kern,
        out_shape=jax.ShapeDtypeStruct((B, C, S), jnp.float32),
        grid=(G,),
        in_specs=[
            full(masks),
            pl.BlockSpec((Bb, C, S), lambda g: (g, 0, 0)),
            full(wc), full(wf), full(wrt),
        ],
        out_specs=pl.BlockSpec((Bb, C, S), lambda g: (g, 0, 0)),
        compiler_params=pltpu.CompilerParams(
            dimension_semantics=("parallel",)),
    )(masks, x, wc, wf, wrt)


# ----------------------------------------------------------------------------
# Public forward (matches Model.forward): rev=False -> rel_f -> Hinet;
#                                         rev=True  -> Hinet^-1 -> rel_b.
# ----------------------------------------------------------------------------
def model_forward(params, x_nchw, rev=False):
    B, C, H, W = x_nchw.shape
    x = x_nchw.astype(jnp.float32).reshape(B, C, H * W)          # pure reshape
    cp = params["rel_b"] if rev else params["rel_f"]
    hp = params["hinet"]
    out = _vhnet_pallas_call(x, cp["w"], hp["wf"], hp["wrt"], H, W, rev=rev)
    return out.reshape(B, C, H, W)                               # back to NCHW


# ----------------------------------------------------------------------------
if __name__ == "__main__":
    key = jax.random.PRNGKey(0)
    kp, kx = jax.random.split(key)

    B, C, Hs, Ws = 2, 4, 16, 16            # small shapes; C must be even (split)
    params = init_params(kp, C)
    x = jax.random.normal(kx, (B, C, Hs, Ws), jnp.float32)

    fwd = jax.jit(functools.partial(model_forward, rev=False))
    out = fwd(params, x)
    jax.block_until_ready(out)
    assert out.shape == (B, C, Hs, Ws) and out.dtype == jnp.float32
    assert bool(jnp.all(jnp.isfinite(out)))

    # also exercise the rev=True branch (Hinet^-1 -> rel_b)
    bwd = jax.jit(functools.partial(model_forward, rev=True))
    out_rev = bwd(params, x)
    jax.block_until_ready(out_rev)
    assert out_rev.shape == (B, C, Hs, Ws)
    assert bool(jnp.all(jnp.isfinite(out_rev)))

    print("KERNEL_OK")
</pallas_src>

<mosaic_0001>
module attributes {stable_mosaic.version = 11 : i64} {
  func.func @_vhnet_kernel(%arg0: i32, %arg1: memref<9x512xf32, #tpu.memory_space<vmem>>, %arg2: memref<2x4x256xf32, #tpu.memory_space<vmem>>, %arg3: memref<3x4x40xbf16, #tpu.memory_space<vmem>>, %arg4: memref<2x2x24xbf16, #tpu.memory_space<vmem>>, %arg5: memref<2x4x24xbf16, #tpu.memory_space<vmem>>, %arg6: memref<2x4x256xf32, #tpu.memory_space<vmem>>) attributes {dimension_semantics = [#tpu.dimension_semantics<parallel>], iteration_bounds = array<i64: 1>, scalar_prefetch = 0 : i64, scratch_operands = 0 : i64, tpu.core_type = #tpu.core_type<tc>, window_params = [{pipeline_mode = #tpu.pipeline_mode<synchronous>, transform_indices = @transform_0, window_bounds = array<i64: 9, 512>}, {transform_indices = @transform_1, window_bounds = array<i64: 2, 4, 256>}, {pipeline_mode = #tpu.pipeline_mode<synchronous>, transform_indices = @transform_2, window_bounds = array<i64: 3, 4, 40>}, {pipeline_mode = #tpu.pipeline_mode<synchronous>, transform_indices = @transform_3, window_bounds = array<i64: 2, 2, 24>}, {pipeline_mode = #tpu.pipeline_mode<synchronous>, transform_indices = @transform_4, window_bounds = array<i64: 2, 4, 24>}, {transform_indices = @transform_5, window_bounds = array<i64: 2, 4, 256>}]} {
    %c0 = arith.constant 0 : index
    %c0_0 = arith.constant 0 : index
    %0 = vector.load %arg1[%c0, %c0_0] : memref<9x512xf32, #tpu.memory_space<vmem>>, vector<1x512xf32>
    %c1 = arith.constant 1 : index
    %c0_1 = arith.constant 0 : index
    %1 = vector.load %arg1[%c1, %c0_1] : memref<9x512xf32, #tpu.memory_space<vmem>>, vector<1x512xf32>
    %c2 = arith.constant 2 : index
    %c0_2 = arith.constant 0 : index
    %2 = vector.load %arg1[%c2, %c0_2] : memref<9x512xf32, #tpu.memory_space<vmem>>, vector<1x512xf32>
    %c3 = arith.constant 3 : index
    %c0_3 = arith.constant 0 : index
    %3 = vector.load %arg1[%c3, %c0_3] : memref<9x512xf32, #tpu.memory_space<vmem>>, vector<1x512xf32>
    %c4 = arith.constant 4 : index
    %c0_4 = arith.constant 0 : index
    %4 = vector.load %arg1[%c4, %c0_4] : memref<9x512xf32, #tpu.memory_space<vmem>>, vector<1x512xf32>
    %c5 = arith.constant 5 : index
    %c0_5 = arith.constant 0 : index
    %5 = vector.load %arg1[%c5, %c0_5] : memref<9x512xf32, #tpu.memory_space<vmem>>, vector<1x512xf32>
    %c6 = arith.constant 6 : index
    %c0_6 = arith.constant 0 : index
    %6 = vector.load %arg1[%c6, %c0_6] : memref<9x512xf32, #tpu.memory_space<vmem>>, vector<1x512xf32>
    %c7 = arith.constant 7 : index
    %c0_7 = arith.constant 0 : index
    %7 = vector.load %arg1[%c7, %c0_7] : memref<9x512xf32, #tpu.memory_space<vmem>>, vector<1x512xf32>
    %c8 = arith.constant 8 : index
    %c0_8 = arith.constant 0 : index
    %8 = vector.load %arg1[%c8, %c0_8] : memref<9x512xf32, #tpu.memory_space<vmem>>, vector<1x512xf32>
    %cst = arith.constant 1.000000e+00 : bf16
    %9 = vector.broadcast %cst : bf16 to vector<1x512xbf16>
    %cst_9 = arith.constant 0.000000e+00 : bf16
    %10 = vector.broadcast %cst_9 : bf16 to vector<3x512xbf16>
    %11 = tpu.concatenate %9, %10 in 0 : vector<1x512xbf16>, vector<3x512xbf16> -> vector<4x512xbf16>
    %cst_10 = arith.constant 1.000000e+00 : bf16
    %12 = vector.broadcast %cst_10 : bf16 to vector<1x512xbf16>
    %cst_11 = arith.constant 0.000000e+00 : bf16
    %13 = vector.broadcast %cst_11 : bf16 to vector<5x512xbf16>
    %14 = tpu.concatenate %12, %13 in 0 : vector<1x512xbf16>, vector<5x512xbf16> -> vector<6x512xbf16>
    %c0_12 = arith.constant 0 : index
    %c0_13 = arith.constant 0 : index
    %c0_14 = arith.constant 0 : index
    %15 = vector.load %arg2[%c0_12, %c0_13, %c0_14] : memref<2x4x256xf32, #tpu.memory_space<vmem>>, vector<1x4x256xf32>
    %16 = vector.shape_cast %15 : vector<1x4x256xf32> to vector<4x256xf32>
    %c1_15 = arith.constant 1 : index
    %c0_16 = arith.constant 0 : index
    %c0_17 = arith.constant 0 : index
    %17 = vector.load %arg2[%c1_15, %c0_16, %c0_17] : memref<2x4x256xf32, #tpu.memory_space<vmem>>, vector<1x4x256xf32>
    %18 = vector.shape_cast %17 : vector<1x4x256xf32> to vector<4x256xf32>
    %19 = tpu.concatenate %16, %18 in 1 : vector<4x256xf32>, vector<4x256xf32> -> vector<4x512xf32>
    %c0_18 = arith.constant 0 : index
    %c0_19 = arith.constant 0 : index
    %c0_20 = arith.constant 0 : index
    %20 = vector.load %arg3[%c0_18, %c0_19, %c0_20] : memref<3x4x40xbf16, #tpu.memory_space<vmem>>, vector<1x4x40xbf16>
    %21 = vector.shape_cast %20 : vector<1x4x40xbf16> to vector<4x40xbf16>
    %c17_i32 = arith.constant 17 : i32
    %22 = tpu.dynamic_rotate %19 by %c17_i32 dim 1 : vector<4x512xf32>, i32 -> vector<4x512xf32>
    %23 = vector.broadcast %0 : vector<1x512xf32> to vector<4x512xf32>
    %24 = arith.mulf %22, %23 : vector<4x512xf32>
    %25 = arith.truncf %24 : vector<4x512xf32> to vector<4x512xbf16>
    %c16_i32 = arith.constant 16 : i32
    %26 = tpu.dynamic_rotate %19 by %c16_i32 dim 1 : vector<4x512xf32>, i32 -> vector<4x512xf32>
    %27 = vector.broadcast %1 : vector<1x512xf32> to vector<4x512xf32>
    %28 = arith.mulf %26, %27 : vector<4x512xf32>
    %29 = arith.truncf %28 : vector<4x512xf32> to vector<4x512xbf16>
    %c15_i32 = arith.constant 15 : i32
    %30 = tpu.dynamic_rotate %19 by %c15_i32 dim 1 : vector<4x512xf32>, i32 -> vector<4x512xf32>
    %31 = vector.broadcast %2 : vector<1x512xf32> to vector<4x512xf32>
    %32 = arith.mulf %30, %31 : vector<4x512xf32>
    %33 = arith.truncf %32 : vector<4x512xf32> to vector<4x512xbf16>
    %c1_i32 = arith.constant 1 : i32
    %34 = tpu.dynamic_rotate %19 by %c1_i32 dim 1 : vector<4x512xf32>, i32 -> vector<4x512xf32>
    %35 = vector.broadcast %3 : vector<1x512xf32> to vector<4x512xf32>
    %36 = arith.mulf %34, %35 : vector<4x512xf32>
    %37 = arith.truncf %36 : vector<4x512xf32> to vector<4x512xbf16>
    %38 = vector.broadcast %4 : vector<1x512xf32> to vector<4x512xf32>
    %39 = arith.mulf %19, %38 : vector<4x512xf32>
    %40 = arith.truncf %39 : vector<4x512xf32> to vector<4x512xbf16>
    %c511_i32 = arith.constant 511 : i32
    %41 = tpu.dynamic_rotate %19 by %c511_i32 dim 1 : vector<4x512xf32>, i32 -> vector<4x512xf32>
    %42 = vector.broadcast %5 : vector<1x512xf32> to vector<4x512xf32>
    %43 = arith.mulf %41, %42 : vector<4x512xf32>
    %44 = arith.truncf %43 : vector<4x512xf32> to vector<4x512xbf16>
    %c497_i32 = arith.constant 497 : i32
    %45 = tpu.dynamic_rotate %19 by %c497_i32 dim 1 : vector<4x512xf32>, i32 -> vector<4x512xf32>
    %46 = vector.broadcast %6 : vector<1x512xf32> to vector<4x512xf32>
    %47 = arith.mulf %45, %46 : vector<4x512xf32>
    %48 = arith.truncf %47 : vector<4x512xf32> to vector<4x512xbf16>
    %c496_i32 = arith.constant 496 : i32
    %49 = tpu.dynamic_rotate %19 by %c496_i32 dim 1 : vector<4x512xf32>, i32 -> vector<4x512xf32>
    %50 = vector.broadcast %7 : vector<1x512xf32> to vector<4x512xf32>
    %51 = arith.mulf %49, %50 : vector<4x512xf32>
    %52 = arith.truncf %51 : vector<4x512xf32> to vector<4x512xbf16>
    %c495_i32 = arith.constant 495 : i32
    %53 = tpu.dynamic_rotate %19 by %c495_i32 dim 1 : vector<4x512xf32>, i32 -> vector<4x512xf32>
    %54 = vector.broadcast %8 : vector<1x512xf32> to vector<4x512xf32>
    %55 = arith.mulf %53, %54 : vector<4x512xf32>
    %56 = arith.truncf %55 : vector<4x512xf32> to vector<4x512xbf16>
    %57 = tpu.concatenate %25, %29, %33, %37, %40, %44, %48, %52, %56, %11 in 0 : vector<4x512xbf16>, vector<4x512xbf16>, vector<4x512xbf16>, vector<4x512xbf16>, vector<4x512xbf16>, vector<4x512xbf16>, vector<4x512xbf16>, vector<4x512xbf16>, vector<4x512xbf16>, vector<4x512xbf16> -> vector<40x512xbf16>
    %cst_21 = arith.constant dense<0.000000e+00> : vector<4x512xf32>
    %58 = tpu.matmul %21, %57, %cst_21 {dimension_numbers = #tpu.dot_dimension_numbers<[1], [0], [0], [1], [0, 0, 1, 1], [], []>} : vector<4x40xbf16>, vector<40x512xbf16>, vector<4x512xf32> -> vector<4x512xf32>
    %cst_22 = arith.constant 0.000000e+00 : f32
    %59 = vector.broadcast %cst_22 : f32 to vector<4x512xf32>
    %60 = arith.maximumf %58, %59 : vector<4x512xf32>
    %c1_23 = arith.constant 1 : index
    %c0_24 = arith.constant 0 : index
    %c0_25 = arith.constant 0 : index
    %61 = vector.load %arg3[%c1_23, %c0_24, %c0_25] : memref<3x4x40xbf16, #tpu.memory_space<vmem>>, vector<1x4x40xbf16>
    %62 = vector.shape_cast %61 : vector<1x4x40xbf16> to vector<4x40xbf16>
    %c17_i32_26 = arith.constant 17 : i32
    %63 = tpu.dynamic_rotate %60 by %c17_i32_26 dim 1 : vector<4x512xf32>, i32 -> vector<4x512xf32>
    %64 = vector.broadcast %0 : vector<1x512xf32> to vector<4x512xf32>
    %65 = arith.mulf %63, %64 : vector<4x512xf32>
    %66 = arith.truncf %65 : vector<4x512xf32> to vector<4x512xbf16>
    %c16_i32_27 = arith.constant 16 : i32
    %67 = tpu.dynamic_rotate %60 by %c16_i32_27 dim 1 : vector<4x512xf32>, i32 -> vector<4x512xf32>
    %68 = vector.broadcast %1 : vector<1x512xf32> to vector<4x512xf32>
    %69 = arith.mulf %67, %68 : vector<4x512xf32>
    %70 = arith.truncf %69 : vector<4x512xf32> to vector<4x512xbf16>
    %c15_i32_28 = arith.constant 15 : i32
    %71 = tpu.dynamic_rotate %60 by %c15_i32_28 dim 1 : vector<4x512xf32>, i32 -> vector<4x512xf32>
    %72 = vector.broadcast %2 : vector<1x512xf32> to vector<4x512xf32>
    %73 = arith.mulf %71, %72 : vector<4x512xf32>
    %74 = arith.truncf %73 : vector<4x512xf32> to vector<4x512xbf16>
    %c1_i32_29 = arith.constant 1 : i32
    %75 = tpu.dynamic_rotate %60 by %c1_i32_29 dim 1 : vector<4x512xf32>, i32 -> vector<4x512xf32>
    %76 = vector.broadcast %3 : vector<1x512xf32> to vector<4x512xf32>
    %77 = arith.mulf %75, %76 : vector<4x512xf32>
    %78 = arith.truncf %77 : vector<4x512xf32> to vector<4x512xbf16>
    %79 = vector.broadcast %4 : vector<1x512xf32> to vector<4x512xf32>
    %80 = arith.mulf %60, %79 : vector<4x512xf32>
    %81 = arith.truncf %80 : vector<4x512xf32> to vector<4x512xbf16>
    %c511_i32_30 = arith.constant 511 : i32
    %82 = tpu.dynamic_rotate %60 by %c511_i32_30 dim 1 : vector<4x512xf32>, i32 -> vector<4x512xf32>
    %83 = vector.broadcast %5 : vector<1x512xf32> to vector<4x512xf32>
    %84 = arith.mulf %82, %83 : vector<4x512xf32>
    %85 = arith.truncf %84 : vector<4x512xf32> to vector<4x512xbf16>
    %c497_i32_31 = arith.constant 497 : i32
    %86 = tpu.dynamic_rotate %60 by %c497_i32_31 dim 1 : vector<4x512xf32>, i32 -> vector<4x512xf32>
    %87 = vector.broadcast %6 : vector<1x512xf32> to vector<4x512xf32>
    %88 = arith.mulf %86, %87 : vector<4x512xf32>
    %89 = arith.truncf %88 : vector<4x512xf32> to vector<4x512xbf16>
    %c496_i32_32 = arith.constant 496 : i32
    %90 = tpu.dynamic_rotate %60 by %c496_i32_32 dim 1 : vector<4x512xf32>, i32 -> vector<4x512xf32>
    %91 = vector.broadcast %7 : vector<1x512xf32> to vector<4x512xf32>
    %92 = arith.mulf %90, %91 : vector<4x512xf32>
    %93 = arith.truncf %92 : vector<4x512xf32> to vector<4x512xbf16>
    %c495_i32_33 = arith.constant 495 : i32
    %94 = tpu.dynamic_rotate %60 by %c495_i32_33 dim 1 : vector<4x512xf32>, i32 -> vector<4x512xf32>
    %95 = vector.broadcast %8 : vector<1x512xf32> to vector<4x512xf32>
    %96 = arith.mulf %94, %95 : vector<4x512xf32>
    %97 = arith.truncf %96 : vector<4x512xf32> to vector<4x512xbf16>
    %98 = tpu.concatenate %66, %70, %74, %78, %81, %85, %89, %93, %97, %11 in 0 : vector<4x512xbf16>, vector<4x512xbf16>, vector<4x512xbf16>, vector<4x512xbf16>, vector<4x512xbf16>, vector<4x512xbf16>, vector<4x512xbf16>, vector<4x512xbf16>, vector<4x512xbf16>, vector<4x512xbf16> -> vector<40x512xbf16>
    %cst_34 = arith.constant dense<0.000000e+00> : vector<4x512xf32>
    %99 = tpu.matmul %62, %98, %cst_34 {dimension_numbers = #tpu.dot_dimension_numbers<[1], [0], [0], [1], [0, 0, 1, 1], [], []>} : vector<4x40xbf16>, vector<40x512xbf16>, vector<4x512xf32> -> vector<4x512xf32>
    %cst_35 = arith.constant 0.000000e+00 : f32
    %100 = vector.broadcast %cst_35 : f32 to vector<4x512xf32>
    %101 = arith.maximumf %99, %100 : vector<4x512xf32>
    %c2_36 = arith.constant 2 : index
    %c0_37 = arith.constant 0 : index
    %c0_38 = arith.constant 0 : index
    %102 = vector.load %arg3[%c2_36, %c0_37, %c0_38] : memref<3x4x40xbf16, #tpu.memory_space<vmem>>, vector<1x4x40xbf16>
    %103 = vector.shape_cast %102 : vector<1x4x40xbf16> to vector<4x40xbf16>
    %c17_i32_39 = arith.constant 17 : i32
    %104 = tpu.dynamic_rotate %101 by %c17_i32_39 dim 1 : vector<4x512xf32>, i32 -> vector<4x512xf32>
    %105 = vector.broadcast %0 : vector<1x512xf32> to vector<4x512xf32>
    %106 = arith.mulf %104, %105 : vector<4x512xf32>
    %107 = arith.truncf %106 : vector<4x512xf32> to vector<4x512xbf16>
    %c16_i32_40 = arith.constant 16 : i32
    %108 = tpu.dynamic_rotate %101 by %c16_i32_40 dim 1 : vector<4x512xf32>, i32 -> vector<4x512xf32>
    %109 = vector.broadcast %1 : vector<1x512xf32> to vector<4x512xf32>
    %110 = arith.mulf %108, %109 : vector<4x512xf32>
    %111 = arith.truncf %110 : vector<4x512xf32> to vector<4x512xbf16>
    %c15_i32_41 = arith.constant 15 : i32
    %112 = tpu.dynamic_rotate %101 by %c15_i32_41 dim 1 : vector<4x512xf32>, i32 -> vector<4x512xf32>
    %113 = vector.broadcast %2 : vector<1x512xf32> to vector<4x512xf32>
    %114 = arith.mulf %112, %113 : vector<4x512xf32>
    %115 = arith.truncf %114 : vector<4x512xf32> to vector<4x512xbf16>
    %c1_i32_42 = arith.constant 1 : i32
    %116 = tpu.dynamic_rotate %101 by %c1_i32_42 dim 1 : vector<4x512xf32>, i32 -> vector<4x512xf32>
    %117 = vector.broadcast %3 : vector<1x512xf32> to vector<4x512xf32>
    %118 = arith.mulf %116, %117 : vector<4x512xf32>
    %119 = arith.truncf %118 : vector<4x512xf32> to vector<4x512xbf16>
    %120 = vector.broadcast %4 : vector<1x512xf32> to vector<4x512xf32>
    %121 = arith.mulf %101, %120 : vector<4x512xf32>
    %122 = arith.truncf %121 : vector<4x512xf32> to vector<4x512xbf16>
    %c511_i32_43 = arith.constant 511 : i32
    %123 = tpu.dynamic_rotate %101 by %c511_i32_43 dim 1 : vector<4x512xf32>, i32 -> vector<4x512xf32>
    %124 = vector.broadcast %5 : vector<1x512xf32> to vector<4x512xf32>
    %125 = arith.mulf %123, %124 : vector<4x512xf32>
    %126 = arith.truncf %125 : vector<4x512xf32> to vector<4x512xbf16>
    %c497_i32_44 = arith.constant 497 : i32
    %127 = tpu.dynamic_rotate %101 by %c497_i32_44 dim 1 : vector<4x512xf32>, i32 -> vector<4x512xf32>
    %128 = vector.broadcast %6 : vector<1x512xf32> to vector<4x512xf32>
    %129 = arith.mulf %127, %128 : vector<4x512xf32>
    %130 = arith.truncf %129 : vector<4x512xf32> to vector<4x512xbf16>
    %c496_i32_45 = arith.constant 496 : i32
    %131 = tpu.dynamic_rotate %101 by %c496_i32_45 dim 1 : vector<4x512xf32>, i32 -> vector<4x512xf32>
    %132 = vector.broadcast %7 : vector<1x512xf32> to vector<4x512xf32>
    %133 = arith.mulf %131, %132 : vector<4x512xf32>
    %134 = arith.truncf %133 : vector<4x512xf32> to vector<4x512xbf16>
    %c495_i32_46 = arith.constant 495 : i32
    %135 = tpu.dynamic_rotate %101 by %c495_i32_46 dim 1 : vector<4x512xf32>, i32 -> vector<4x512xf32>
    %136 = vector.broadcast %8 : vector<1x512xf32> to vector<4x512xf32>
    %137 = arith.mulf %135, %136 : vector<4x512xf32>
    %138 = arith.truncf %137 : vector<4x512xf32> to vector<4x512xbf16>
    %139 = tpu.concatenate %107, %111, %115, %119, %122, %126, %130, %134, %138, %11 in 0 : vector<4x512xbf16>, vector<4x512xbf16>, vector<4x512xbf16>, vector<4x512xbf16>, vector<4x512xbf16>, vector<4x512xbf16>, vector<4x512xbf16>, vector<4x512xbf16>, vector<4x512xbf16>, vector<4x512xbf16> -> vector<40x512xbf16>
    %cst_47 = arith.constant dense<0.000000e+00> : vector<4x512xf32>
    %140 = tpu.matmul %103, %139, %cst_47 {dimension_numbers = #tpu.dot_dimension_numbers<[1], [0], [0], [1], [0, 0, 1, 1], [], []>} : vector<4x40xbf16>, vector<40x512xbf16>, vector<4x512xf32> -> vector<4x512xf32>
    %141 = vector.extract_strided_slice %140 {offsets = [0, 0], sizes = [2, 512], strides = [1, 1]} : vector<4x512xf32> to vector<2x512xf32>
    %142 = vector.extract_strided_slice %140 {offsets = [2, 0], sizes = [2, 512], strides = [1, 1]} : vector<4x512xf32> to vector<2x512xf32>
    %c0_48 = arith.constant 0 : index
    %c0_49 = arith.constant 0 : index
    %c0_50 = arith.constant 0 : index
    %143 = vector.load %arg4[%c0_48, %c0_49, %c0_50] : memref<2x2x24xbf16, #tpu.memory_space<vmem>>, vector<1x2x24xbf16>
    %144 = vector.shape_cast %143 : vector<1x2x24xbf16> to vector<2x24xbf16>
    %c17_i32_51 = arith.constant 17 : i32
    %145 = tpu.dynamic_rotate %142 by %c17_i32_51 dim 1 : vector<2x512xf32>, i32 -> vector<2x512xf32>
    %146 = vector.broadcast %0 : vector<1x512xf32> to vector<2x512xf32>
    %147 = arith.mulf %145, %146 : vector<2x512xf32>
    %148 = arith.truncf %147 : vector<2x512xf32> to vector<2x512xbf16>
    %c16_i32_52 = arith.constant 16 : i32
    %149 = tpu.dynamic_rotate %142 by %c16_i32_52 dim 1 : vector<2x512xf32>, i32 -> vector<2x512xf32>
    %150 = vector.broadcast %1 : vector<1x512xf32> to vector<2x512xf32>
    %151 = arith.mulf %149, %150 : vector<2x512xf32>
    %152 = arith.truncf %151 : vector<2x512xf32> to vector<2x512xbf16>
    %c15_i32_53 = arith.constant 15 : i32
    %153 = tpu.dynamic_rotate %142 by %c15_i32_53 dim 1 : vector<2x512xf32>, i32 -> vector<2x512xf32>
    %154 = vector.broadcast %2 : vector<1x512xf32> to vector<2x512xf32>
    %155 = arith.mulf %153, %154 : vector<2x512xf32>
    %156 = arith.truncf %155 : vector<2x512xf32> to vector<2x512xbf16>
    %c1_i32_54 = arith.constant 1 : i32
    %157 = tpu.dynamic_rotate %142 by %c1_i32_54 dim 1 : vector<2x512xf32>, i32 -> vector<2x512xf32>
    %158 = vector.broadcast %3 : vector<1x512xf32> to vector<2x512xf32>
    %159 = arith.mulf %157, %158 : vector<2x512xf32>
    %160 = arith.truncf %159 : vector<2x512xf32> to vector<2x512xbf16>
    %161 = vector.broadcast %4 : vector<1x512xf32> to vector<2x512xf32>
    %162 = arith.mulf %142, %161 : vector<2x512xf32>
    %163 = arith.truncf %162 : vector<2x512xf32> to vector<2x512xbf16>
    %c511_i32_55 = arith.constant 511 : i32
    %164 = tpu.dynamic_rotate %142 by %c511_i32_55 dim 1 : vector<2x512xf32>, i32 -> vector<2x512xf32>
    %165 = vector.broadcast %5 : vector<1x512xf32> to vector<2x512xf32>
    %166 = arith.mulf %164, %165 : vector<2x512xf32>
    %167 = arith.truncf %166 : vector<2x512xf32> to vector<2x512xbf16>
    %c497_i32_56 = arith.constant 497 : i32
    %168 = tpu.dynamic_rotate %142 by %c497_i32_56 dim 1 : vector<2x512xf32>, i32 -> vector<2x512xf32>
    %169 = vector.broadcast %6 : vector<1x512xf32> to vector<2x512xf32>
    %170 = arith.mulf %168, %169 : vector<2x512xf32>
    %171 = arith.truncf %170 : vector<2x512xf32> to vector<2x512xbf16>
    %c496_i32_57 = arith.constant 496 : i32
    %172 = tpu.dynamic_rotate %142 by %c496_i32_57 dim 1 : vector<2x512xf32>, i32 -> vector<2x512xf32>
    %173 = vector.broadcast %7 : vector<1x512xf32> to vector<2x512xf32>
    %174 = arith.mulf %172, %173 : vector<2x512xf32>
    %175 = arith.truncf %174 : vector<2x512xf32> to vector<2x512xbf16>
    %c495_i32_58 = arith.constant 495 : i32
    %176 = tpu.dynamic_rotate %142 by %c495_i32_58 dim 1 : vector<2x512xf32>, i32 -> vector<2x512xf32>
    %177 = vector.broadcast %8 : vector<1x512xf32> to vector<2x512xf32>
    %178 = arith.mulf %176, %177 : vector<2x512xf32>
    %179 = arith.truncf %178 : vector<2x512xf32> to vector<2x512xbf16>
    %180 = tpu.concatenate %148, %152, %156, %160, %163, %167, %171, %175, %179, %14 in 0 : vector<2x512xbf16>, vector<2x512xbf16>, vector<2x512xbf16>, vector<2x512xbf16>, vector<2x512xbf16>, vector<2x512xbf16>, vector<2x512xbf16>, vector<2x512xbf16>, vector<2x512xbf16>, vector<6x512xbf16> -> vector<24x512xbf16>
    %cst_59 = arith.constant dense<0.000000e+00> : vector<2x512xf32>
    %181 = tpu.matmul %144, %180, %cst_59 {dimension_numbers = #tpu.dot_dimension_numbers<[1], [0], [0], [1], [0, 0, 1, 1], [], []>} : vector<2x24xbf16>, vector<24x512xbf16>, vector<2x512xf32> -> vector<2x512xf32>
    %182 = arith.addf %141, %181 : vector<2x512xf32>
    %c0_60 = arith.constant 0 : index
    %c0_61 = arith.constant 0 : index
    %c0_62 = arith.constant 0 : index
    %183 = vector.load %arg5[%c0_60, %c0_61, %c0_62] : memref<2x4x24xbf16, #tpu.memory_space<vmem>>, vector<1x4x24xbf16>
    %184 = vector.shape_cast %183 : vector<1x4x24xbf16> to vector<4x24xbf16>
    %c17_i32_63 = arith.constant 17 : i32
    %185 = tpu.dynamic_rotate %182 by %c17_i32_63 dim 1 : vector<2x512xf32>, i32 -> vector<2x512xf32>
    %186 = vector.broadcast %0 : vector<1x512xf32> to vector<2x512xf32>
    %187 = arith.mulf %185, %186 : vector<2x512xf32>
    %188 = arith.truncf %187 : vector<2x512xf32> to vector<2x512xbf16>
    %c16_i32_64 = arith.constant 16 : i32
    %189 = tpu.dynamic_rotate %182 by %c16_i32_64 dim 1 : vector<2x512xf32>, i32 -> vector<2x512xf32>
    %190 = vector.broadcast %1 : vector<1x512xf32> to vector<2x512xf32>
    %191 = arith.mulf %189, %190 : vector<2x512xf32>
    %192 = arith.truncf %191 : vector<2x512xf32> to vector<2x512xbf16>
    %c15_i32_65 = arith.constant 15 : i32
    %193 = tpu.dynamic_rotate %182 by %c15_i32_65 dim 1 : vector<2x512xf32>, i32 -> vector<2x512xf32>
    %194 = vector.broadcast %2 : vector<1x512xf32> to vector<2x512xf32>
    %195 = arith.mulf %193, %194 : vector<2x512xf32>
    %196 = arith.truncf %195 : vector<2x512xf32> to vector<2x512xbf16>
    %c1_i32_66 = arith.constant 1 : i32
    %197 = tpu.dynamic_rotate %182 by %c1_i32_66 dim 1 : vector<2x512xf32>, i32 -> vector<2x512xf32>
    %198 = vector.broadcast %3 : vector<1x512xf32> to vector<2x512xf32>
    %199 = arith.mulf %197, %198 : vector<2x512xf32>
    %200 = arith.truncf %199 : vector<2x512xf32> to vector<2x512xbf16>
    %201 = vector.broadcast %4 : vector<1x512xf32> to vector<2x512xf32>
    %202 = arith.mulf %182, %201 : vector<2x512xf32>
    %203 = arith.truncf %202 : vector<2x512xf32> to vector<2x512xbf16>
    %c511_i32_67 = arith.constant 511 : i32
    %204 = tpu.dynamic_rotate %182 by %c511_i32_67 dim 1 : vector<2x512xf32>, i32 -> vector<2x512xf32>
    %205 = vector.broadcast %5 : vector<1x512xf32> to vector<2x512xf32>
    %206 = arith.mulf %204, %205 : vector<2x512xf32>
    %207 = arith.truncf %206 : vector<2x512xf32> to vector<2x512xbf16>
    %c497_i32_68 = arith.constant 497 : i32
    %208 = tpu.dynamic_rotate %182 by %c497_i32_68 dim 1 : vector<2x512xf32>, i32 -> vector<2x512xf32>
    %209 = vector.broadcast %6 : vector<1x512xf32> to vector<2x512xf32>
    %210 = arith.mulf %208, %209 : vector<2x512xf32>
    %211 = arith.truncf %210 : vector<2x512xf32> to vector<2x512xbf16>
    %c496_i32_69 = arith.constant 496 : i32
    %212 = tpu.dynamic_rotate %182 by %c496_i32_69 dim 1 : vector<2x512xf32>, i32 -> vector<2x512xf32>
    %213 = vector.broadcast %7 : vector<1x512xf32> to vector<2x512xf32>
    %214 = arith.mulf %212, %213 : vector<2x512xf32>
    %215 = arith.truncf %214 : vector<2x512xf32> to vector<2x512xbf16>
    %c495_i32_70 = arith.constant 495 : i32
    %216 = tpu.dynamic_rotate %182 by %c495_i32_70 dim 1 : vector<2x512xf32>, i32 -> vector<2x512xf32>
    %217 = vector.broadcast %8 : vector<1x512xf32> to vector<2x512xf32>
    %218 = arith.mulf %216, %217 : vector<2x512xf32>
    %219 = arith.truncf %218 : vector<2x512xf32> to vector<2x512xbf16>
    %220 = tpu.concatenate %188, %192, %196, %200, %203, %207, %211, %215, %219, %14 in 0 : vector<2x512xbf16>, vector<2x512xbf16>, vector<2x512xbf16>, vector<2x512xbf16>, vector<2x512xbf16>, vector<2x512xbf16>, vector<2x512xbf16>, vector<2x512xbf16>, vector<2x512xbf16>, vector<6x512xbf16> -> vector<24x512xbf16>
    %cst_71 = arith.constant dense<0.000000e+00> : vector<4x512xf32>
    %221 = tpu.matmul %184, %220, %cst_71 {dimension_numbers = #tpu.dot_dimension_numbers<[1], [0], [0], [1], [0, 0, 1, 1], [], []>} : vector<4x24xbf16>, vector<24x512xbf16>, vector<4x512xf32> -> vector<4x512xf32>
    %222 = vector.extract_strided_slice %221 {offsets = [0, 0], sizes = [2, 512], strides = [1, 1]} : vector<4x512xf32> to vector<2x512xf32>
    %223 = vector.extract_strided_slice %221 {offsets = [2, 0], sizes = [2, 512], strides = [1, 1]} : vector<4x512xf32> to vector<2x512xf32>
    %224 = arith.negf %222 : vector<2x512xf32>
    %225 = math.exp %224 : vector<2x512xf32>
    %cst_72 = arith.constant 1.000000e+00 : f32
    %226 = vector.broadcast %cst_72 : f32 to vector<2x512xf32>
    %227 = arith.addf %226, %225 : vector<2x512xf32>
    %228 = arith.divf %226, %227 : vector<2x512xf32>
    %cst_73 = arith.constant 2.000000e+00 : f32
    %229 = vector.broadcast %cst_73 : f32 to vector<2x512xf32>
    %230 = arith.mulf %229, %228 : vector<2x512xf32>
    %cst_74 = arith.constant 1.000000e+00 : f32
    %231 = vector.broadcast %cst_74 : f32 to vector<2x512xf32>
    %232 = arith.subf %230, %231 : vector<2x512xf32>
    %cst_75 = arith.constant 2.000000e+00 : f32
    %233 = vector.broadcast %cst_75 : f32 to vector<2x512xf32>
    %234 = arith.mulf %233, %232 : vector<2x512xf32>
    %235 = math.exp %234 : vector<2x512xf32>
    %236 = arith.mulf %142, %235 : vector<2x512xf32>
    %237 = arith.addf %236, %223 : vector<2x512xf32>
    %c1_76 = arith.constant 1 : index
    %c0_77 = arith.constant 0 : index
    %c0_78 = arith.constant 0 : index
    %238 = vector.load %arg4[%c1_76, %c0_77, %c0_78] : memref<2x2x24xbf16, #tpu.memory_space<vmem>>, vector<1x2x24xbf16>
    %239 = vector.shape_cast %238 : vector<1x2x24xbf16> to vector<2x24xbf16>
    %c17_i32_79 = arith.constant 17 : i32
    %240 = tpu.dynamic_rotate %237 by %c17_i32_79 dim 1 : vector<2x512xf32>, i32 -> vector<2x512xf32>
    %241 = vector.broadcast %0 : vector<1x512xf32> to vector<2x512xf32>
    %242 = arith.mulf %240, %241 : vector<2x512xf32>
    %243 = arith.truncf %242 : vector<2x512xf32> to vector<2x512xbf16>
    %c16_i32_80 = arith.constant 16 : i32
    %244 = tpu.dynamic_rotate %237 by %c16_i32_80 dim 1 : vector<2x512xf32>, i32 -> vector<2x512xf32>
    %245 = vector.broadcast %1 : vector<1x512xf32> to vector<2x512xf32>
    %246 = arith.mulf %244, %245 : vector<2x512xf32>
    %247 = arith.truncf %246 : vector<2x512xf32> to vector<2x512xbf16>
    %c15_i32_81 = arith.constant 15 : i32
    %248 = tpu.dynamic_rotate %237 by %c15_i32_81 dim 1 : vector<2x512xf32>, i32 -> vector<2x512xf32>
    %249 = vector.broadcast %2 : vector<1x512xf32> to vector<2x512xf32>
    %250 = arith.mulf %248, %249 : vector<2x512xf32>
    %251 = arith.truncf %250 : vector<2x512xf32> to vector<2x512xbf16>
    %c1_i32_82 = arith.constant 1 : i32
    %252 = tpu.dynamic_rotate %237 by %c1_i32_82 dim 1 : vector<2x512xf32>, i32 -> vector<2x512xf32>
    %253 = vector.broadcast %3 : vector<1x512xf32> to vector<2x512xf32>
    %254 = arith.mulf %252, %253 : vector<2x512xf32>
    %255 = arith.truncf %254 : vector<2x512xf32> to vector<2x512xbf16>
    %256 = vector.broadcast %4 : vector<1x512xf32> to vector<2x512xf32>
    %257 = arith.mulf %237, %256 : vector<2x512xf32>
    %258 = arith.truncf %257 : vector<2x512xf32> to vector<2x512xbf16>
    %c511_i32_83 = arith.constant 511 : i32
    %259 = tpu.dynamic_rotate %237 by %c511_i32_83 dim 1 : vector<2x512xf32>, i32 -> vector<2x512xf32>
    %260 = vector.broadcast %5 : vector<1x512xf32> to vector<2x512xf32>
    %261 = arith.mulf %259, %260 : vector<2x512xf32>
    %262 = arith.truncf %261 : vector<2x512xf32> to vector<2x512xbf16>
    %c497_i32_84 = arith.constant 497 : i32
    %263 = tpu.dynamic_rotate %237 by %c497_i32_84 dim 1 : vector<2x512xf32>, i32 -> vector<2x512xf32>
    %264 = vector.broadcast %6 : vector<1x512xf32> to vector<2x512xf32>
    %265 = arith.mulf %263, %264 : vector<2x512xf32>
    %266 = arith.truncf %265 : vector<2x512xf32> to vector<2x512xbf16>
    %c496_i32_85 = arith.constant 496 : i32
    %267 = tpu.dynamic_rotate %237 by %c496_i32_85 dim 1 : vector<2x512xf32>, i32 -> vector<2x512xf32>
    %268 = vector.broadcast %7 : vector<1x512xf32> to vector<2x512xf32>
    %269 = arith.mulf %267, %268 : vector<2x512xf32>
    %270 = arith.truncf %269 : vector<2x512xf32> to vector<2x512xbf16>
    %c495_i32_86 = arith.constant 495 : i32
    %271 = tpu.dynamic_rotate %237 by %c495_i32_86 dim 1 : vector<2x512xf32>, i32 -> vector<2x512xf32>
    %272 = vector.broadcast %8 : vector<1x512xf32> to vector<2x512xf32>
    %273 = arith.mulf %271, %272 : vector<2x512xf32>
    %274 = arith.truncf %273 : vector<2x512xf32> to vector<2x512xbf16>
    %275 = tpu.concatenate %243, %247, %251, %255, %258, %262, %266, %270, %274, %14 in 0 : vector<2x512xbf16>, vector<2x512xbf16>, vector<2x512xbf16>, vector<2x512xbf16>, vector<2x512xbf16>, vector<2x512xbf16>, vector<2x512xbf16>, vector<2x512xbf16>, vector<2x512xbf16>, vector<6x512xbf16> -> vector<24x512xbf16>
    %cst_87 = arith.constant dense<0.000000e+00> : vector<2x512xf32>
    %276 = tpu.matmul %239, %275, %cst_87 {dimension_numbers = #tpu.dot_dimension_numbers<[1], [0], [0], [1], [0, 0, 1, 1], [], []>} : vector<2x24xbf16>, vector<24x512xbf16>, vector<2x512xf32> -> vector<2x512xf32>
    %277 = arith.addf %182, %276 : vector<2x512xf32>
    %c1_88 = arith.constant 1 : index
    %c0_89 = arith.constant 0 : index
    %c0_90 = arith.constant 0 : index
    %278 = vector.load %arg5[%c1_88, %c0_89, %c0_90] : memref<2x4x24xbf16, #tpu.memory_space<vmem>>, vector<1x4x24xbf16>
    %279 = vector.shape_cast %278 : vector<1x4x24xbf16> to vector<4x24xbf16>
    %c17_i32_91 = arith.constant 17 : i32
    %280 = tpu.dynamic_rotate %277 by %c17_i32_91 dim 1 : vector<2x512xf32>, i32 -> vector<2x512xf32>
    %281 = vector.broadcast %0 : vector<1x512xf32> to vector<2x512xf32>
    %282 = arith.mulf %280, %281 : vector<2x512xf32>
    %283 = arith.truncf %282 : vector<2x512xf32> to vector<2x512xbf16>
    %c16_i32_92 = arith.constant 16 : i32
    %284 = tpu.dynamic_rotate %277 by %c16_i32_92 dim 1 : vector<2x512xf32>, i32 -> vector<2x512xf32>
    %285 = vector.broadcast %1 : vector<1x512xf32> to vector<2x512xf32>
    %286 = arith.mulf %284, %285 : vector<2x512xf32>
    %287 = arith.truncf %286 : vector<2x512xf32> to vector<2x512xbf16>
    %c15_i32_93 = arith.constant 15 : i32
    %288 = tpu.dynamic_rotate %277 by %c15_i32_93 dim 1 : vector<2x512xf32>, i32 -> vector<2x512xf32>
    %289 = vector.broadcast %2 : vector<1x512xf32> to vector<2x512xf32>
    %290 = arith.mulf %288, %289 : vector<2x512xf32>
    %291 = arith.truncf %290 : vector<2x512xf32> to vector<2x512xbf16>
    %c1_i32_94 = arith.constant 1 : i32
    %292 = tpu.dynamic_rotate %277 by %c1_i32_94 dim 1 : vector<2x512xf32>, i32 -> vector<2x512xf32>
    %293 = vector.broadcast %3 : vector<1x512xf32> to vector<2x512xf32>
    %294 = arith.mulf %292, %293 : vector<2x512xf32>
    %295 = arith.truncf %294 : vector<2x512xf32> to vector<2x512xbf16>
    %296 = vector.broadcast %4 : vector<1x512xf32> to vector<2x512xf32>
    %297 = arith.mulf %277, %296 : vector<2x512xf32>
    %298 = arith.truncf %297 : vector<2x512xf32> to vector<2x512xbf16>
    %c511_i32_95 = arith.constant 511 : i32
    %299 = tpu.dynamic_rotate %277 by %c511_i32_95 dim 1 : vector<2x512xf32>, i32 -> vector<2x512xf32>
    %300 = vector.broadcast %5 : vector<1x512xf32> to vector<2x512xf32>
    %301 = arith.mulf %299, %300 : vector<2x512xf32>
    %302 = arith.truncf %301 : vector<2x512xf32> to vector<2x512xbf16>
    %c497_i32_96 = arith.constant 497 : i32
    %303 = tpu.dynamic_rotate %277 by %c497_i32_96 dim 1 : vector<2x512xf32>, i32 -> vector<2x512xf32>
    %304 = vector.broadcast %6 : vector<1x512xf32> to vector<2x512xf32>
    %305 = arith.mulf %303, %304 : vector<2x512xf32>
    %306 = arith.truncf %305 : vector<2x512xf32> to vector<2x512xbf16>
    %c496_i32_97 = arith.constant 496 : i32
    %307 = tpu.dynamic_rotate %277 by %c496_i32_97 dim 1 : vector<2x512xf32>, i32 -> vector<2x512xf32>
    %308 = vector.broadcast %7 : vector<1x512xf32> to vector<2x512xf32>
    %309 = arith.mulf %307, %308 : vector<2x512xf32>
    %310 = arith.truncf %309 : vector<2x512xf32> to vector<2x512xbf16>
    %c495_i32_98 = arith.constant 495 : i32
    %311 = tpu.dynamic_rotate %277 by %c495_i32_98 dim 1 : vector<2x512xf32>, i32 -> vector<2x512xf32>
    %312 = vector.broadcast %8 : vector<1x512xf32> to vector<2x512xf32>
    %313 = arith.mulf %311, %312 : vector<2x512xf32>
    %314 = arith.truncf %313 : vector<2x512xf32> to vector<2x512xbf16>
    %315 = tpu.concatenate %283, %287, %291, %295, %298, %302, %306, %310, %314, %14 in 0 : vector<2x512xbf16>, vector<2x512xbf16>, vector<2x512xbf16>, vector<2x512xbf16>, vector<2x512xbf16>, vector<2x512xbf16>, vector<2x512xbf16>, vector<2x512xbf16>, vector<2x512xbf16>, vector<6x512xbf16> -> vector<24x512xbf16>
    %cst_99 = arith.constant dense<0.000000e+00> : vector<4x512xf32>
    %316 = tpu.matmul %279, %315, %cst_99 {dimension_numbers = #tpu.dot_dimension_numbers<[1], [0], [0], [1], [0, 0, 1, 1], [], []>} : vector<4x24xbf16>, vector<24x512xbf16>, vector<4x512xf32> -> vector<4x512xf32>
    %317 = vector.extract_strided_slice %316 {offsets = [0, 0], sizes = [2, 512], strides = [1, 1]} : vector<4x512xf32> to vector<2x512xf32>
    %318 = vector.extract_strided_slice %316 {offsets = [2, 0], sizes = [2, 512], strides = [1, 1]} : vector<4x512xf32> to vector<2x512xf32>
    %319 = arith.negf %317 : vector<2x512xf32>
    %320 = math.exp %319 : vector<2x512xf32>
    %cst_100 = arith.constant 1.000000e+00 : f32
    %321 = vector.broadcast %cst_100 : f32 to vector<2x512xf32>
    %322 = arith.addf %321, %320 : vector<2x512xf32>
    %323 = arith.divf %321, %322 : vector<2x512xf32>
    %cst_101 = arith.constant 2.000000e+00 : f32
    %324 = vector.broadcast %cst_101 : f32 to vector<2x512xf32>
    %325 = arith.mulf %324, %323 : vector<2x512xf32>
    %cst_102 = arith.constant 1.000000e+00 : f32
    %326 = vector.broadcast %cst_102 : f32 to vector<2x512xf32>
    %327 = arith.subf %325, %326 : vector<2x512xf32>
    %cst_103 = arith.constant 2.000000e+00 : f32
    %328 = vector.broadcast %cst_103 : f32 to vector<2x512xf32>
    %329 = arith.mulf %328, %327 : vector<2x512xf32>
    %330 = math.exp %329 : vector<2x512xf32>
    %331 = arith.mulf %237, %330 : vector<2x512xf32>
    %332 = arith.addf %331, %318 : vector<2x512xf32>
    %333 = vector.extract_strided_slice %277 {offsets = [0, 0], sizes = [2, 256], strides = [1, 1]} : vector<2x512xf32> to vector<2x256xf32>
    %c0_104 = arith.constant 0 : index
    %c0_105 = arith.constant 0 : index
    %c0_106 = arith.constant 0 : index
    %334 = vector.load %arg6[%c0_104, %c0_105, %c0_106] : memref<2x4x256xf32, #tpu.memory_space<vmem>>, vector<1x2x256xf32>
    %335 = vector.shape_cast %334 : vector<1x2x256xf32> to vector<2x256xf32>
    %336 = vector.shape_cast %333 : vector<2x256xf32> to vector<1x2x256xf32>
    tpu.vector_store %arg6[%c0_104, %c0_105, %c0_106], %336 {strides = array<i32>} : memref<2x4x256xf32, #tpu.memory_space<vmem>>, vector<1x2x256xf32>,
    %337 = vector.extract_strided_slice %332 {offsets = [0, 0], sizes = [2, 256], strides = [1, 1]} : vector<2x512xf32> to vector<2x256xf32>
    %c0_107 = arith.constant 0 : index
    %c2_108 = arith.constant 2 : index
    %c0_109 = arith.constant 0 : index
    %338 = vector.load %arg6[%c0_107, %c2_108, %c0_109] : memref<2x4x256xf32, #tpu.memory_space<vmem>>, vector<1x2x256xf32>
    %339 = vector.shape_cast %338 : vector<1x2x256xf32> to vector<2x256xf32>
    %340 = vector.shape_cast %337 : vector<2x256xf32> to vector<1x2x256xf32>
    tpu.vector_store %arg6[%c0_107, %c2_108, %c0_109], %340 {strides = array<i32>} : memref<2x4x256xf32, #tpu.memory_space<vmem>>, vector<1x2x256xf32>,
    %341 = vector.extract_strided_slice %277 {offsets = [0, 256], sizes = [2, 256], strides = [1, 1]} : vector<2x512xf32> to vector<2x256xf32>
    %c1_110 = arith.constant 1 : index
    %c0_111 = arith.constant 0 : index
    %c0_112 = arith.constant 0 : index
    %342 = vector.load %arg6[%c1_110, %c0_111, %c0_112] : memref<2x4x256xf32, #tpu.memory_space<vmem>>, vector<1x2x256xf32>
    %343 = vector.shape_cast %342 : vector<1x2x256xf32> to vector<2x256xf32>
    %344 = vector.shape_cast %341 : vector<2x256xf32> to vector<1x2x256xf32>
    tpu.vector_store %arg6[%c1_110, %c0_111, %c0_112], %344 {strides = array<i32>} : memref<2x4x256xf32, #tpu.memory_space<vmem>>, vector<1x2x256xf32>,
    %345 = vector.extract_strided_slice %332 {offsets = [0, 256], sizes = [2, 256], strides = [1, 1]} : vector<2x512xf32> to vector<2x256xf32>
    %c1_113 = arith.constant 1 : index
    %c2_114 = arith.constant 2 : index
    %c0_115 = arith.constant 0 : index
    %346 = vector.load %arg6[%c1_113, %c2_114, %c0_115] : memref<2x4x256xf32, #tpu.memory_space<vmem>>, vector<1x2x256xf32>
    %347 = vector.shape_cast %346 : vector<1x2x256xf32> to vector<2x256xf32>
    %348 = vector.shape_cast %345 : vector<2x256xf32> to vector<1x2x256xf32>
    tpu.vector_store %arg6[%c1_113, %c2_114, %c0_115], %348 {strides = array<i32>} : memref<2x4x256xf32, #tpu.memory_space<vmem>>, vector<1x2x256xf32>,
    return
  }
  func.func @transform_0(%arg0: i32) -> (i32, i32) {
    %c0_i32 = arith.constant 0 : i32
    %c0_i32_0 = arith.constant 0 : i32
    %c0_i32_1 = arith.constant 0 : i32
    return %c0_i32, %c0_i32_0 : i32, i32
  }
  func.func @transform_1(%arg0: i32) -> (i32, i32, i32) {
    %c0_i32 = arith.constant 0 : i32
    %c0_i32_0 = arith.constant 0 : i32
    %c0_i32_1 = arith.constant 0 : i32
    return %arg0, %c0_i32, %c0_i32_0 : i32, i32, i32
  }
  func.func @transform_2(%arg0: i32) -> (i32, i32, i32) {
    %c0_i32 = arith.constant 0 : i32
    %c0_i32_0 = arith.constant 0 : i32
    %c0_i32_1 = arith.constant 0 : i32
    %c0_i32_2 = arith.constant 0 : i32
    return %c0_i32, %c0_i32_0, %c0_i32_1 : i32, i32, i32
  }
  func.func @transform_3(%arg0: i32) -> (i32, i32, i32) {
    %c0_i32 = arith.constant 0 : i32
    %c0_i32_0 = arith.constant 0 : i32
    %c0_i32_1 = arith.constant 0 : i32
    %c0_i32_2 = arith.constant 0 : i32
    return %c0_i32, %c0_i32_0, %c0_i32_1 : i32, i32, i32
  }
  func.func @transform_4(%arg0: i32) -> (i32, i32, i32) {
    %c0_i32 = arith.constant 0 : i32
    %c0_i32_0 = arith.constant 0 : i32
    %c0_i32_1 = arith.constant 0 : i32
    %c0_i32_2 = arith.constant 0 : i32
    return %c0_i32, %c0_i32_0, %c0_i32_1 : i32, i32, i32
  }
  func.func @transform_5(%arg0: i32) -> (i32, i32, i32) {
    %c0_i32 = arith.constant 0 : i32
    %c0_i32_0 = arith.constant 0 : i32
    %c0_i32_1 = arith.constant 0 : i32
    return %arg0, %c0_i32, %c0_i32_0 : i32, i32, i32
  }
}

</mosaic_0001>

<bundles_post_ra>
// kernel: model_forward.1
= control target key start
LH: loop header
LB: loop body
LE: loop exit
PB: predicated region body
PF: predicated region fallthrough
CT: control target
= control target key end

     0   :  { %s3286_s22 = smov 16   ;;  %s3288_s23 = smov 17   ;;  %v5087_v4 = vmov 0   ;;  %v61_v7 = vlaneseq  ;;  %vm470_vm4 = vcmask 1041408   ;;  %vm483_vm5 = vcmask 1043456   ;;  %s5081_s1 = inlined_call_operand.vmem [shape: f32[2,4,256], index: 1, kind: input, shape index: {}]   ;;  %s5082_s0 = inlined_call_operand.vmem [shape: f32[9,512], index: 0, kind: input, shape index: {}]   ;;  %s5083_s2 = inlined_call_operand.vmem [shape: bf16[3,4,40], index: 2, kind: input, shape index: {}]   ;;  %s5084_s3 = inlined_call_operand.vmem [shape: bf16[2,2,24], index: 3, kind: input, shape index: {}]   ;;  %s5085_s4 = inlined_call_operand.vmem [shape: bf16[2,4,24], index: 4, kind: input, shape index: {}]   ;;  %s5086_s5 = inlined_call_operand.vmem [shape: f32[2,4,256], index: 5, kind: output, shape index: {}]  }
   0x1   :  { %v3328_v0 = vld [vmem:[%s5081_s1 + $0x8] sm:$0xff]  ;;  %v3333_v1 = vld [vmem:[%s5081_s1] sm:$0xff]  ;;  %s3287_s1 = smov 15   ;;  %s3289_s24 = smov 1   ;;  %590 = vmatprep.mubr.bf16.mxu0 %v5087_v4  ;;  %631 = vmatprep.mubr.bf16.mxu1 %v5087_v4  ;;  %vm492_vm6 = vcmask 1045504   ;;  %vm39_vm10 = vcmask 1040384  }
   0x2   :  { %101 = vrot.lane.b32.xlu1 %v3328_v0, %s3286_s22  ;;  %97 = vrot.lane.b32.xlu0 %v3333_v1, %s3286_s22  ;;  %v3341_v2 = vcombine.high %v3328_v0, %v3328_v0  ;;  %v3345_v3 = vcombine.high %v3333_v1, %v3333_v1  ;;  %s3290_s25 = smov 127   ;;  %s3291_s26 = smov 113   ;;  %v70_v8 = vshrl.u32 %v61_v7, 7  ;;  %v3409_v11 = vand.u32 127, %v61_v7 }
   0x3   :  { %s3293_s27 = smov 112   ;;  %s3294_s28 = smov 111   ;;  %v3168_v16 = vld [vmem:[%s5082_s0 + $0x1] ss:$8 sm:$0xf]  ;;  %vm546_vm14 = vcmask 326656  }
   0x4   :  { %v3411_v12 = vsub.s32 0, %v70_v8  ;;  %v3413_v15 = vsub.s32 3, %v70_v8  ;;  %vm105_vm0 = vcmp.lt.s32.totalorder %v3409_v11, 16  ;;  %v3419_v17 = vsub.s32 1, %v70_v8 }
   0x5   :  { %v3421_v18 = vsub.s32 2, %v70_v8  ;;  %v3169_v20 = vld [vmem:[%s5082_s0 + $0x2] ss:$8 sm:$0xf]  ;;  %vm63_vm1 = vcmp.lt.s32.totalorder %v3409_v11, 17  ;;  %vm147_vm2 = vcmp.lt.s32.totalorder %v3409_v11, 15 }
   0x6   :  { %103 = vrot.lane.b32.xlu1 %v3341_v2, %s3286_s22  ;;  %99 = vrot.lane.b32.xlu0 %v3345_v3, %s3286_s22  ;;  %v3424_v19 = vrot.slane %v3168_v16, %v3411_v12  ;;  %v3434_v24 = vrot.slane %v3168_v16, %v3413_v15  ;;  %v22_v25 = vld [vmem:[%s5082_s0] ss:$8 sm:$0xf]  ;;  %vm189_vm3 = vcmp.lt.s32.totalorder %v3409_v11, 1  ;;  %v3441_v26 = vrot.slane %v3168_v16, %v3419_v17 }
   0x7   :  { %v3444_v27 = vrot.slane %v3168_v16, %v3421_v18  ;;  %v3447_v28 = vrot.slane %v3169_v20, %v3411_v12  ;;  %v3450_v29 = vrot.slane %v3169_v20, %v3413_v15  ;;  %v3459_v33 = vrot.slane %v3169_v20, %v3419_v17  ;;  %v3170_v40 = vld [vmem:[%s5082_s0 + $0x3] ss:$8 sm:$0xf]  ;;  %v3516_v7 = vld [vmem:[%s5082_s0 + $0x4] ss:$8 sm:$0xf] }
   0x8   :  { %5150 = vst [vmem:[#allocation2_spill] sm:$0xff] %v3424_v19  ;;  %5151 = vst [vmem:[#allocation3_spill] sm:$0xff] %v3434_v24  ;;  %v3465_v36 = vrot.slane %v3169_v20, %v3421_v18  ;;  %v3468_v39 = vrot.slane %v22_v25, %v3419_v17  ;;  %v3476_v42 = vrot.slane %v22_v25, %v3411_v12  ;;  %vm260_vm7 = vcmp.lt.s32.totalorder %v3409_v11, 127 }
   0x9   :  { %5152 = vst [vmem:[#allocation4_spill] sm:$0xff] %v3441_v26  ;;  %5153 = vst [vmem:[#allocation5_spill] sm:$0xff] %v3444_v27  ;;  %v3479_v43 = vrot.slane %v22_v25, %v3421_v18  ;;  %v3485_v47 = vrot.slane %v22_v25, %v3413_v15  ;;  %v3489_v49 = vrot.slane %v3170_v40, %v3419_v17  ;;  %vm302_vm8 = vcmp.lt.s32.totalorder %v3409_v11, 113 }
   0xa   :  { %141 = vrot.lane.b32.xlu1 %v3345_v3, %s3287_s1  ;;  %139 = vrot.lane.b32.xlu0 %v3333_v1, %s3287_s1  ;;  %5154 = vst [vmem:[#allocation6_spill] sm:$0xff] %v3447_v28  ;;  %5155 = vst [vmem:[#allocation7_spill] sm:$0xff] %v3450_v29  ;;  %v3492_v50 = vrot.slane %v3170_v40, %v3411_v12  ;;  %v3495_v51 = vrot.slane %v3170_v40, %v3421_v18  ;;  %vm344_vm9 = vcmp.lt.s32.totalorder %v3409_v11, 112  ;;  %vm40_vm11 = vsmask.f32 256 }
   0xb   :  { %5156 = vst [vmem:[#allocation8_spill] sm:$0xff] %v3459_v33  ;;  %5157 = vst [vmem:[#allocation9_spill] sm:$0xff] %v3465_v36  ;;  %v3501_v57 = vrot.slane %v3170_v40, %v3413_v15  ;;  %vm386_vm13 = vcmp.lt.s32.totalorder %v3409_v11, 111  ;;  %vm1673_vm15 = vcmask 1042432  }
   0xc   :  { %5158 = vst [vmem:[#allocation10_spill] sm:$0xff] %v3468_v39  ;;  %5159 = vst [vmem:[#allocation11_spill] sm:$0xff] %v3476_v42 }
   0xd   :  { %5160 = vst [vmem:[#allocation12_spill] sm:$0xff] %v3479_v43  ;;  %5161 = vst [vmem:[#allocation13_spill] sm:$0xff] %v3485_v47 }
   0xe   :  { %145 = vrot.lane.b32.xlu1 %v3341_v2, %s3287_s1  ;;  %143 = vrot.lane.b32.xlu0 %v3328_v0, %s3287_s1  ;;  %5162 = vst [vmem:[#allocation14_spill] sm:$0xff] %v3489_v49  ;;  %5163 = vst [vmem:[#allocation15_spill] sm:$0xff] %v3492_v50 }
   0xf   :  { %5164 = vst [vmem:[#allocation16_spill] sm:$0xff] %v3495_v51  ;;  %5165 = vst [vmem:[#allocation17_spill] sm:$0xff] %v3501_v57 }
  0x10   :  { %vm3647_vm12 = vmand %vm39_vm10, %vm40_vm11  ;;  %vm1690_vm11 = vcmask 1044480  }
  0x12   :  { %55 = vrot.lane.b32.xlu1 %v3345_v3, %s3288_s23  ;;  %53 = vrot.lane.b32.xlu0 %v3333_v1, %s3288_s23 }
  0x16   :  { %59 = vrot.lane.b32.xlu1 %v3341_v2, %s3288_s23  ;;  %57 = vrot.lane.b32.xlu0 %v3328_v0, %s3288_s23 }
  0x1a   :  { %183 = vrot.lane.b32.xlu1 %v3345_v3, %s3289_s24  ;;  %181 = vrot.lane.b32.xlu0 %v3333_v1, %s3289_s24 }
  0x1e   :  { %187 = vrot.lane.b32.xlu1 %v3341_v2, %s3289_s24  ;;  %185 = vrot.lane.b32.xlu0 %v3328_v0, %s3289_s24 }
  0x22   :  { %254 = vrot.lane.b32.xlu1 %v3345_v3, %s3290_s25  ;;  %252 = vrot.lane.b32.xlu0 %v3333_v1, %s3290_s25 }
  0x26   :  { %258 = vrot.lane.b32.xlu1 %v3341_v2, %s3290_s25  ;;  %256 = vrot.lane.b32.xlu0 %v3328_v0, %s3290_s25 }
  0x2a   :  { %296 = vrot.lane.b32.xlu1 %v3345_v3, %s3291_s26  ;;  %294 = vrot.lane.b32.xlu0 %v3333_v1, %s3291_s26 }
  0x2e   :  { %300 = vrot.lane.b32.xlu1 %v3341_v2, %s3291_s26  ;;  %298 = vrot.lane.b32.xlu0 %v3328_v0, %s3291_s26 }
  0x32   :  { %338 = vrot.lane.b32.xlu1 %v3345_v3, %s3293_s27  ;;  %336 = vrot.lane.b32.xlu0 %v3333_v1, %s3293_s27 }
  0x36   :  { %342 = vrot.lane.b32.xlu1 %v3341_v2, %s3293_s27  ;;  %340 = vrot.lane.b32.xlu0 %v3328_v0, %s3293_s27 }
  0x3a   :  { %380 = vrot.lane.b32.xlu1 %v3345_v3, %s3294_s28  ;;  %378 = vrot.lane.b32.xlu0 %v3333_v1, %s3294_s28 }
  0x3e   :  { %384 = vrot.lane.b32.xlu1 %v3341_v2, %s3294_s28  ;;  %382 = vrot.lane.b32.xlu0 %v3328_v0, %s3294_s28 }
  0x74   :  { %v102_v5 = vpop.permute.xlu1 %101  ;;  %v98_v6 = vpop.permute.xlu0 %97 }
  0x78   :  { %v104_v9 = vpop.permute.xlu1 %103  ;;  %v100_v10 = vpop.permute.xlu0 %99 }
  0x79   :  { %v109_v23 = vsel %vm105_vm0, %v104_v9, %v98_v6  ;;  %v106_v30 = vsel %vm105_vm0, %v102_v5, %v104_v9  ;;  %v107_v31 = vsel %vm105_vm0, %v100_v10, %v102_v5  ;;  %v108_v32 = vsel %vm105_vm0, %v98_v6, %v100_v10 }
  0x7a   :  { %v131_v34 = vmul.f32 %v3424_v19, %v109_v23  ;;  %v134_v44 = vmul.f32 %v3434_v24, %v106_v30  ;;  %v132_v45 = vmul.f32 %v3441_v26, %v108_v32  ;;  %v133_v46 = vmul.f32 %v3444_v27, %v107_v31 }
  0x7b   :  { %v3528_v31 = vrot.slane %v3516_v7, %v3411_v12 }
  0x7c   :  { %v142_v13 = vpop.permute.xlu1 %141  ;;  %v140_v14 = vpop.permute.xlu0 %139  ;;  %v135_v52 = vpack.c.bf16 %v131_v34, %v131_v34  ;;  %v138_v62 = vpack.c.bf16 %v134_v44, %v134_v44  ;;  %v136_v63 = vpack.c.bf16 %v132_v45, %v132_v45  ;;  %v137_v5 = vpack.c.bf16 %v133_v46, %v133_v46 }
  0x7d   :  { %v150_v35 = vsel %vm147_vm2, %v140_v14, %v142_v13  ;;  %5166 = vst [vmem:[#allocation18_spill] sm:$0xff] %v3528_v31 }
  0x7e   :  { %v174_v48 = vmul.f32 %v3459_v33, %v150_v35  ;;  %v427_v32 = vrot.slane %v138_v62, 6  ;;  %v425_v34 = vrot.slane %v136_v63, 6  ;;  %v426_v35 = vrot.slane %v137_v5, 6 }
  0x80   :  { %v146_v21 = vpop.permute.xlu1 %145  ;;  %v144_v22 = vpop.permute.xlu0 %143  ;;  %v178_v8 = vpack.c.bf16 %v174_v48, %v174_v48 }
  0x81   :  { %v151_v53 = vsel %vm147_vm2, %v146_v21, %v140_v14  ;;  %v149_v58 = vsel %vm147_vm2, %v142_v13, %v144_v22  ;;  %v148_v6 = vsel %vm147_vm2, %v144_v22, %v146_v21  ;;  %v424_v21 = vrot.slane %v135_v52, 6 }
  0x82   :  { %v173_v14 = vmul.f32 %v3447_v28, %v151_v53  ;;  %v175_v16 = vmul.f32 %v3465_v36, %v149_v58  ;;  %v176_v22 = vmul.f32 %v3450_v29, %v148_v6 }
  0x84   :  { %v56_v37 = vpop.permute.xlu1 %55  ;;  %v54_v38 = vpop.permute.xlu0 %53  ;;  %v177_v45 = vpack.c.bf16 %v173_v14, %v173_v14  ;;  %v179_v46 = vpack.c.bf16 %v175_v16, %v175_v16 }
  0x85   :  { %v66_v41 = vsel %vm63_vm1, %v54_v38, %v56_v37 }
  0x86   :  { %v90_v54 = vmul.f32 %v3468_v39, %v66_v41 }
  0x88   :  { %v60_v55 = vpop.permute.xlu1 %59  ;;  %v58_v56 = vpop.permute.xlu0 %57  ;;  %v94_v20 = vpack.c.bf16 %v90_v54, %v90_v54 }
  0x89   :  { %v67_v59 = vsel %vm63_vm1, %v60_v55, %v54_v38  ;;  %v64_v60 = vsel %vm63_vm1, %v58_v56, %v60_v55  ;;  %v65_v61 = vsel %vm63_vm1, %v56_v37, %v58_v56  ;;  %v433_v38 = vrot.slane %v178_v8, 4 }
  0x8a   :  { %v89_v9 = vmul.f32 %v3476_v42, %v67_v59  ;;  %v91_v10 = vmul.f32 %v3479_v43, %v65_v61  ;;  %v92_v13 = vmul.f32 %v3485_v47, %v64_v60  ;;  %v476_v54 = vsel %vm470_vm4, %v94_v20, %v425_v34 }
  0x8b   :  { %v180_v55 = vpack.c.bf16 %v176_v22, %v176_v22  ;;  %v487_v5 = vsel %vm483_vm5, %v476_v54, %v433_v38  ;;  %v434_v22 = vrot.slane %v179_v46, 4  ;;  %v3549_v34 = vrot.slane %v3516_v7, %v3419_v17  ;;  %v3172_v38 = vld [vmem:[%s5082_s0 + $0x5] ss:$8 sm:$0xf] }
  0x8c   :  { %v184_v23 = vpop.permute.xlu1 %183  ;;  %v182_v25 = vpop.permute.xlu0 %181  ;;  %v93_v40 = vpack.c.bf16 %v89_v9, %v89_v9  ;;  %v95_v41 = vpack.c.bf16 %v91_v10, %v91_v10  ;;  %v96_v44 = vpack.c.bf16 %v92_v13, %v92_v13  ;;  %v3570_v54 = vrot.slane %v3516_v7, %v3421_v18 }
  0x8d   :  { %v192_v30 = vsel %vm189_vm3, %v182_v25, %v184_v23  ;;  %5167 = vst [vmem:[#allocation19_spill] sm:$0xff] %v3549_v34 }
  0x8e   :  { %v216_v37 = vmul.f32 %v3489_v49, %v192_v30  ;;  %v473_v6 = vsel %vm470_vm4, %v93_v40, %v424_v21  ;;  %v482_v8 = vsel %vm470_vm4, %v96_v44, %v427_v32  ;;  %v479_v9 = vsel %vm470_vm4, %v95_v41, %v426_v35  ;;  %5169 = vst [vmem:[#allocation21_spill] sm:$0xff] %v3570_v54 }
  0x8f   :  { %v435_v30 = vrot.slane %v180_v55, 4  ;;  %v3553_v35 = vmul.f32 %v3528_v31, %v3333_v1  ;;  %v489_v44 = vsel %vm483_vm5, %v479_v9, %v434_v22  ;;  %v3173_v55 = vld [vmem:[%s5082_s0 + $0x6] ss:$8 sm:$0xf]  ;;  %v3673_v22 = vsel %vm3647_vm12, 1065369472, %v5087_v4 }
  0x90   :  { %v188_v48 = vpop.permute.xlu1 %187  ;;  %v186_v52 = vpop.permute.xlu0 %185  ;;  %v220_v53 = vpack.c.bf16 %v216_v37, %v216_v37  ;;  %5175 = vst [vmem:[#allocation25_spill] sm:$0xff] %v3673_v22  ;;  %vm1707_vm12 = vcmask 1046528  }
  0x91   :  { %v193_v56 = vsel %vm189_vm3, %v188_v48, %v182_v25  ;;  %v190_v58 = vsel %vm189_vm3, %v186_v52, %v188_v48  ;;  %v191_v59 = vsel %vm189_vm3, %v184_v23, %v186_v52  ;;  %v432_v25 = vrot.slane %v177_v45, 4 }
  0x92   :  { %v215_v60 = vmul.f32 %v3492_v50, %v193_v56  ;;  %v217_v61 = vmul.f32 %v3495_v51, %v191_v59  ;;  %v218_v62 = vmul.f32 %v3501_v57, %v190_v58  ;;  %v441_v63 = vrot.slane %v220_v53, 2 }
  0x93   :  { %v485_v40 = vsel %vm483_vm5, %v473_v6, %v432_v25  ;;  %v491_v41 = vsel %vm483_vm5, %v482_v8, %v435_v30  ;;  %v3563_v45 = vrot.slane %v3516_v7, %v3413_v15  ;;  %v3577_v56 = vmul.f32 %v3549_v34, %v3345_v3 }
  0x94   :  { %v219_v10 = vpack.c.bf16 %v215_v60, %v215_v60  ;;  %v221_v13 = vpack.c.bf16 %v217_v61, %v217_v61  ;;  %v255_v14 = vpop.permute.xlu1 %254  ;;  %v253_v16 = vpop.permute.xlu0 %252  ;;  %v497_v20 = vsel %vm492_vm6, %v487_v5, %v441_v63  ;;  %v222_v23 = vpack.c.bf16 %v218_v62, %v218_v62 }
  0x95   :  { %558 = vmatprep.subr.bf16.mxu0 %v497_v20  ;;  %5168 = vst [vmem:[#allocation20_spill] sm:$0xff] %v3563_v45  ;;  %v3582_v58 = vrot.slane %v3172_v38, %v3411_v12  ;;  %v263_v7 = vsel %vm260_vm7, %v253_v16, %v255_v14  ;;  %v3587_v59 = vrot.slane %v3172_v38, %v3413_v15  ;;  %v3691_v6 = vrot.slane %v3673_v22, 6 }
  0x96   :  { %v440_v21 = vrot.slane %v219_v10, 2  ;;  %v443_v37 = vrot.slane %v222_v23, 2  ;;  %v442_v32 = vrot.slane %v221_v13, 2  ;;  %v3590_v60 = vrot.slane %v3172_v38, %v3419_v17 }
  0x97   :  { %v3594_v3 = vmul.f32 %v3563_v45, %v3341_v2  ;;  %v3597_v61 = vrot.slane %v3172_v38, %v3421_v18  ;;  %v3600_v5 = vrot.slane %v3173_v55, %v3411_v12  ;;  %v3606_v8 = vmul.f32 %v3328_v0, %v3570_v54 }
  0x98   :  { %v259_v46 = vpop.permute.xlu1 %258  ;;  %v257_v48 = vpop.permute.xlu0 %256  ;;  %v494_v52 = vsel %vm492_vm6, %v485_v40, %v440_v21  ;;  %v503_v1 = vsel %vm492_vm6, %v491_v41, %v443_v37  ;;  %v500_v53 = vsel %vm492_vm6, %v489_v44, %v442_v32  ;;  %v286_v20 = vmul.f32 %v3582_v58, %v263_v7 }
  0x99   :  { %559 = vmatpush1.bf16.msra.mxu0 %v494_v52  ;;  %599 = vmatprep.subr.bf16.mxu1 %v503_v1  ;;  %v264_v9 = vsel %vm260_vm7, %v259_v46, %v253_v16  ;;  %v261_v2 = vsel %vm260_vm7, %v257_v48, %v259_v46  ;;  %v262_v10 = vsel %vm260_vm7, %v255_v14, %v257_v48  ;;  %v3174_v14 = vld [vmem:[%s5082_s0 + $0x7] ss:$8 sm:$0xf] }
  0x9a   :  { %600 = vmatpush1.bf16.msra.mxu1 %v500_v53  ;;  %v3620_v0 = vrot.slane %v3173_v55, %v3413_v15  ;;  %v3623_v16 = vrot.slane %v3173_v55, %v3419_v17  ;;  %v3626_v25 = vrot.slane %v3173_v55, %v3421_v18  ;;  %v289_v30 = vmul.f32 %v3587_v59, %v264_v9 }
  0x9b   :  { %v287_v21 = vmul.f32 %v3590_v60, %v262_v10  ;;  %v288_v37 = vmul.f32 %v3597_v61, %v261_v2  ;;  %v250_v40 = vpack.c.bf16 %v3606_v8, %v3606_v8  ;;  %v290_v1 = vpack.c.bf16 %v286_v20, %v286_v20 }
  0x9c   :  { %v297_v62 = vpop.permute.xlu1 %296  ;;  %v295_v63 = vpop.permute.xlu0 %294  ;;  %5170 = vst [vmem:[#allocation22_spill] sm:$0xff] %v3620_v0  ;;  %5171 = vst [vmem:[#allocation23_spill] sm:$0xff] %v3626_v25  ;;  %v3653_v53 = vrot.slane %v3174_v14, %v3411_v12  ;;  %v3656_v55 = vrot.slane %v3174_v14, %v3413_v15  ;;  %v3659_v7 = vrot.slane %v3174_v14, %v3419_v17 }
  0x9d   :  { %v305_v23 = vsel %vm302_vm8, %v295_v63, %v297_v62  ;;  %v3668_v2 = vrot.slane %v3174_v14, %v3421_v18  ;;  %v293_v10 = vpack.c.bf16 %v289_v30, %v289_v30  ;;  %v291_v20 = vpack.c.bf16 %v287_v21, %v287_v21 }
  0x9e   :  { %v328_v41 = vmul.f32 %v3600_v5, %v305_v23  ;;  %5174 = vst [vmem:[#allocation24_spill] sm:$0xff] %v3653_v53  ;;  %v292_v23 = vpack.c.bf16 %v288_v37, %v288_v37  ;;  %v448_v30 = vrot.slane %v290_v1, 6 }
  0x9f   :  { %v449_v45 = vrot.slane %v291_v20, 6 }
  0xa0   :  { %v301_v32 = vpop.permute.xlu1 %300  ;;  %v299_v38 = vpop.permute.xlu0 %298  ;;  %v332_v13 = vpack.c.bf16 %v328_v41, %v328_v41 }
  0xa1   :  { %v306_v44 = vsel %vm302_vm8, %v301_v32, %v295_v63  ;;  %v303_v46 = vsel %vm302_vm8, %v299_v38, %v301_v32  ;;  %v304_v48 = vsel %vm302_vm8, %v297_v62, %v299_v38  ;;  %v3175_v62 = vld [vmem:[%s5082_s0 + $0x20] ss:$8 sm:$0xf] }
  0xa2   :  { %v331_v63 = vmul.f32 %v3620_v0, %v306_v44  ;;  %v329_v8 = vmul.f32 %v3623_v16, %v304_v48  ;;  %v330_v9 = vmul.f32 %v3626_v25, %v303_v46  ;;  %v3678_v48 = vrot.slane %v3175_v62, %v3411_v12 }
  0xa3   :  { %v3681_v14 = vrot.slane %v3175_v62, %v3413_v15  ;;  %v3685_v37 = vrot.slane %v3175_v62, %v3419_v17  ;;  %v3688_v46 = vrot.slane %v3175_v62, %v3421_v18  ;;  %v451_v12 = vrot.slane %v293_v10, 6 }
  0xa4   :  { %v339_v32 = vpop.permute.xlu1 %338  ;;  %v337_v38 = vpop.permute.xlu0 %336  ;;  %v335_v52 = vpack.c.bf16 %v331_v63, %v331_v63  ;;  %v333_v41 = vpack.c.bf16 %v329_v8, %v329_v8  ;;  %v334_v4 = vpack.c.bf16 %v330_v9, %v330_v9  ;;  %v450_v0 = vrot.slane %v292_v23, 6 }
  0xa5   :  { %v347_v44 = vsel %vm344_vm9, %v337_v38, %v339_v32  ;;  %v456_v34 = vrot.slane %v332_v13, 4  ;;  %v5176_v10 = vpack.c.bf16 %v3553_v35, %v3553_v35  ;;  %v5178_v35 = vpack.c.bf16 %v3594_v3, %v3594_v3 }
  0xa6   :  { %v370_v21 = vmul.f32 %v3653_v53, %v347_v44  ;;  %v459_v20 = vrot.slane %v335_v52, 4  ;;  %v457_v23 = vrot.slane %v333_v41, 4  ;;  %v513_v52 = vsel %vm470_vm4, %v250_v40, %v450_v0 }
  0xa7   :  { %v507_v13 = vsel %vm470_vm4, %v5176_v10, %v448_v30  ;;  %v516_v30 = vsel %vm470_vm4, %v5178_v35, %v451_v12 }
  0xa8   :  { %v374_v15 = vpack.c.bf16 %v370_v21, %v370_v21  ;;  %v343_v25 = vpop.permute.xlu1 %342  ;;  %v341_v1 = vpop.permute.xlu0 %340 }
  0xa9   :  { %v348_v17 = vsel %vm344_vm9, %v343_v25, %v337_v38  ;;  %v345_v18 = vsel %vm344_vm9, %v341_v1, %v343_v25  ;;  %v346_v62 = vsel %vm344_vm9, %v339_v32, %v341_v1  ;;  %v458_v38 = vrot.slane %v334_v4, 4 }
  0xaa   :  { %v373_v63 = vmul.f32 %v3656_v55, %v348_v17  ;;  %v371_v8 = vmul.f32 %v3659_v7, %v346_v62  ;;  %v372_v9 = vmul.f32 %v3668_v2, %v345_v18  ;;  %v464_v44 = vrot.slane %v374_v15, 2 }
  0xab   :  { %v5177_v1 = vpack.c.bf16 %v3577_v56, %v3577_v56  ;;  %v518_v4 = vsel %vm483_vm5, %v507_v13, %v456_v34 }
  0xac   :  { %v377_v21 = vpack.c.bf16 %v373_v63, %v373_v63  ;;  %v375_v25 = vpack.c.bf16 %v371_v8, %v371_v8  ;;  %v376_v22 = vpack.c.bf16 %v372_v9, %v372_v9  ;;  %v381_v53 = vpop.permute.xlu1 %380  ;;  %v379_v32 = vpop.permute.xlu0 %378  ;;  %v526_v8 = vsel %vm492_vm6, %v518_v4, %v464_v44  ;;  %v52_v4 = vld [vmem:[%s5083_s2] sm:$0x3] }
  0xad   :  { %v510_v17 = vsel %vm470_vm4, %v5177_v1, %v449_v45  ;;  %v389_v18 = vsel %vm386_vm13, %v379_v32, %v381_v53  ;;  %v524_v45 = vsel %vm483_vm5, %v516_v30, %v459_v20  ;;  %v522_v9 = vsel %vm483_vm5, %v513_v52, %v458_v38 }
  0xae   :  { %v467_v41 = vrot.slane %v377_v21, 2  ;;  %v465_v15 = vrot.slane %v375_v25, 2  ;;  %v466_v62 = vrot.slane %v376_v22, 2  ;;  %v412_v63 = vmul.f32 %v3678_v48, %v389_v18 }
  0xaf   :  { %v520_v56 = vsel %vm483_vm5, %v510_v17, %v457_v23  ;;  %v5179_v52 = vmov 0  }
  0xb0   :  { %v416_v3 = vpack.c.bf16 %v412_v63, %v412_v63  ;;  %v385_v10 = vpop.permute.xlu1 %384  ;;  %v383_v12 = vpop.permute.xlu0 %382  ;;  %v529_v34 = vsel %vm492_vm6, %v520_v56, %v465_v15  ;;  %v535_v0 = vsel %vm492_vm6, %v524_v45, %v467_v41  ;;  %v532_v40 = vsel %vm492_vm6, %v522_v9, %v466_v62 }
  0xb1   :  { %v390_v22 = vsel %vm386_vm13, %v385_v10, %v379_v32  ;;  %v387_v13 = vsel %vm386_vm13, %v383_v12, %v385_v10  ;;  %v388_v20 = vsel %vm386_vm13, %v381_v53, %v383_v12  ;;  %560 = vmatprep.subr.bf16.mxu0 %v529_v34  ;;  %601 = vmatprep.subr.bf16.mxu1 %v535_v0 }
  0xb2   :  { %v415_v23 = vmul.f32 %v3681_v14, %v390_v22  ;;  %v413_v38 = vmul.f32 %v3685_v37, %v388_v20  ;;  %v414_v44 = vmul.f32 %v3688_v46, %v387_v13  ;;  %561 = vmatpush1.bf16.msra.mxu0 %v526_v8  ;;  %602 = vmatpush1.bf16.msra.mxu1 %v532_v40 }
  0xb3   :  { %v539_v32 = vsel %vm470_vm4, %v416_v3, %v3691_v6 }
  0xb4   :  { %v419_v21 = vpack.c.bf16 %v415_v23, %v415_v23  ;;  %v417_v25 = vpack.c.bf16 %v413_v38, %v413_v38  ;;  %v418_v1 = vpack.c.bf16 %v414_v44, %v414_v44  ;;  %v550_v35 = vsel %vm483_vm5, %v539_v32, 0 }
  0xb6   :  { %v541_v17 = vsel %vm470_vm4, %v417_v25, %v3691_v6  ;;  %v545_v53 = vsel %vm470_vm4, %v419_v21, %v3691_v6  ;;  %v543_v18 = vsel %vm470_vm4, %v418_v1, %v3691_v6 }
  0xb7   :  { %3177 = vmatprep.subr.msk.bf16.mxu0 %vm483_vm5, %v541_v17  ;;  %3179 = vmatprep.subr.msk.bf16.mxu1 %vm483_vm5, %v545_v53  ;;  %v554_v30 = vsel %vm483_vm5, %v543_v18, 0 }
  0xb8   :  { %563 = vmatpush1.bf16.msra.mxu0 %v550_v35  ;;  %604 = vmatpush1.bf16.msra.mxu1 %v554_v30 }
  0xbb   :  { %3178 = vmatmul.mubr.msk.bf16.vlgmr.msra.gmra.mrb[0].mxu0 %vm546_vm14, %v52_v4  ;;  %3180 = vmatmul.mubr.msk.bf16.vlgmr.msra.gmra.mrb[0].mxu1 %vm546_vm14, %v52_v4 }
  0xbc   :  { %977 = vmatprep.mubr.bf16.mxu0 %v5179_v52  ;;  %1018 = vmatprep.mubr.bf16.mxu1 %v5179_v52 }
 0x18e   :  { %v592_v41 = vpop.f32.mrb[0].mxu0  ;;  %v633_v15 = vpop.f32.mrb[0].mxu1 }
 0x18f   :  { %v3754_v62 = vmax.f32 %v592_v41, 0.0  ;;  %v594_v63 = vpop.f32.mrb[1].mxu0  ;;  %v635_v56 = vpop.f32.mrb[1].mxu1  ;;  %v3758_v3 = vmax.f32 %v633_v15, 0.0 }
 0x190   :  { %v3756_v45 = vmax.f32 %v594_v63, 0.0  ;;  %v596_v8 = vpop.f32.mrb[2].mxu0  ;;  %v637_v9 = vpop.f32.mrb[2].mxu1  ;;  %v3762_v34 = vmax.f32 %v635_v56, 0.0 }
 0x191   :  { %666 = vrot.lane.b32.xlu0 %v3754_v62, %s3286_s22  ;;  %v597_v10 = vpop.f32.mrb[3].mxu0  ;;  %v638_v12 = vpop.f32.mrb[3].mxu1 }
 0x192   :  { %668 = vrot.lane.b32.xlu1 %v3756_v45, %s3286_s22 }
 0x195   :  { %670 = vrot.lane.b32.xlu0 %v3758_v3, %s3286_s22 }
 0x196   :  { %672 = vrot.lane.b32.xlu1 %v3762_v34, %s3286_s22 }
 0x199   :  { %686 = vrot.lane.b32.xlu0 %v3754_v62, %s3287_s1 }
 0x19a   :  { %688 = vrot.lane.b32.xlu1 %v3756_v45, %s3287_s1 }
 0x19d   :  { %690 = vrot.lane.b32.xlu0 %v3758_v3, %s3287_s1 }
 0x19e   :  { %692 = vrot.lane.b32.xlu1 %v3762_v34, %s3287_s1 }
 0x1a1   :  { %646 = vrot.lane.b32.xlu0 %v3754_v62, %s3288_s23 }
 0x1a2   :  { %648 = vrot.lane.b32.xlu1 %v3756_v45, %s3288_s23 }
 0x1a5   :  { %650 = vrot.lane.b32.xlu0 %v3758_v3, %s3288_s23 }
 0x1a6   :  { %652 = vrot.lane.b32.xlu1 %v3762_v34, %s3288_s23 }
 0x1a9   :  { %706 = vrot.lane.b32.xlu0 %v3754_v62, %s3289_s24 }
 0x1aa   :  { %708 = vrot.lane.b32.xlu1 %v3756_v45, %s3289_s24 }
 0x1ad   :  { %710 = vrot.lane.b32.xlu0 %v3758_v3, %s3289_s24 }
 0x1ae   :  { %712 = vrot.lane.b32.xlu1 %v3762_v34, %s3289_s24 }
 0x1b1   :  { %734 = vrot.lane.b32.xlu0 %v3754_v62, %s3290_s25 }
 0x1b2   :  { %736 = vrot.lane.b32.xlu1 %v3756_v45, %s3290_s25 }
 0x1b5   :  { %738 = vrot.lane.b32.xlu0 %v3758_v3, %s3290_s25 }
 0x1b6   :  { %740 = vrot.lane.b32.xlu1 %v3762_v34, %s3290_s25 }
 0x1b9   :  { %754 = vrot.lane.b32.xlu0 %v3754_v62, %s3291_s26 }
 0x1ba   :  { %756 = vrot.lane.b32.xlu1 %v3756_v45, %s3291_s26 }
 0x1bd   :  { %758 = vrot.lane.b32.xlu0 %v3758_v3, %s3291_s26 }
 0x1be   :  { %760 = vrot.lane.b32.xlu1 %v3762_v34, %s3291_s26 }
 0x1c1   :  { %774 = vrot.lane.b32.xlu0 %v3754_v62, %s3293_s27 }
 0x1c2   :  { %776 = vrot.lane.b32.xlu1 %v3756_v45, %s3293_s27 }
 0x1c5   :  { %778 = vrot.lane.b32.xlu0 %v3758_v3, %s3293_s27 }
 0x1c6   :  { %780 = vrot.lane.b32.xlu1 %v3762_v34, %s3293_s27 }
 0x1c9   :  { %794 = vrot.lane.b32.xlu0 %v3754_v62, %s3294_s28 }
 0x1ca   :  { %796 = vrot.lane.b32.xlu1 %v3756_v45, %s3294_s28 }
 0x1cd   :  { %798 = vrot.lane.b32.xlu0 %v3758_v3, %s3294_s28 }
 0x1ce   :  { %800 = vrot.lane.b32.xlu1 %v3762_v34, %s3294_s28 }
 0x203   :  { %v667_v0 = vpop.permute.xlu0 %666 }
 0x204   :  { %v669_v40 = vpop.permute.xlu1 %668 }
 0x205   :  { %v676_v21 = vsel %vm105_vm0, %v667_v0, %v669_v40 }
 0x206   :  { %v679_v18 = vmul.f32 %v676_v21, %v3441_v26 }
 0x207   :  { %v671_v22 = vpop.permute.xlu0 %670 }
 0x208   :  { %v673_v13 = vpop.permute.xlu1 %672  ;;  %v675_v30 = vsel %vm105_vm0, %v669_v40, %v671_v22  ;;  %v683_v12 = vpack.c.bf16 %v679_v18, %v679_v18 }
 0x209   :  { %v674_v25 = vsel %vm105_vm0, %v671_v22, %v673_v13  ;;  %v677_v1 = vsel %vm105_vm0, %v673_v13, %v667_v0  ;;  %v680_v0 = vmul.f32 %v675_v30, %v3444_v27 }
 0x20a   :  { %v678_v4 = vmul.f32 %v677_v1, %v3424_v19  ;;  %v681_v41 = vmul.f32 %v674_v25, %v3434_v24 }
 0x20b   :  { %v687_v20 = vpop.permute.xlu0 %686 }
 0x20c   :  { %v689_v23 = vpop.permute.xlu1 %688  ;;  %v682_v13 = vpack.c.bf16 %v678_v4, %v678_v4  ;;  %v685_v21 = vpack.c.bf16 %v681_v41, %v681_v41  ;;  %v819_v4 = vrot.slane %v683_v12, 6  ;;  %v684_v41 = vpack.c.bf16 %v680_v0, %v680_v0 }
 0x20d   :  { %v696_v32 = vsel %vm147_vm2, %v687_v20, %v689_v23 }
 0x20e   :  { %v699_v15 = vmul.f32 %v696_v32, %v3459_v33 }
 0x20f   :  { %v691_v38 = vpop.permute.xlu0 %690 }
 0x210   :  { %v693_v44 = vpop.permute.xlu1 %692  ;;  %v703_v25 = vpack.c.bf16 %v699_v15, %v699_v15 }
 0x211   :  { %v694_v56 = vsel %vm147_vm2, %v691_v38, %v693_v44  ;;  %v697_v8 = vsel %vm147_vm2, %v693_v44, %v687_v20  ;;  %v695_v20 = vsel %vm147_vm2, %v689_v23, %v691_v38  ;;  %v821_v23 = vrot.slane %v685_v21, 6 }
 0x212   :  { %v698_v44 = vmul.f32 %v697_v8, %v3447_v28  ;;  %v701_v32 = vmul.f32 %v694_v56, %v3450_v29  ;;  %v700_v38 = vmul.f32 %v695_v20, %v3465_v36  ;;  %v827_v8 = vrot.slane %v703_v25, 4 }
 0x213   :  { %v647_v17 = vpop.permute.xlu0 %646 }
 0x214   :  { %v649_v53 = vpop.permute.xlu1 %648  ;;  %v704_v20 = vpack.c.bf16 %v700_v38, %v700_v38 }
 0x215   :  { %v656_v35 = vsel %vm63_vm1, %v647_v17, %v649_v53 }
 0x216   :  { %v659_v9 = vmul.f32 %v656_v35, %v3468_v39 }
 0x217   :  { %v651_v63 = vpop.permute.xlu0 %650 }
 0x218   :  { %v653_v10 = vpop.permute.xlu1 %652  ;;  %v655_v1 = vsel %vm63_vm1, %v649_v53, %v651_v63  ;;  %v663_v30 = vpack.c.bf16 %v659_v9, %v659_v9 }
 0x219   :  { %v654_v40 = vsel %vm63_vm1, %v651_v63, %v653_v10  ;;  %v657_v22 = vsel %vm63_vm1, %v653_v10, %v647_v17  ;;  %v660_v15 = vmul.f32 %v655_v1, %v3479_v43  ;;  %v818_v63 = vrot.slane %v682_v13, 6 }
 0x21a   :  { %v658_v18 = vmul.f32 %v657_v22, %v3476_v42  ;;  %v661_v27 = vmul.f32 %v654_v40, %v3485_v47  ;;  %v702_v10 = vpack.c.bf16 %v698_v44, %v698_v44  ;;  %v705_v22 = vpack.c.bf16 %v701_v32, %v701_v32 }
 0x21b   :  { %v707_v35 = vpop.permute.xlu0 %706  ;;  %v867_v1 = vsel %vm470_vm4, %v663_v30, %v819_v4  ;;  %v664_v43 = vpack.c.bf16 %v660_v15, %v660_v15 }
 0x21c   :  { %v709_v17 = vpop.permute.xlu1 %708  ;;  %v662_v9 = vpack.c.bf16 %v658_v18, %v658_v18  ;;  %v665_v40 = vpack.c.bf16 %v661_v27, %v661_v27  ;;  %v820_v18 = vrot.slane %v684_v41, 6  ;;  %v877_v30 = vsel %vm483_vm5, %v867_v1, %v827_v8 }
 0x21d   :  { %v716_v53 = vsel %vm189_vm3, %v707_v35, %v709_v17  ;;  %v826_v38 = vrot.slane %v702_v10, 4  ;;  %v828_v41 = vrot.slane %v704_v20, 4 }
 0x21e   :  { %v719_v56 = vmul.f32 %v716_v53, %v3489_v49  ;;  %v864_v4 = vsel %vm470_vm4, %v662_v9, %v818_v63 }
 0x21f   :  { %v711_v42 = vpop.permute.xlu0 %710  ;;  %v875_v8 = vsel %vm483_vm5, %v864_v4, %v826_v38 }
 0x220   :  { %v723_v47 = vpack.c.bf16 %v719_v56, %v719_v56  ;;  %v715_v12 = vsel %vm189_vm3, %v709_v17, %v711_v42  ;;  %v713_v0 = vpop.permute.xlu1 %712 }
 0x221   :  { %v720_v13 = vmul.f32 %v715_v12, %v3495_v51  ;;  %v714_v21 = vsel %vm189_vm3, %v711_v42, %v713_v0  ;;  %v717_v25 = vsel %vm189_vm3, %v713_v0, %v707_v35  ;;  %v873_v35 = vsel %vm470_vm4, %v665_v40, %v821_v23 }
 0x222   :  { %v835_v44 = vrot.slane %v723_v47, 2  ;;  %v718_v27 = vmul.f32 %v717_v25, %v3492_v50  ;;  %v721_v32 = vmul.f32 %v714_v21, %v3501_v57  ;;  %v829_v47 = vrot.slane %v705_v22, 4 }
 0x223   :  { %v724_v17 = vpack.c.bf16 %v720_v13, %v720_v13  ;;  %v735_v53 = vpop.permute.xlu0 %734  ;;  %v870_v21 = vsel %vm470_vm4, %v664_v43, %v820_v18 }
 0x224   :  { %v722_v15 = vpack.c.bf16 %v718_v27, %v718_v27  ;;  %v725_v56 = vpack.c.bf16 %v721_v32, %v721_v32  ;;  %v737_v12 = vpop.permute.xlu1 %736  ;;  %v886_v42 = vsel %vm492_vm6, %v877_v30, %v835_v44  ;;  %v881_v63 = vsel %vm483_vm5, %v873_v35, %v829_v47 }
 0x225   :  { %v836_v0 = vrot.slane %v724_v17, 2  ;;  %945 = vmatprep.subr.bf16.mxu0 %v886_v42  ;;  %v879_v23 = vsel %vm483_vm5, %v870_v21, %v828_v41  ;;  %v744_v43 = vsel %vm260_vm7, %v735_v53, %v737_v12  ;;  %v728_v47 = vmul.f32 %v3758_v3, %v3570_v54  ;;  %v5180_v41 = vld [vmem:[#allocation19_spill] sm:$0xff] }
 0x226   :  { %v834_v13 = vrot.slane %v722_v15, 2  ;;  %v837_v25 = vrot.slane %v725_v56, 2  ;;  %v746_v18 = vmul.f32 %v744_v43, %v3582_v58 }
 0x227   :  { %v739_v57 = vpop.permute.xlu0 %738  ;;  %v889_v10 = vsel %vm492_vm6, %v879_v23, %v836_v0 }
 0x228   :  { %v741_v9 = vpop.permute.xlu1 %740  ;;  %v883_v1 = vsel %vm492_vm6, %v875_v8, %v834_v13  ;;  %v892_v44 = vsel %vm492_vm6, %v881_v63, %v837_v25  ;;  %v743_v40 = vsel %vm260_vm7, %v737_v12, %v739_v57  ;;  %v750_v0 = vpack.c.bf16 %v746_v18, %v746_v18  ;;  %v5181_v8 = vld [vmem:[#allocation23_spill] sm:$0xff]  ;;  %v5182_v63 = vld [vmem:[#allocation22_spill] sm:$0xff]  ;;  %v5184_v18 = vld [vmem:[#allocation24_spill] sm:$0xff] }
 0x229   :  { %946 = vmatpush1.bf16.msra.mxu0 %v883_v1  ;;  %986 = vmatprep.subr.bf16.mxu1 %v892_v44  ;;  %v742_v27 = vsel %vm260_vm7, %v739_v57, %v741_v9  ;;  %v745_v32 = vsel %vm260_vm7, %v741_v9, %v735_v53  ;;  %v747_v30 = vmul.f32 %v743_v40, %v3590_v60  ;;  %v5183_v44 = vld [vmem:[#allocation20_spill] sm:$0xff] }
 0x22a   :  { %987 = vmatpush1.bf16.msra.mxu1 %v889_v10  ;;  %v748_v15 = vmul.f32 %v742_v27, %v3597_v61  ;;  %v749_v56 = vmul.f32 %v745_v32, %v3587_v59  ;;  %v726_v57 = vmul.f32 %v3754_v62, %v3528_v31  ;;  %v727_v13 = vmul.f32 %v3756_v45, %v5180_v41 }
 0x22b   :  { %v755_v22 = vpop.permute.xlu0 %754  ;;  %v751_v25 = vpack.c.bf16 %v747_v30, %v747_v30  ;;  %v729_v23 = vmul.f32 %v3762_v34, %v5183_v44  ;;  %v732_v27 = vpack.c.bf16 %v728_v47, %v728_v47  ;;  %v842_v32 = vrot.slane %v750_v0, 6 }
 0x22c   :  { %v757_v20 = vpop.permute.xlu1 %756  ;;  %v752_v10 = vpack.c.bf16 %v748_v15, %v748_v15  ;;  %v753_v43 = vpack.c.bf16 %v749_v56, %v749_v56  ;;  %v731_v30 = vpack.c.bf16 %v727_v13, %v727_v13 }
 0x22d   :  { %v764_v17 = vsel %vm302_vm8, %v755_v22, %v757_v20 }
 0x22e   :  { %v766_v53 = vmul.f32 %v764_v17, %v3600_v5  ;;  %v844_v34 = vrot.slane %v752_v10, 6  ;;  %v845_v15 = vrot.slane %v753_v43, 6 }
 0x22f   :  { %v759_v4 = vpop.permute.xlu0 %758 }
 0x230   :  { %v763_v12 = vsel %vm302_vm8, %v757_v20, %v759_v4  ;;  %v761_v42 = vpop.permute.xlu1 %760  ;;  %v770_v40 = vpack.c.bf16 %v766_v53, %v766_v53  ;;  %v730_v20 = vpack.c.bf16 %v726_v57, %v726_v57 }
 0x231   :  { %v762_v35 = vsel %vm302_vm8, %v759_v4, %v761_v42  ;;  %v765_v38 = vsel %vm302_vm8, %v761_v42, %v755_v22  ;;  %v767_v21 = vmul.f32 %v763_v12, %v3623_v16  ;;  %v843_v4 = vrot.slane %v751_v25, 6 }
 0x232   :  { %v768_v62 = vmul.f32 %v762_v35, %v5181_v8  ;;  %v769_v9 = vmul.f32 %v765_v38, %v5182_v63  ;;  %v733_v38 = vpack.c.bf16 %v729_v23, %v729_v23  ;;  %v850_v63 = vrot.slane %v770_v40, 4 }
 0x233   :  { %v775_v1 = vpop.permute.xlu0 %774  ;;  %v771_v45 = vpack.c.bf16 %v767_v21, %v767_v21 }
 0x234   :  { %v777_v22 = vpop.permute.xlu1 %776  ;;  %v772_v12 = vpack.c.bf16 %v768_v62, %v768_v62  ;;  %v773_v42 = vpack.c.bf16 %v769_v9, %v769_v9  ;;  %v896_v62 = vsel %vm470_vm4, %v730_v20, %v842_v32  ;;  %v902_v20 = vsel %vm470_vm4, %v732_v27, %v844_v34 }
 0x235   :  { %v784_v3 = vsel %vm344_vm9, %v775_v1, %v777_v22  ;;  %v851_v21 = vrot.slane %v771_v45, 4  ;;  %v907_v45 = vsel %vm483_vm5, %v896_v62, %v850_v63 }
 0x236   :  { %v786_v17 = vmul.f32 %v784_v3, %v5184_v18  ;;  %v852_v9 = vrot.slane %v772_v12, 4  ;;  %v853_v23 = vrot.slane %v773_v42, 4 }
 0x237   :  { %v779_v35 = vpop.permute.xlu0 %778 }
 0x238   :  { %v790_v56 = vpack.c.bf16 %v786_v17, %v786_v17  ;;  %v783_v53 = vsel %vm344_vm9, %v777_v22, %v779_v35  ;;  %v781_v44 = vpop.permute.xlu1 %780 }
 0x239   :  { %v787_v57 = vmul.f32 %v783_v53, %v3659_v7  ;;  %v782_v47 = vsel %vm344_vm9, %v779_v35, %v781_v44  ;;  %v785_v0 = vsel %vm344_vm9, %v781_v44, %v775_v1  ;;  %v899_v35 = vsel %vm470_vm4, %v731_v30, %v843_v4 }
 0x23a   :  { %v788_v13 = vmul.f32 %v782_v47, %v3668_v2  ;;  %v789_v25 = vmul.f32 %v785_v0, %v3656_v55  ;;  %v858_v10 = vrot.slane %v790_v56, 2  ;;  %v905_v53 = vsel %vm470_vm4, %v733_v38, %v845_v15 }
 0x23b   :  { %v791_v43 = vpack.c.bf16 %v787_v57, %v787_v57  ;;  %v795_v22 = vpop.permute.xlu0 %794  ;;  %v909_v56 = vsel %vm483_vm5, %v899_v35, %v851_v21  ;;  %v913_v4 = vsel %vm483_vm5, %v905_v53, %v853_v23  ;;  %v911_v38 = vsel %vm483_vm5, %v902_v20, %v852_v9 }
 0x23c   :  { %v792_v40 = vpack.c.bf16 %v788_v13, %v788_v13  ;;  %v793_v3 = vpack.c.bf16 %v789_v25, %v789_v25  ;;  %v797_v17 = vpop.permute.xlu1 %796  ;;  %v915_v30 = vsel %vm492_vm6, %v907_v45, %v858_v10 }
 0x23d   :  { %v859_v1 = vrot.slane %v791_v43, 2  ;;  %v804_v44 = vsel %vm386_vm13, %v795_v22, %v797_v17 }
 0x23e   :  { %v860_v32 = vrot.slane %v792_v40, 2  ;;  %v861_v12 = vrot.slane %v793_v3, 2  ;;  %v806_v42 = vmul.f32 %v804_v44, %v3678_v48 }
 0x23f   :  { %v799_v57 = vpop.permute.xlu0 %798  ;;  %v918_v47 = vsel %vm492_vm6, %v909_v56, %v859_v1  ;;  %v3181_v1 = vld [vmem:[%s5083_s2 + $0x2] sm:$0x3] }
 0x240   :  { %v810_v15 = vpack.c.bf16 %v806_v42, %v806_v42  ;;  %v803_v63 = vsel %vm386_vm13, %v797_v17, %v799_v57  ;;  %v801_v27 = vpop.permute.xlu1 %800  ;;  %947 = vmatprep.subr.bf16.mxu0 %v918_v47  ;;  %v924_v34 = vsel %vm492_vm6, %v913_v4, %v861_v12  ;;  %v921_v0 = vsel %vm492_vm6, %v911_v38, %v860_v32 }
 0x241   :  { %v807_v21 = vmul.f32 %v803_v63, %v3685_v37  ;;  %v802_v13 = vsel %vm386_vm13, %v799_v57, %v801_v27  ;;  %v805_v25 = vsel %vm386_vm13, %v801_v27, %v795_v22  ;;  %948 = vmatpush1.bf16.msra.mxu0 %v915_v30  ;;  %988 = vmatprep.subr.bf16.mxu1 %v924_v34 }
 0x242   :  { %v808_v62 = vmul.f32 %v802_v13, %v3688_v46  ;;  %v809_v9 = vmul.f32 %v805_v25, %v3681_v14  ;;  %989 = vmatpush1.bf16.msra.mxu1 %v921_v0  ;;  %v927_v10 = vsel %vm470_vm4, %v810_v15, %v3691_v6 }
 0x243   :  { %v811_v23 = vpack.c.bf16 %v807_v21, %v807_v21  ;;  %v937_v22 = vsel %vm483_vm5, %v927_v10, 0 }
 0x244   :  { %v812_v43 = vpack.c.bf16 %v808_v62, %v808_v62  ;;  %v813_v40 = vpack.c.bf16 %v809_v9, %v809_v9 }
 0x245   :  { %v929_v3 = vsel %vm470_vm4, %v811_v23, %v3691_v6 }
 0x246   :  { %3182 = vmatprep.subr.msk.bf16.mxu0 %vm483_vm5, %v929_v3  ;;  %v933_v17 = vsel %vm470_vm4, %v813_v40, %v3691_v6  ;;  %v931_v35 = vsel %vm470_vm4, %v812_v43, %v3691_v6 }
 0x247   :  { %950 = vmatpush1.bf16.msra.mxu0 %v937_v22  ;;  %3184 = vmatprep.subr.msk.bf16.mxu1 %vm483_vm5, %v933_v17  ;;  %v941_v53 = vsel %vm483_vm5, %v931_v35, 0 }
 0x248   :  { %991 = vmatpush1.bf16.msra.mxu1 %v941_v53 }
 0x24a   :  { %3183 = vmatmul.mubr.msk.bf16.vlgmr.msra.gmra.mrb[4].mxu0 %vm546_vm14, %v3181_v1 }
 0x24b   :  { %3185 = vmatmul.mubr.msk.bf16.vlgmr.msra.gmra.mrb[4].mxu1 %vm546_vm14, %v3181_v1  ;;  %1364 = vmatprep.mubr.bf16.mxu0 %v5179_v52 }
 0x24c   :  { %1405 = vmatprep.mubr.bf16.mxu1 %v5179_v52 }
 0x31d   :  { %v979_v44 = vpop.f32.mrb[4].mxu0 }
 0x31e   :  { %v3973_v45 = vmax.f32 %v979_v44, 0.0  ;;  %v981_v20 = vpop.f32.mrb[5].mxu0  ;;  %v1020_v32 = vpop.f32.mrb[4].mxu1 }
 0x31f   :  { %v3975_v12 = vmax.f32 %v981_v20, 0.0  ;;  %v983_v42 = vpop.f32.mrb[6].mxu0  ;;  %v1022_v56 = vpop.f32.mrb[5].mxu1  ;;  %v3977_v57 = vmax.f32 %v1020_v32, 0.0 }
 0x320   :  { %v1024_v47 = vpop.f32.mrb[6].mxu1  ;;  %1053 = vrot.lane.b32.xlu0 %v3973_v45, %s3286_s22  ;;  %v984_v30 = vpop.f32.mrb[7].mxu0  ;;  %v3981_v4 = vmax.f32 %v1022_v56, 0.0 }
 0x321   :  { %v1025_v38 = vpop.f32.mrb[7].mxu1  ;;  %1055 = vrot.lane.b32.xlu1 %v3975_v12, %s3286_s22  ;;  %v5185_v30 = vld [vmem:[#allocation5_spill] sm:$0xff] }
 0x324   :  { %1057 = vrot.lane.b32.xlu0 %v3977_v57, %s3286_s22 }
 0x325   :  { %1059 = vrot.lane.b32.xlu1 %v3981_v4, %s3286_s22 }
 0x328   :  { %1073 = vrot.lane.b32.xlu0 %v3973_v45, %s3287_s1 }
 0x329   :  { %1075 = vrot.lane.b32.xlu1 %v3975_v12, %s3287_s1 }
 0x32c   :  { %1077 = vrot.lane.b32.xlu0 %v3977_v57, %s3287_s1 }
 0x32d   :  { %1079 = vrot.lane.b32.xlu1 %v3981_v4, %s3287_s1 }
 0x330   :  { %1033 = vrot.lane.b32.xlu0 %v3973_v45, %s3288_s23 }
 0x331   :  { %1035 = vrot.lane.b32.xlu1 %v3975_v12, %s3288_s23 }
 0x334   :  { %1037 = vrot.lane.b32.xlu0 %v3977_v57, %s3288_s23 }
 0x335   :  { %1039 = vrot.lane.b32.xlu1 %v3981_v4, %s3288_s23 }
 0x338   :  { %1093 = vrot.lane.b32.xlu0 %v3973_v45, %s3289_s24 }
 0x339   :  { %1095 = vrot.lane.b32.xlu1 %v3975_v12, %s3289_s24 }
 0x33c   :  { %1097 = vrot.lane.b32.xlu0 %v3977_v57, %s3289_s24 }
 0x33d   :  { %1099 = vrot.lane.b32.xlu1 %v3981_v4, %s3289_s24 }
 0x340   :  { %1121 = vrot.lane.b32.xlu0 %v3973_v45, %s3290_s25 }
 0x341   :  { %1123 = vrot.lane.b32.xlu1 %v3975_v12, %s3290_s25 }
 0x344   :  { %1125 = vrot.lane.b32.xlu0 %v3977_v57, %s3290_s25 }
 0x345   :  { %1127 = vrot.lane.b32.xlu1 %v3981_v4, %s3290_s25 }
 0x348   :  { %1141 = vrot.lane.b32.xlu0 %v3973_v45, %s3291_s26 }
 0x349   :  { %1143 = vrot.lane.b32.xlu1 %v3975_v12, %s3291_s26 }
 0x34c   :  { %1145 = vrot.lane.b32.xlu0 %v3977_v57, %s3291_s26 }
 0x34d   :  { %1147 = vrot.lane.b32.xlu1 %v3981_v4, %s3291_s26 }
 0x350   :  { %1161 = vrot.lane.b32.xlu0 %v3973_v45, %s3293_s27 }
 0x351   :  { %1163 = vrot.lane.b32.xlu1 %v3975_v12, %s3293_s27 }
 0x354   :  { %1165 = vrot.lane.b32.xlu0 %v3977_v57, %s3293_s27 }
 0x355   :  { %1167 = vrot.lane.b32.xlu1 %v3981_v4, %s3293_s27 }
 0x358   :  { %1181 = vrot.lane.b32.xlu0 %v3973_v45, %s3294_s28 }
 0x359   :  { %1183 = vrot.lane.b32.xlu1 %v3975_v12, %s3294_s28 }
 0x35c   :  { %1185 = vrot.lane.b32.xlu0 %v3977_v57, %s3294_s28 }
 0x35d   :  { %1187 = vrot.lane.b32.xlu1 %v3981_v4, %s3294_s28 }
 0x392   :  { %v1054_v15 = vpop.permute.xlu0 %1053 }
 0x393   :  { %v1056_v63 = vpop.permute.xlu1 %1055 }
 0x394   :  { %v1063_v62 = vsel %vm105_vm0, %v1054_v15, %v1056_v63 }
 0x395   :  { %v1066_v3 = vmul.f32 %v1063_v62, %v3441_v26 }
 0x396   :  { %v1058_v27 = vpop.permute.xlu0 %1057 }
 0x397   :  { %v1060_v34 = vpop.permute.xlu1 %1059  ;;  %v1062_v17 = vsel %vm105_vm0, %v1056_v63, %v1058_v27  ;;  %v1070_v47 = vpack.c.bf16 %v1066_v3, %v1066_v3 }
 0x398   :  { %v1061_v9 = vsel %vm105_vm0, %v1058_v27, %v1060_v34  ;;  %v1064_v23 = vsel %vm105_vm0, %v1060_v34, %v1054_v15  ;;  %v1067_v38 = vmul.f32 %v1062_v17, %v5185_v30 }
 0x399   :  { %v1065_v35 = vmul.f32 %v1064_v23, %v3424_v19  ;;  %v1068_v53 = vmul.f32 %v1061_v9, %v3434_v24 }
 0x39a   :  { %v1074_v0 = vpop.permute.xlu0 %1073 }
 0x39b   :  { %v1076_v21 = vpop.permute.xlu1 %1075  ;;  %v1069_v27 = vpack.c.bf16 %v1065_v35, %v1065_v35  ;;  %v1072_v34 = vpack.c.bf16 %v1068_v53, %v1068_v53  ;;  %v1206_v35 = vrot.slane %v1070_v47, 6  ;;  %v1071_v53 = vpack.c.bf16 %v1067_v38, %v1067_v38 }
 0x39c   :  { %v1083_v10 = vsel %vm147_vm2, %v1074_v0, %v1076_v21 }
 0x39d   :  { %v1086_v1 = vmul.f32 %v1083_v10, %v3459_v33  ;;  %v5186_v10 = vld [vmem:[#allocation11_spill] sm:$0xff] }
 0x39e   :  { %v1078_v13 = vpop.permute.xlu0 %1077 }
 0x39f   :  { %v1080_v25 = vpop.permute.xlu1 %1079  ;;  %v1090_v62 = vpack.c.bf16 %v1086_v1, %v1086_v1  ;;  %v5188_v1 = vld [vmem:[#allocation12_spill] sm:$0xff] }
 0x3a0   :  { %v1081_v20 = vsel %vm147_vm2, %v1078_v13, %v1080_v25  ;;  %v1084_v32 = vsel %vm147_vm2, %v1080_v25, %v1074_v0  ;;  %v1082_v0 = vsel %vm147_vm2, %v1076_v21, %v1078_v13  ;;  %v1208_v21 = vrot.slane %v1072_v34, 6 }
 0x3a1   :  { %v1085_v25 = vmul.f32 %v1084_v32, %v3447_v28  ;;  %v1088_v23 = vmul.f32 %v1081_v20, %v3450_v29  ;;  %v1087_v13 = vmul.f32 %v1082_v0, %v3465_v36  ;;  %v1214_v32 = vrot.slane %v1090_v62, 4 }
 0x3a2   :  { %v1034_v43 = vpop.permute.xlu0 %1033 }
 0x3a3   :  { %v1036_v40 = vpop.permute.xlu1 %1035  ;;  %v1091_v0 = vpack.c.bf16 %v1087_v13, %v1087_v13 }
 0x3a4   :  { %v1043_v22 = vsel %vm63_vm1, %v1034_v43, %v1036_v40 }
 0x3a5   :  { %v1046_v42 = vmul.f32 %v1043_v22, %v3468_v39  ;;  %v5187_v39 = vld [vmem:[#allocation13_spill] sm:$0xff] }
 0x3a6   :  { %v1038_v44 = vpop.permute.xlu0 %1037 }
 0x3a7   :  { %v1040_v56 = vpop.permute.xlu1 %1039  ;;  %v1042_v9 = vsel %vm63_vm1, %v1036_v40, %v1038_v44  ;;  %v1050_v17 = vpack.c.bf16 %v1046_v42, %v1046_v42 }
 0x3a8   :  { %v1041_v15 = vsel %vm63_vm1, %v1038_v44, %v1040_v56  ;;  %v1044_v63 = vsel %vm63_vm1, %v1040_v56, %v1034_v43  ;;  %v1047_v56 = vmul.f32 %v1042_v9, %v5188_v1  ;;  %v1205_v44 = vrot.slane %v1069_v27, 6 }
 0x3a9   :  { %v1045_v3 = vmul.f32 %v1044_v63, %v5186_v10  ;;  %v1048_v33 = vmul.f32 %v1041_v15, %v5187_v39  ;;  %v1089_v63 = vpack.c.bf16 %v1085_v25, %v1085_v25  ;;  %v1092_v10 = vpack.c.bf16 %v1088_v23, %v1088_v23  ;;  %v5189_v23 = vld [vmem:[#allocation17_spill] sm:$0xff] }
 0x3aa   :  { %v1094_v22 = vpop.permute.xlu0 %1093  ;;  %v1254_v9 = vsel %vm470_vm4, %v1050_v17, %v1206_v35  ;;  %v1051_v1 = vpack.c.bf16 %v1047_v56, %v1047_v56 }
 0x3ab   :  { %v1096_v43 = vpop.permute.xlu1 %1095  ;;  %v1049_v42 = vpack.c.bf16 %v1045_v3, %v1045_v3  ;;  %v1052_v15 = vpack.c.bf16 %v1048_v33, %v1048_v33  ;;  %v1264_v17 = vsel %vm483_vm5, %v1254_v9, %v1214_v32  ;;  %v1213_v13 = vrot.slane %v1089_v63, 4 }
 0x3ac   :  { %v1103_v40 = vsel %vm189_vm3, %v1094_v22, %v1096_v43 }
 0x3ad   :  { %v1106_v20 = vmul.f32 %v1103_v40, %v3489_v49  ;;  %v1207_v40 = vrot.slane %v1071_v53, 6  ;;  %v1251_v35 = vsel %vm470_vm4, %v1049_v42, %v1205_v44  ;;  %v1215_v53 = vrot.slane %v1091_v0, 4 }
 0x3ae   :  { %v1098_v29 = vpop.permute.xlu0 %1097  ;;  %v1262_v32 = vsel %vm483_vm5, %v1251_v35, %v1213_v13 }
 0x3af   :  { %v1110_v39 = vpack.c.bf16 %v1106_v20, %v1106_v20  ;;  %v1102_v47 = vsel %vm189_vm3, %v1096_v43, %v1098_v29  ;;  %v1100_v38 = vpop.permute.xlu1 %1099 }
 0x3b0   :  { %v1107_v27 = vmul.f32 %v1102_v47, %v3495_v51  ;;  %v1101_v34 = vsel %vm189_vm3, %v1098_v29, %v1100_v38  ;;  %v1104_v62 = vsel %vm189_vm3, %v1100_v38, %v1094_v22  ;;  %v1260_v22 = vsel %vm470_vm4, %v1052_v15, %v1208_v21 }
 0x3b1   :  { %v1222_v25 = vrot.slane %v1110_v39, 2  ;;  %v1105_v33 = vmul.f32 %v1104_v62, %v3492_v50  ;;  %v1108_v3 = vmul.f32 %v1101_v34, %v5189_v23  ;;  %v1216_v39 = vrot.slane %v1092_v10, 4 }
 0x3b2   :  { %v1111_v43 = vpack.c.bf16 %v1107_v27, %v1107_v27  ;;  %v1122_v20 = vpop.permute.xlu0 %1121  ;;  %v1257_v34 = vsel %vm470_vm4, %v1051_v1, %v1207_v40 }
 0x3b3   :  { %v1109_v56 = vpack.c.bf16 %v1105_v33, %v1105_v33  ;;  %v1112_v47 = vpack.c.bf16 %v1108_v3, %v1108_v3  ;;  %v1124_v51 = vpop.permute.xlu1 %1123  ;;  %v1273_v29 = vsel %vm492_vm6, %v1264_v17, %v1222_v25  ;;  %v1268_v44 = vsel %vm483_vm5, %v1260_v22, %v1216_v39 }
 0x3b4   :  { %v1223_v38 = vrot.slane %v1111_v43, 2  ;;  %1332 = vmatprep.subr.bf16.mxu0 %v1273_v29  ;;  %v1266_v21 = vsel %vm483_vm5, %v1257_v34, %v1215_v53  ;;  %v1131_v1 = vsel %vm260_vm7, %v1122_v20, %v1124_v51  ;;  %v1114_v39 = vmul.f32 %v3975_v12, %v5180_v41 }
 0x3b5   :  { %v1221_v27 = vrot.slane %v1109_v56, 2  ;;  %v1224_v62 = vrot.slane %v1112_v47, 2  ;;  %v1133_v40 = vmul.f32 %v1131_v1, %v3582_v58  ;;  %v1115_v53 = vmul.f32 %v3977_v57, %v3570_v54 }
 0x3b6   :  { %v1126_v23 = vpop.permute.xlu0 %1125  ;;  %v1276_v10 = vsel %vm492_vm6, %v1266_v21, %v1223_v38 }
 0x3b7   :  { %v1128_v42 = vpop.permute.xlu1 %1127  ;;  %v1270_v9 = vsel %vm492_vm6, %v1262_v32, %v1221_v27  ;;  %v1279_v25 = vsel %vm492_vm6, %v1268_v44, %v1224_v62  ;;  %v1130_v15 = vsel %vm260_vm7, %v1124_v51, %v1126_v23  ;;  %v1137_v38 = vpack.c.bf16 %v1133_v40, %v1133_v40  ;;  %v5190_v62 = vld [vmem:[#allocation22_spill] sm:$0xff] }
 0x3b8   :  { %1333 = vmatpush1.bf16.msra.mxu0 %v1270_v9  ;;  %1373 = vmatprep.subr.bf16.mxu1 %v1279_v25  ;;  %v1129_v33 = vsel %vm260_vm7, %v1126_v23, %v1128_v42  ;;  %v1132_v3 = vsel %vm260_vm7, %v1128_v42, %v1122_v20  ;;  %v1134_v17 = vmul.f32 %v1130_v15, %v3590_v60  ;;  %v5191_v42 = vld [vmem:[#allocation20_spill] sm:$0xff] }
 0x3b9   :  { %1374 = vmatpush1.bf16.msra.mxu1 %v1276_v10  ;;  %v1135_v56 = vmul.f32 %v1129_v33, %v3597_v61  ;;  %v1136_v47 = vmul.f32 %v1132_v3, %v3587_v59  ;;  %v1113_v23 = vmul.f32 %v3973_v45, %v3528_v31  ;;  %v1116_v9 = vmul.f32 %v3981_v4, %v5191_v42 }
 0x3ba   :  { %v1142_v63 = vpop.permute.xlu0 %1141  ;;  %v1138_v27 = vpack.c.bf16 %v1134_v17, %v1134_v17  ;;  %v1119_v3 = vpack.c.bf16 %v1115_v53, %v1115_v53 }
 0x3bb   :  { %v1144_v0 = vpop.permute.xlu1 %1143  ;;  %v1139_v25 = vpack.c.bf16 %v1135_v56, %v1135_v56  ;;  %v1140_v21 = vpack.c.bf16 %v1136_v47, %v1136_v47  ;;  %v1117_v15 = vpack.c.bf16 %v1113_v23, %v1113_v23 }
 0x3bc   :  { %v1151_v43 = vsel %vm302_vm8, %v1142_v63, %v1144_v0  ;;  %v1230_v40 = vrot.slane %v1138_v27, 6 }
 0x3bd   :  { %v1153_v20 = vmul.f32 %v1151_v43, %v3600_v5  ;;  %v1231_v4 = vrot.slane %v1139_v25, 6  ;;  %v1232_v56 = vrot.slane %v1140_v21, 6 }
 0x3be   :  { %v1146_v35 = vpop.permute.xlu0 %1145 }
 0x3bf   :  { %v1150_v51 = vsel %vm302_vm8, %v1144_v0, %v1146_v35  ;;  %v1148_v29 = vpop.permute.xlu1 %1147  ;;  %v1157_v1 = vpack.c.bf16 %v1153_v20, %v1153_v20  ;;  %v1229_v0 = vrot.slane %v1137_v38, 6 }
 0x3c0   :  { %v1149_v22 = vsel %vm302_vm8, %v1146_v35, %v1148_v29  ;;  %v1152_v13 = vsel %vm302_vm8, %v1148_v29, %v1142_v63  ;;  %v1154_v34 = vmul.f32 %v1150_v51, %v3623_v16  ;;  %v1118_v63 = vpack.c.bf16 %v1114_v39, %v1114_v39 }
 0x3c1   :  { %v1155_v45 = vmul.f32 %v1149_v22, %v5181_v8  ;;  %v1156_v32 = vmul.f32 %v1152_v13, %v5190_v62  ;;  %v1120_v51 = vpack.c.bf16 %v1116_v9, %v1116_v9  ;;  %v1237_v22 = vrot.slane %v1157_v1, 4 }
 0x3c2   :  { %v1162_v44 = vpop.permute.xlu0 %1161  ;;  %v1158_v57 = vpack.c.bf16 %v1154_v34, %v1154_v34  ;;  %v1283_v27 = vsel %vm470_vm4, %v1117_v15, %v1229_v0  ;;  %v1289_v15 = vsel %vm470_vm4, %v1119_v3, %v1231_v4 }
 0x3c3   :  { %v1164_v10 = vpop.permute.xlu1 %1163  ;;  %v1159_v43 = vpack.c.bf16 %v1155_v45, %v1155_v45  ;;  %v1160_v17 = vpack.c.bf16 %v1156_v32, %v1156_v32 }
 0x3c4   :  { %v1171_v12 = vsel %vm344_vm9, %v1162_v44, %v1164_v10  ;;  %v1238_v38 = vrot.slane %v1158_v57, 4 }
 0x3c5   :  { %v1173_v33 = vmul.f32 %v1171_v12, %v5184_v18  ;;  %v1239_v45 = vrot.slane %v1159_v43, 4  ;;  %v1240_v32 = vrot.slane %v1160_v17, 4 }
 0x3c6   :  { %v1166_v35 = vpop.permute.xlu0 %1165 }
 0x3c7   :  { %v1177_v47 = vpack.c.bf16 %v1173_v33, %v1173_v33  ;;  %v1170_v29 = vsel %vm344_vm9, %v1164_v10, %v1166_v35  ;;  %v1168_v20 = vpop.permute.xlu1 %1167  ;;  %v1286_v33 = vsel %vm470_vm4, %v1118_v63, %v1230_v40 }
 0x3c8   :  { %v1174_v23 = vmul.f32 %v1170_v29, %v3659_v7  ;;  %v1169_v13 = vsel %vm344_vm9, %v1166_v35, %v1168_v20  ;;  %v1172_v39 = vsel %vm344_vm9, %v1168_v20, %v1162_v44  ;;  %v1292_v35 = vsel %vm470_vm4, %v1120_v51, %v1232_v56 }
 0x3c9   :  { %v1175_v34 = vmul.f32 %v1169_v13, %v3668_v2  ;;  %v1176_v53 = vmul.f32 %v1172_v39, %v3656_v55  ;;  %v1245_v9 = vrot.slane %v1177_v47, 2  ;;  %v1294_v29 = vsel %vm483_vm5, %v1283_v27, %v1237_v22 }
 0x3ca   :  { %v1178_v25 = vpack.c.bf16 %v1174_v23, %v1174_v23  ;;  %v1182_v21 = vpop.permute.xlu0 %1181  ;;  %v1296_v47 = vsel %vm483_vm5, %v1286_v33, %v1238_v38  ;;  %v1300_v40 = vsel %vm483_vm5, %v1292_v35, %v1240_v32  ;;  %v1298_v51 = vsel %vm483_vm5, %v1289_v15, %v1239_v45  ;;  %v3186_v35 = vld [vmem:[%s5083_s2 + $0x4] sm:$0x3] }
 0x3cb   :  { %v1179_v10 = vpack.c.bf16 %v1175_v34, %v1175_v34  ;;  %v1180_v1 = vpack.c.bf16 %v1176_v53, %v1176_v53  ;;  %v1184_v12 = vpop.permute.xlu1 %1183  ;;  %v1302_v63 = vsel %vm492_vm6, %v1294_v29, %v1245_v9 }
 0x3cc   :  { %v1246_v44 = vrot.slane %v1178_v25, 2  ;;  %v1191_v57 = vsel %vm386_vm13, %v1182_v21, %v1184_v12 }
 0x3cd   :  { %v1247_v0 = vrot.slane %v1179_v10, 2  ;;  %v1248_v43 = vrot.slane %v1180_v1, 2  ;;  %v1193_v17 = vmul.f32 %v1191_v57, %v3678_v48 }
 0x3ce   :  { %v1186_v20 = vpop.permute.xlu0 %1185  ;;  %v1305_v23 = vsel %vm492_vm6, %v1296_v47, %v1246_v44 }
 0x3cf   :  { %v1197_v56 = vpack.c.bf16 %v1193_v17, %v1193_v17  ;;  %v1190_v22 = vsel %vm386_vm13, %v1184_v12, %v1186_v20  ;;  %v1188_v3 = vpop.permute.xlu1 %1187  ;;  %1334 = vmatprep.subr.bf16.mxu0 %v1305_v23  ;;  %v1311_v4 = vsel %vm492_vm6, %v1300_v40, %v1248_v43  ;;  %v1308_v13 = vsel %vm492_vm6, %v1298_v51, %v1247_v0 }
 0x3d0   :  { %v1194_v39 = vmul.f32 %v1190_v22, %v3685_v37  ;;  %v1189_v38 = vsel %vm386_vm13, %v1186_v20, %v1188_v3  ;;  %v1192_v34 = vsel %vm386_vm13, %v1188_v3, %v1182_v21  ;;  %1335 = vmatpush1.bf16.msra.mxu0 %v1302_v63  ;;  %1375 = vmatprep.subr.bf16.mxu1 %v1311_v4 }
 0x3d1   :  { %v1195_v53 = vmul.f32 %v1189_v38, %v3688_v46  ;;  %v1196_v27 = vmul.f32 %v1192_v34, %v3681_v14  ;;  %1376 = vmatpush1.bf16.msra.mxu1 %v1308_v13  ;;  %v1314_v32 = vsel %vm470_vm4, %v1197_v56, %v3691_v6 }
 0x3d2   :  { %v1198_v45 = vpack.c.bf16 %v1194_v39, %v1194_v39  ;;  %v1324_v21 = vsel %vm483_vm5, %v1314_v32, 0 }
 0x3d3   :  { %v1199_v9 = vpack.c.bf16 %v1195_v53, %v1195_v53  ;;  %v1200_v25 = vpack.c.bf16 %v1196_v27, %v1196_v27 }
 0x3d4   :  { %v1316_v10 = vsel %vm470_vm4, %v1198_v45, %v3691_v6 }
 0x3d5   :  { %3187 = vmatprep.subr.msk.bf16.mxu0 %vm483_vm5, %v1316_v10  ;;  %v1320_v1 = vsel %vm470_vm4, %v1200_v25, %v3691_v6  ;;  %v1318_v12 = vsel %vm470_vm4, %v1199_v9, %v3691_v6 }
 0x3d6   :  { %1337 = vmatpush1.bf16.msra.mxu0 %v1324_v21  ;;  %3189 = vmatprep.subr.msk.bf16.mxu1 %vm483_vm5, %v1320_v1  ;;  %v1328_v33 = vsel %vm483_vm5, %v1318_v12, 0 }
 0x3d7   :  { %1378 = vmatpush1.bf16.msra.mxu1 %v1328_v33 }
 0x3d9   :  { %3188 = vmatmul.mubr.msk.bf16.vlgmr.msra.gmra.mrb[8].mxu0 %vm546_vm14, %v3186_v35 }
 0x3da   :  { %3190 = vmatmul.mubr.msk.bf16.vlgmr.msra.gmra.mrb[8].mxu1 %vm546_vm14, %v3186_v35  ;;  %1773 = vmatprep.mubr.bf16.mxu0 %v5179_v52  ;;  %vm1729_vm14 = vcmask 195584  }
 0x3db   :  { %1814 = vmatprep.mubr.bf16.mxu1 %v5179_v52 }
 0x4ac   :  { %v4192_v44 = vpop.f32.mrb[8].mxu0 }
 0x4ad   :  { %v1419_v6 = vrot.slane %v4192_v44, 2  ;;  %v4195_v57 = vpop.f32.mrb[9].mxu0  ;;  %v4197_v29 = vpop.f32.mrb[8].mxu1  ;;  %v1507_v53 = vmul.f32 %v4192_v44, %v3528_v31 }
 0x4ae   :  { %5192 = vst [vmem:[#allocation23_spill] sm:$0xff] %v4197_v29  ;;  %v1420_v15 = vrot.slane %v4195_v57, 2  ;;  %v1370_v0 = vpop.f32.mrb[10].mxu0  ;;  %v4200_v43 = vpop.f32.mrb[9].mxu1  ;;  %v1421_v17 = vrot.slane %v4197_v29, 2  ;;  %v1508_v27 = vmul.f32 %v4195_v57, %v5180_v41  ;;  %v1509_v45 = vmul.f32 %v4197_v29, %v3570_v54 }
 0x4af   :  { %5193 = vst [vmem:[#allocation24_spill] sm:$0xff] %v4200_v43  ;;  %v1411_v47 = vpop.f32.mrb[10].mxu1  ;;  %1447 = vrot.lane.b32.xlu0 %v1419_v6, %s3286_s22  ;;  %v1371_v20 = vpop.f32.mrb[11].mxu0  ;;  %v1422_v23 = vrot.slane %v4200_v43, 2  ;;  %v1510_v32 = vmul.f32 %v4200_v43, %v5191_v42  ;;  %v1511_v10 = vpack.c.bf16 %v1507_v53, %v1507_v53 }
 0x4b0   :  { %v1412_v63 = vpop.f32.mrb[11].mxu1  ;;  %1449 = vrot.lane.b32.xlu1 %v1420_v15, %s3286_s22  ;;  %v1512_v1 = vpack.c.bf16 %v1508_v27, %v1508_v27  ;;  %v1513_v12 = vpack.c.bf16 %v1509_v45, %v1509_v45 }
 0x4b1   :  { %v1514_v33 = vpack.c.bf16 %v1510_v32, %v1510_v32  ;;  %v4252_v20 = vrot.slane %v1511_v10, 5 }
 0x4b2   :  { %v4256_v63 = vrot.slane %v1512_v1, 5  ;;  %v4263_v45 = vrot.slane %v1513_v12, 5 }
 0x4b3   :  { %1451 = vrot.lane.b32.xlu0 %v1421_v17, %s3286_s22  ;;  %v4265_v32 = vrot.slane %v1514_v33, 5 }
 0x4b4   :  { %1453 = vrot.lane.b32.xlu1 %v1422_v23, %s3286_s22 }
 0x4b7   :  { %1467 = vrot.lane.b32.xlu0 %v1419_v6, %s3287_s1 }
 0x4b8   :  { %1469 = vrot.lane.b32.xlu1 %v1420_v15, %s3287_s1 }
 0x4bb   :  { %1471 = vrot.lane.b32.xlu0 %v1421_v17, %s3287_s1 }
 0x4bc   :  { %1473 = vrot.lane.b32.xlu1 %v1422_v23, %s3287_s1 }
 0x4bf   :  { %1427 = vrot.lane.b32.xlu0 %v1419_v6, %s3288_s23 }
 0x4c0   :  { %1429 = vrot.lane.b32.xlu1 %v1420_v15, %s3288_s23 }
 0x4c3   :  { %1431 = vrot.lane.b32.xlu0 %v1421_v17, %s3288_s23 }
 0x4c4   :  { %1433 = vrot.lane.b32.xlu1 %v1422_v23, %s3288_s23 }
 0x4c7   :  { %1487 = vrot.lane.b32.xlu0 %v1419_v6, %s3289_s24 }
 0x4c8   :  { %1489 = vrot.lane.b32.xlu1 %v1420_v15, %s3289_s24 }
 0x4cb   :  { %1491 = vrot.lane.b32.xlu0 %v1421_v17, %s3289_s24 }
 0x4cc   :  { %1493 = vrot.lane.b32.xlu1 %v1422_v23, %s3289_s24 }
 0x4cf   :  { %1515 = vrot.lane.b32.xlu0 %v1419_v6, %s3290_s25 }
 0x4d0   :  { %1517 = vrot.lane.b32.xlu1 %v1420_v15, %s3290_s25 }
 0x4d3   :  { %1519 = vrot.lane.b32.xlu0 %v1421_v17, %s3290_s25 }
 0x4d4   :  { %1521 = vrot.lane.b32.xlu1 %v1422_v23, %s3290_s25 }
 0x4d7   :  { %1535 = vrot.lane.b32.xlu0 %v1419_v6, %s3291_s26 }
 0x4d8   :  { %1537 = vrot.lane.b32.xlu1 %v1420_v15, %s3291_s26 }
 0x4db   :  { %1539 = vrot.lane.b32.xlu0 %v1421_v17, %s3291_s26 }
 0x4dc   :  { %1541 = vrot.lane.b32.xlu1 %v1422_v23, %s3291_s26 }
 0x4df   :  { %1555 = vrot.lane.b32.xlu0 %v1419_v6, %s3293_s27 }
 0x4e0   :  { %1557 = vrot.lane.b32.xlu1 %v1420_v15, %s3293_s27 }
 0x4e3   :  { %1559 = vrot.lane.b32.xlu0 %v1421_v17, %s3293_s27 }
 0x4e4   :  { %1561 = vrot.lane.b32.xlu1 %v1422_v23, %s3293_s27 }
 0x4e7   :  { %1575 = vrot.lane.b32.xlu0 %v1419_v6, %s3294_s28 }
 0x4e8   :  { %1577 = vrot.lane.b32.xlu1 %v1420_v15, %s3294_s28 }
 0x4eb   :  { %1579 = vrot.lane.b32.xlu0 %v1421_v17, %s3294_s28  ;;  %v5194_v17 = vld [vmem:[#allocation25_spill] sm:$0xff] }
 0x4ec   :  { %1581 = vrot.lane.b32.xlu1 %v1422_v23, %s3294_s28  ;;  %v4250_v47 = vrot.slane %v5194_v17, 7  ;;  %v5195_v17 = vld [vmem:[#allocation8_spill] sm:$0xff] }
 0x521   :  { %v1448_v40 = vpop.permute.xlu0 %1447 }
 0x522   :  { %v1450_v51 = vpop.permute.xlu1 %1449 }
 0x523   :  { %v1457_v21 = vsel %vm105_vm0, %v1448_v40, %v1450_v51 }
 0x524   :  { %v1460_v15 = vmul.f32 %v1457_v21, %v3441_v26 }
 0x525   :  { %v1452_v56 = vpop.permute.xlu0 %1451 }
 0x526   :  { %v1454_v22 = vpop.permute.xlu1 %1453  ;;  %v1456_v35 = vsel %vm105_vm0, %v1450_v51, %v1452_v56  ;;  %v1464_v1 = vpack.c.bf16 %v1460_v15, %v1460_v15 }
 0x527   :  { %v1458_v23 = vsel %vm105_vm0, %v1454_v22, %v1448_v40  ;;  %v1461_v53 = vmul.f32 %v1456_v35, %v5185_v30  ;;  %v1455_v27 = vsel %vm105_vm0, %v1452_v56, %v1454_v22 }
 0x528   :  { %v1459_v35 = vmul.f32 %v1458_v23, %v3424_v19  ;;  %v1462_v33 = vmul.f32 %v1455_v27, %v3434_v24  ;;  %v5196_v19 = vld [vmem:[#allocation10_spill] sm:$0xff] }
 0x529   :  { %v1468_v3 = vpop.permute.xlu0 %1467  ;;  %v1465_v15 = vpack.c.bf16 %v1461_v53, %v1461_v53  ;;  %v5198_v53 = vld [vmem:[#allocation12_spill] sm:$0xff] }
 0x52a   :  { %v1470_v4 = vpop.permute.xlu1 %1469 }
 0x52b   :  { %v1477_v51 = vsel %vm147_vm2, %v1468_v3, %v1470_v4 }
 0x52c   :  { %v1480_v30 = vmul.f32 %v1477_v51, %v5195_v17 }
 0x52d   :  { %v1472_v13 = vpop.permute.xlu0 %1471 }
 0x52e   :  { %v1474_v39 = vpop.permute.xlu1 %1473  ;;  %v1476_v10 = vsel %vm147_vm2, %v1470_v4, %v1472_v13 }
 0x52f   :  { %v1475_v56 = vsel %vm147_vm2, %v1472_v13, %v1474_v39  ;;  %v1478_v22 = vsel %vm147_vm2, %v1474_v39, %v1468_v3  ;;  %v1481_v23 = vmul.f32 %v1476_v10, %v3465_v36  ;;  %v5197_v39 = vld [vmem:[#allocation7_spill] sm:$0xff] }
 0x530   :  { %v1479_v3 = vmul.f32 %v1478_v22, %v3447_v28  ;;  %v1482_v27 = vmul.f32 %v1475_v56, %v5197_v39  ;;  %v5199_v10 = vld [vmem:[#allocation11_spill] sm:$0xff]  ;;  %v1484_v22 = vpack.c.bf16 %v1480_v30, %v1480_v30  ;;  %v5200_v28 = vld [vmem:[#allocation13_spill] sm:$0xff] }
 0x531   :  { %v1428_v38 = vpop.permute.xlu0 %1427 }
 0x532   :  { %v1430_v34 = vpop.permute.xlu1 %1429 }
 0x533   :  { %v1437_v40 = vsel %vm63_vm1, %v1428_v38, %v1430_v34 }
 0x534   :  { %v1440_v42 = vmul.f32 %v1437_v40, %v5196_v19  ;;  %v1485_v19 = vpack.c.bf16 %v1481_v23, %v1481_v23 }
 0x535   :  { %v1432_v9 = vpop.permute.xlu0 %1431 }
 0x536   :  { %v1434_v25 = vpop.permute.xlu1 %1433  ;;  %v1436_v4 = vsel %vm63_vm1, %v1430_v34, %v1432_v9  ;;  %v1444_v54 = vpack.c.bf16 %v1440_v42, %v1440_v42  ;;  %v1608_v42 = vrot.slane %v1484_v22, 6 }
 0x537   :  { %v1438_v26 = vsel %vm63_vm1, %v1434_v25, %v1428_v38  ;;  %v1435_v13 = vsel %vm63_vm1, %v1432_v9, %v1434_v25  ;;  %v1463_v38 = vpack.c.bf16 %v1459_v35, %v1459_v35  ;;  %v1441_v24 = vmul.f32 %v1436_v4, %v5198_v53 }
 0x538   :  { %v1439_v36 = vmul.f32 %v1438_v26, %v5199_v10  ;;  %v1466_v25 = vpack.c.bf16 %v1462_v33, %v1462_v33  ;;  %v1442_v56 = vmul.f32 %v1435_v13, %v5200_v28  ;;  %v1600_v4 = vrot.slane %v1464_v1, 7  ;;  %v5201_v10 = vld [vmem:[#allocation17_spill] sm:$0xff]  ;;  %v5202_v13 = vld [vmem:[#allocation16_spill] sm:$0xff] }
 0x539   :  { %v1488_v6 = vpop.permute.xlu0 %1487  ;;  %v1483_v53 = vpack.c.bf16 %v1479_v3, %v1479_v3  ;;  %v1486_v26 = vpack.c.bf16 %v1482_v27, %v1482_v27  ;;  %v1601_v33 = vrot.slane %v1465_v15, 7  ;;  %v1445_v30 = vpack.c.bf16 %v1441_v24, %v1441_v24 }
 0x53a   :  { %v1490_v0 = vpop.permute.xlu1 %1489  ;;  %v1443_v31 = vpack.c.bf16 %v1439_v36, %v1439_v36  ;;  %v1446_v23 = vpack.c.bf16 %v1442_v56, %v1442_v56 }
 0x53b   :  { %v1497_v51 = vsel %vm189_vm3, %v1488_v6, %v1490_v0  ;;  %v1607_v27 = vrot.slane %v1483_v53, 6  ;;  %v1661_v36 = vsel %vm39_vm10, %v1445_v30, %v1601_v33 }
 0x53d   :  { %v1492_v21 = vpop.permute.xlu0 %1491 }
 0x53e   :  { %v1494_v12 = vpop.permute.xlu1 %1493  ;;  %v1496_v39 = vsel %vm189_vm3, %v1490_v0, %v1492_v21  ;;  %v1599_v0 = vrot.slane %v1463_v38, 7 }
 0x53f   :  { %v1498_v34 = vsel %vm189_vm3, %v1494_v12, %v1488_v6  ;;  %v1495_v40 = vsel %vm189_vm3, %v1492_v21, %v1494_v12  ;;  %v1500_v6 = vmul.f32 %v1497_v51, %v3489_v49  ;;  %v1501_v28 = vmul.f32 %v1496_v39, %v5202_v13 }
 0x540   :  { %v1499_v35 = vmul.f32 %v1498_v34, %v3492_v50  ;;  %v1502_v12 = vmul.f32 %v1495_v40, %v5201_v10  ;;  %v1602_v21 = vrot.slane %v1466_v25, 7  ;;  %v1609_v51 = vrot.slane %v1485_v19, 6 }
 0x541   :  { %v1516_v17 = vpop.permute.xlu0 %1515  ;;  %v1658_v34 = vsel %vm39_vm10, %v1444_v54, %v1600_v4  ;;  %v1504_v1 = vpack.c.bf16 %v1500_v6, %v1500_v6  ;;  %v1610_v50 = vrot.slane %v1486_v26, 6  ;;  %v1655_v39 = vsel %vm39_vm10, %v1443_v31, %v1599_v0 }
 0x542   :  { %v1518_v9 = vpop.permute.xlu1 %1517  ;;  %v1503_v3 = vpack.c.bf16 %v1499_v35, %v1499_v35  ;;  %v1506_v49 = vpack.c.bf16 %v1502_v12, %v1502_v12  ;;  %v1505_v38 = vpack.c.bf16 %v1501_v28, %v1501_v28  ;;  %v1668_v54 = vsel %vm470_vm4, %v1658_v34, %v1608_v42 }
 0x543   :  { %v1525_v15 = vsel %vm260_vm7, %v1516_v17, %v1518_v9  ;;  %v1664_v25 = vsel %vm39_vm10, %v1446_v23, %v1602_v21  ;;  %v1616_v56 = vrot.slane %v1504_v1, 5  ;;  %v1670_v31 = vsel %vm470_vm4, %v1661_v36, %v1609_v51 }
 0x544   :  { %v1615_v6 = vrot.slane %v1503_v3, 5  ;;  %v1527_v35 = vmul.f32 %v1525_v15, %v3582_v58  ;;  %v1618_v4 = vrot.slane %v1506_v49, 5  ;;  %v1672_v0 = vsel %vm470_vm4, %v1664_v25, %v1610_v50 }
 0x545   :  { %v1520_v41 = vpop.permute.xlu0 %1519  ;;  %v1677_v23 = vsel %vm1673_vm15, %v1668_v54, %v1616_v56 }
 0x546   :  { %v1522_v43 = vpop.permute.xlu1 %1521  ;;  %v1524_v40 = vsel %vm260_vm7, %v1518_v9, %v1520_v41  ;;  %v1666_v9 = vsel %vm470_vm4, %v1655_v39, %v1607_v27  ;;  %v1531_v34 = vpack.c.bf16 %v1527_v35, %v1527_v35  ;;  %v1681_v3 = vsel %vm1673_vm15, %v1672_v0, %v1618_v4 }
 0x547   :  { %v1523_v53 = vsel %vm260_vm7, %v1520_v41, %v1522_v43  ;;  %v1526_v22 = vsel %vm260_vm7, %v1522_v43, %v1516_v17  ;;  %v1528_v26 = vmul.f32 %v1524_v40, %v3590_v60  ;;  %v1617_v41 = vrot.slane %v1505_v38, 5 }
 0x548   :  { %v1529_v33 = vmul.f32 %v1523_v53, %v3597_v61  ;;  %v1530_v43 = vmul.f32 %v1526_v22, %v3587_v59  ;;  %v1675_v51 = vsel %vm1673_vm15, %v1666_v9, %v1615_v6  ;;  %v1685_v25 = vsel %vm483_vm5, %v1677_v23, %v4256_v63 }
 0x549   :  { %v1536_v24 = vpop.permute.xlu0 %1535  ;;  %v1532_v27 = vpack.c.bf16 %v1528_v26, %v1528_v26  ;;  %v1679_v39 = vsel %vm1673_vm15, %v1670_v31, %v1617_v41  ;;  %v1683_v53 = vsel %vm483_vm5, %v1675_v51, %v4252_v20  ;;  %v1631_v22 = vrot.slane %v1531_v34, 3 }
 0x54a   :  { %v1538_v19 = vpop.permute.xlu1 %1537  ;;  %v1533_v38 = vpack.c.bf16 %v1529_v33, %v1529_v33  ;;  %v1534_v40 = vpack.c.bf16 %v1530_v43, %v1530_v43  ;;  %v1689_v35 = vsel %vm483_vm5, %v1681_v3, %v4265_v32  ;;  %v1687_v26 = vsel %vm483_vm5, %v1679_v39, %v4263_v45 }
 0x54b   :  { %v1545_v28 = vsel %vm302_vm8, %v1536_v24, %v1538_v19 }
 0x54c   :  { %v1547_v21 = vmul.f32 %v1545_v28, %v3600_v5  ;;  %v1632_v28 = vrot.slane %v1532_v27, 3  ;;  %v1634_v41 = vrot.slane %v1534_v40, 3 }
 0x54d   :  { %v1540_v12 = vpop.permute.xlu0 %1539 }
 0x54e   :  { %v1544_v17 = vsel %vm302_vm8, %v1538_v19, %v1540_v12  ;;  %v1542_v30 = vpop.permute.xlu1 %1541  ;;  %v1551_v19 = vpack.c.bf16 %v1547_v21, %v1547_v21  ;;  %v1698_v39 = vsel %vm1690_vm11, %v1689_v35, %v1634_v41 }
 0x54f   :  { %v1543_v49 = vsel %vm302_vm8, %v1540_v12, %v1542_v30  ;;  %v1546_v42 = vsel %vm302_vm8, %v1542_v30, %v1536_v24  ;;  %v1548_v1 = vmul.f32 %v1544_v17, %v3623_v16  ;;  %v1633_v12 = vrot.slane %v1533_v38, 3 }
 0x550   :  { %v1549_v50 = vmul.f32 %v1543_v49, %v5181_v8  ;;  %v1550_v15 = vmul.f32 %v1546_v42, %v5190_v62  ;;  %v1639_v43 = vrot.slane %v1551_v19, 2  ;;  %v1692_v49 = vsel %vm1690_vm11, %v1683_v53, %v1631_v22 }
 0x551   :  { %v1556_v36 = vpop.permute.xlu0 %1555  ;;  %v1552_v56 = vpack.c.bf16 %v1548_v1, %v1548_v1 }
 0x552   :  { %v1558_v24 = vpop.permute.xlu1 %1557  ;;  %v1553_v31 = vpack.c.bf16 %v1549_v50, %v1549_v50  ;;  %v1554_v9 = vpack.c.bf16 %v1550_v15, %v1550_v15  ;;  %v1694_v15 = vsel %vm1690_vm11, %v1685_v25, %v1632_v28  ;;  %v1700_v40 = vsel %vm492_vm6, %v1692_v49, %v1639_v43 }
 0x553   :  { %v1565_v54 = vsel %vm344_vm9, %v1556_v36, %v1558_v24  ;;  %v1640_v0 = vrot.slane %v1552_v56, 2 }
 0x554   :  { %v1567_v6 = vmul.f32 %v1565_v54, %v5184_v18  ;;  %v1641_v42 = vrot.slane %v1553_v31, 2  ;;  %v1642_v23 = vrot.slane %v1554_v9, 2 }
 0x555   :  { %v1560_v4 = vpop.permute.xlu0 %1559  ;;  %v1702_v22 = vsel %vm492_vm6, %v1694_v15, %v1640_v0 }
 0x556   :  { %v1571_v63 = vpack.c.bf16 %v1567_v6, %v1567_v6  ;;  %v1564_v20 = vsel %vm344_vm9, %v1558_v24, %v1560_v4  ;;  %v1562_v33 = vpop.permute.xlu1 %1561  ;;  %v1696_v24 = vsel %vm1690_vm11, %v1687_v26, %v1633_v12  ;;  %v1706_v35 = vsel %vm492_vm6, %v1698_v39, %v1642_v23 }
 0x557   :  { %v1568_v17 = vmul.f32 %v1564_v20, %v3659_v7  ;;  %v1563_v32 = vsel %vm344_vm9, %v1560_v4, %v1562_v33  ;;  %v1566_v30 = vsel %vm344_vm9, %v1562_v33, %v1556_v36  ;;  %v1704_v28 = vsel %vm492_vm6, %v1696_v24, %v1641_v42 }
 0x558   :  { %v1569_v21 = vmul.f32 %v1563_v32, %v3668_v2  ;;  %v1570_v45 = vmul.f32 %v1566_v30, %v3656_v55  ;;  %v1647_v51 = vrot.slane %v1571_v63, 1 }
 0x559   :  { %v1572_v34 = vpack.c.bf16 %v1568_v17, %v1568_v17  ;;  %v1576_v1 = vpop.permute.xlu0 %1575 }
 0x55a   :  { %v1573_v3 = vpack.c.bf16 %v1569_v21, %v1569_v21  ;;  %v1574_v27 = vpack.c.bf16 %v1570_v45, %v1570_v45  ;;  %v1578_v50 = vpop.permute.xlu1 %1577  ;;  %v1709_v25 = vsel %vm1707_vm12, %v1700_v40, %v1647_v51  ;;  %v1414_v51 = vld [vmem:[%s5084_s3] sm:$0x1] }
 0x55b   :  { %v1648_v36 = vrot.slane %v1572_v34, 1  ;;  %v1585_v38 = vsel %vm386_vm13, %v1576_v1, %v1578_v50 }
 0x55c   :  { %v1649_v19 = vrot.slane %v1573_v3, 1  ;;  %v1650_v54 = vrot.slane %v1574_v27, 1  ;;  %v1587_v53 = vmul.f32 %v1585_v38, %v3678_v48  ;;  %v5206_v38 = vld [vmem:[#allocation24_spill] sm:$0xff] }
 0x55d   :  { %v1580_v56 = vpop.permute.xlu0 %1579  ;;  %v1712_v6 = vsel %vm1707_vm12, %v1702_v22, %v1648_v36 }
 0x55e   :  { %v1591_v31 = vpack.c.bf16 %v1587_v53, %v1587_v53  ;;  %v1584_v9 = vsel %vm386_vm13, %v1578_v50, %v1580_v56  ;;  %1741 = vmatprep.subr.bf16.mxu0 %v1712_v6  ;;  %v1582_v4 = vpop.permute.xlu1 %1581  ;;  %v1718_v26 = vsel %vm1707_vm12, %v1706_v35, %v1650_v54  ;;  %v1715_v12 = vsel %vm1707_vm12, %v1704_v28, %v1649_v19 }
 0x55f   :  { %v1588_v41 = vmul.f32 %v1584_v9, %v3685_v37  ;;  %v1583_v63 = vsel %vm386_vm13, %v1580_v56, %v1582_v4  ;;  %v1586_v20 = vsel %vm386_vm13, %v1582_v4, %v1576_v1  ;;  %1742 = vmatpush1.bf16.msra.mxu0 %v1709_v25  ;;  %1782 = vmatprep.subr.bf16.mxu1 %v1718_v26  ;;  %v5208_v26 = vld [vmem:[#allocation18_spill] sm:$0xff] }
 0x560   :  { %v1589_v33 = vmul.f32 %v1583_v63, %v3688_v46  ;;  %v1590_v43 = vmul.f32 %v1586_v20, %v3681_v14  ;;  %1783 = vmatpush1.bf16.msra.mxu1 %v1715_v12  ;;  %v1722_v32 = vsel %vm39_vm10, %v1591_v31, %v4250_v47  ;;  %v5209_v63 = vld [vmem:[#allocation19_spill] sm:$0xff] }
 0x561   :  { %v1592_v17 = vpack.c.bf16 %v1588_v41, %v1588_v41  ;;  %v1733_v45 = vsel %vm483_vm5, %v1722_v32, 0 }
 0x562   :  { %v1593_v30 = vpack.c.bf16 %v1589_v33, %v1589_v33  ;;  %v1594_v0 = vpack.c.bf16 %v1590_v43, %v1590_v43  ;;  %v5210_v33 = vld [vmem:[#allocation21_spill] sm:$0xff] }
 0x563   :  { %v1724_v21 = vsel %vm39_vm10, %v1592_v17, %v4250_v47 }
 0x564   :  { %3191 = vmatprep.subr.msk.bf16.mxu0 %vm483_vm5, %v1724_v21  ;;  %v1728_v49 = vsel %vm39_vm10, %v1594_v0, %v4250_v47  ;;  %v1726_v42 = vsel %vm39_vm10, %v1593_v30, %v4250_v47  ;;  %v5211_v0 = vld [vmem:[#allocation20_spill] sm:$0xff] }
 0x565   :  { %1744 = vmatpush1.bf16.msra.mxu0 %v1733_v45  ;;  %3193 = vmatprep.subr.msk.bf16.mxu1 %vm483_vm5, %v1728_v49  ;;  %v1737_v23 = vsel %vm483_vm5, %v1726_v42, 0 }
 0x566   :  { %1785 = vmatpush1.bf16.msra.mxu1 %v1737_v23 }
 0x568   :  { %3192 = vmatmul.mubr.msk.bf16.vlgmr.msra.gmra.mrb[12].mxu0 %vm1729_vm14, %v1414_v51 }
 0x569   :  { %3194 = vmatmul.mubr.msk.bf16.vlgmr.msra.gmra.mrb[12].mxu1 %vm1729_vm14, %v1414_v51  ;;  %2167 = vmatprep.mubr.bf16.mxu0 %v5179_v52  ;;  %v5212_v51 = vld [vmem:[#allocation4_spill] sm:$0xff] }
 0x56a   :  { %2208 = vmatprep.mubr.bf16.mxu1 %v5179_v52 }
 0x63b   :  { %v1775_v34 = vpop.f32.mrb[12].mxu0 }
 0x63c   :  { %v4403_v1 = vadd.f32 %v1775_v34, %v4192_v44  ;;  %v1777_v3 = vpop.f32.mrb[13].mxu0  ;;  %v1816_v27 = vpop.f32.mrb[12].mxu1 }
 0x63d   :  { %v4406_v50 = vadd.f32 %v1777_v3, %v4195_v57  ;;  %v4409_v15 = vadd.f32 %v1816_v27, %v4197_v29  ;;  %v1779_v39 = vpop.f32.mrb[14].mxu0  ;;  %v1818_v36 = vpop.f32.mrb[13].mxu1 }
 0x63e   :  { %5203 = vst [vmem:[#allocation22_spill] sm:$0xff] %v4403_v1  ;;  %v4412_v40 = vadd.f32 %v1818_v36, %v5206_v38  ;;  %v1820_v24 = vpop.f32.mrb[14].mxu1  ;;  %1848 = vrot.lane.b32.xlu0 %v4403_v1, %s3286_s22  ;;  %v1780_v19 = vpop.f32.mrb[15].mxu0  ;;  %v1908_v12 = vmul.f32 %v4403_v1, %v5208_v26  ;;  %v5213_v36 = vld [vmem:[#allocation5_spill] sm:$0xff] }
 0x63f   :  { %5204 = vst [vmem:[#allocation25_spill] sm:$0xff] %v4406_v50  ;;  %5205 = vst [vmem:[#allocation17_spill] sm:$0xff] %v4409_v15  ;;  %v1821_v54 = vpop.f32.mrb[15].mxu1  ;;  %1850 = vrot.lane.b32.xlu1 %v4406_v50, %s3286_s22  ;;  %v1909_v20 = vmul.f32 %v4406_v50, %v5209_v63  ;;  %v1910_v43 = vmul.f32 %v4409_v15, %v5210_v33 }
 0x640   :  { %5207 = vst [vmem:[#allocation16_spill] sm:$0xff] %v4412_v40  ;;  %v1912_v30 = vpack.c.bf16 %v1908_v12, %v1908_v12  ;;  %v4488_v21 = vmul.f32 %v4412_v40, %v5211_v0  ;;  %v5220_v0 = vld [vmem:[#allocation7_spill] sm:$0xff] }
 0x641   :  { %v1913_v42 = vpack.c.bf16 %v1909_v20, %v1909_v20  ;;  %v1914_v23 = vpack.c.bf16 %v1910_v43, %v1910_v43 }
 0x642   :  { %1852 = vrot.lane.b32.xlu0 %v4409_v15, %s3286_s22  ;;  %v4495_v39 = vrot.slane %v1912_v30, 4 }
 0x643   :  { %1854 = vrot.lane.b32.xlu1 %v4412_v40, %s3286_s22  ;;  %v4508_v43 = vrot.slane %v1913_v42, 4 }
 0x646   :  { %1868 = vrot.lane.b32.xlu0 %v4403_v1, %s3287_s1 }
 0x647   :  { %1870 = vrot.lane.b32.xlu1 %v4406_v50, %s3287_s1 }
 0x64a   :  { %1872 = vrot.lane.b32.xlu0 %v4409_v15, %s3287_s1 }
 0x64b   :  { %1874 = vrot.lane.b32.xlu1 %v4412_v40, %s3287_s1 }
 0x64e   :  { %1828 = vrot.lane.b32.xlu0 %v4403_v1, %s3288_s23 }
 0x64f   :  { %1830 = vrot.lane.b32.xlu1 %v4406_v50, %s3288_s23 }
 0x652   :  { %1832 = vrot.lane.b32.xlu0 %v4409_v15, %s3288_s23 }
 0x653   :  { %1834 = vrot.lane.b32.xlu1 %v4412_v40, %s3288_s23 }
 0x656   :  { %1888 = vrot.lane.b32.xlu0 %v4403_v1, %s3289_s24 }
 0x657   :  { %1890 = vrot.lane.b32.xlu1 %v4406_v50, %s3289_s24 }
 0x65a   :  { %1892 = vrot.lane.b32.xlu0 %v4409_v15, %s3289_s24 }
 0x65b   :  { %1894 = vrot.lane.b32.xlu1 %v4412_v40, %s3289_s24 }
 0x65e   :  { %1916 = vrot.lane.b32.xlu0 %v4403_v1, %s3290_s25 }
 0x65f   :  { %1918 = vrot.lane.b32.xlu1 %v4406_v50, %s3290_s25 }
 0x662   :  { %1920 = vrot.lane.b32.xlu0 %v4409_v15, %s3290_s25 }
 0x663   :  { %1922 = vrot.lane.b32.xlu1 %v4412_v40, %s3290_s25 }
 0x666   :  { %1936 = vrot.lane.b32.xlu0 %v4403_v1, %s3291_s26 }
 0x667   :  { %1938 = vrot.lane.b32.xlu1 %v4406_v50, %s3291_s26 }
 0x66a   :  { %1940 = vrot.lane.b32.xlu0 %v4409_v15, %s3291_s26 }
 0x66b   :  { %1942 = vrot.lane.b32.xlu1 %v4412_v40, %s3291_s26 }
 0x66e   :  { %1956 = vrot.lane.b32.xlu0 %v4403_v1, %s3293_s27 }
 0x66f   :  { %1958 = vrot.lane.b32.xlu1 %v4406_v50, %s3293_s27 }
 0x672   :  { %1960 = vrot.lane.b32.xlu0 %v4409_v15, %s3293_s27 }
 0x673   :  { %1962 = vrot.lane.b32.xlu1 %v4412_v40, %s3293_s27 }
 0x676   :  { %1976 = vrot.lane.b32.xlu0 %v4403_v1, %s3294_s28 }
 0x677   :  { %1978 = vrot.lane.b32.xlu1 %v4406_v50, %s3294_s28  ;;  %v5216_v50 = vld [vmem:[#allocation8_spill] sm:$0xff] }
 0x67a   :  { %1980 = vrot.lane.b32.xlu0 %v4409_v15, %s3294_s28  ;;  %v5215_v15 = vld [vmem:[#allocation3_spill] sm:$0xff] }
 0x67b   :  { %1982 = vrot.lane.b32.xlu1 %v4412_v40, %s3294_s28 }
 0x6b0   :  { %v1849_v53 = vpop.permute.xlu0 %1848 }
 0x6b1   :  { %v1851_v22 = vpop.permute.xlu1 %1850 }
 0x6b2   :  { %v1858_v32 = vsel %vm105_vm0, %v1849_v53, %v1851_v22 }
 0x6b3   :  { %v1861_v34 = vmul.f32 %v1858_v32, %v5212_v51  ;;  %v4510_v32 = vrot.slane %v1914_v23, 4 }
 0x6b4   :  { %v1853_v56 = vpop.permute.xlu0 %1852 }
 0x6b5   :  { %v1855_v6 = vpop.permute.xlu1 %1854  ;;  %v1857_v45 = vsel %vm105_vm0, %v1851_v22, %v1853_v56  ;;  %v1865_v30 = vpack.c.bf16 %v1861_v34, %v1861_v34 }
 0x6b6   :  { %v1859_v27 = vsel %vm105_vm0, %v1855_v6, %v1849_v53  ;;  %v1862_v24 = vmul.f32 %v1857_v45, %v5213_v36  ;;  %v1856_v19 = vsel %vm105_vm0, %v1853_v56, %v1855_v6  ;;  %v5214_v45 = vld [vmem:[#allocation2_spill] sm:$0xff]  ;;  %v5217_v36 = vld [vmem:[#allocation9_spill] sm:$0xff] }
 0x6b7   :  { %v1860_v56 = vmul.f32 %v1859_v27, %v5214_v45  ;;  %v5218_v45 = vld [vmem:[#allocation10_spill] sm:$0xff] }
 0x6b8   :  { %v1869_v25 = vpop.permute.xlu0 %1868  ;;  %v1866_v34 = vpack.c.bf16 %v1862_v24, %v1862_v24  ;;  %v5221_v24 = vld [vmem:[#allocation12_spill] sm:$0xff] }
 0x6b9   :  { %v1871_v35 = vpop.permute.xlu1 %1870 }
 0x6ba   :  { %v1878_v54 = vsel %vm147_vm2, %v1869_v25, %v1871_v35  ;;  %v2002_v38 = vrot.slane %v1866_v34, 7 }
 0x6bb   :  { %v1881_v1 = vmul.f32 %v1878_v54, %v5216_v50 }
 0x6bc   :  { %v1873_v28 = vpop.permute.xlu0 %1872 }
 0x6bd   :  { %v1875_v31 = vpop.permute.xlu1 %1874  ;;  %v1877_v12 = vsel %vm147_vm2, %v1871_v35, %v1873_v28  ;;  %v1863_v35 = vmul.f32 %v1856_v19, %v5215_v15 }
 0x6be   :  { %v1876_v6 = vsel %vm147_vm2, %v1873_v28, %v1875_v31  ;;  %v1879_v22 = vsel %vm147_vm2, %v1875_v31, %v1869_v25  ;;  %v1882_v27 = vmul.f32 %v1877_v12, %v5217_v36  ;;  %v5219_v25 = vld [vmem:[#allocation6_spill] sm:$0xff]  ;;  %v5222_v12 = vld [vmem:[#allocation11_spill] sm:$0xff] }
 0x6bf   :  { %v1880_v31 = vmul.f32 %v1879_v22, %v5219_v25  ;;  %v1883_v19 = vmul.f32 %v1876_v6, %v5220_v0  ;;  %v1885_v22 = vpack.c.bf16 %v1881_v1, %v1881_v1  ;;  %v5223_v25 = vld [vmem:[#allocation13_spill] sm:$0xff] }
 0x6c0   :  { %v1829_v9 = vpop.permute.xlu0 %1828 }
 0x6c1   :  { %v1831_v4 = vpop.permute.xlu1 %1830 }
 0x6c2   :  { %v1838_v20 = vsel %vm63_vm1, %v1829_v9, %v1831_v4 }
 0x6c3   :  { %v1841_v51 = vmul.f32 %v1838_v20, %v5218_v45  ;;  %v1886_v45 = vpack.c.bf16 %v1882_v27, %v1882_v27 }
 0x6c4   :  { %v1833_v41 = vpop.permute.xlu0 %1832 }
 0x6c5   :  { %v1835_v17 = vpop.permute.xlu1 %1834  ;;  %v1837_v42 = vsel %vm63_vm1, %v1831_v4, %v1833_v41  ;;  %v1845_v33 = vpack.c.bf16 %v1841_v51, %v1841_v51  ;;  %v2010_v27 = vrot.slane %v1886_v45, 6 }
 0x6c6   :  { %v1839_v23 = vsel %vm63_vm1, %v1835_v17, %v1829_v9  ;;  %v1836_v28 = vsel %vm63_vm1, %v1833_v41, %v1835_v17  ;;  %v1864_v9 = vpack.c.bf16 %v1860_v56, %v1860_v56  ;;  %v1842_v15 = vmul.f32 %v1837_v42, %v5221_v24  ;;  %v5225_v56 = vld [vmem:[#allocation15_spill] sm:$0xff] }
 0x6c7   :  { %v1840_v36 = vmul.f32 %v1839_v23, %v5222_v12  ;;  %v1867_v17 = vpack.c.bf16 %v1863_v35, %v1863_v35  ;;  %v1843_v6 = vmul.f32 %v1836_v28, %v5223_v25  ;;  %v2001_v42 = vrot.slane %v1865_v30, 7 }
 0x6c8   :  { %v1889_v49 = vpop.permute.xlu0 %1888  ;;  %v1884_v24 = vpack.c.bf16 %v1880_v31, %v1880_v31  ;;  %v1887_v23 = vpack.c.bf16 %v1883_v19, %v1883_v19  ;;  %v1846_v35 = vpack.c.bf16 %v1842_v15, %v1842_v15  ;;  %v2000_v29 = vrot.slane %v1864_v9, 7 }
 0x6c9   :  { %v1891_v3 = vpop.permute.xlu1 %1890  ;;  %v1844_v1 = vpack.c.bf16 %v1840_v36, %v1840_v36  ;;  %v1847_v51 = vpack.c.bf16 %v1843_v6, %v1843_v6 }
 0x6ca   :  { %v1898_v54 = vsel %vm189_vm3, %v1889_v49, %v1891_v3  ;;  %v2008_v31 = vrot.slane %v1884_v24, 6  ;;  %v2011_v19 = vrot.slane %v1887_v23, 6  ;;  %v2060_v36 = vsel %vm39_vm10, %v1846_v35, %v2002_v38 }
 0x6cc   :  { %v1893_v53 = vpop.permute.xlu0 %1892 }
 0x6cd   :  { %v1895_v40 = vpop.permute.xlu1 %1894  ;;  %v1897_v0 = vsel %vm189_vm3, %v1891_v3, %v1893_v53  ;;  %v2003_v3 = vrot.slane %v1867_v17, 7 }
 0x6ce   :  { %v1899_v4 = vsel %vm189_vm3, %v1895_v40, %v1889_v49  ;;  %v1896_v20 = vsel %vm189_vm3, %v1893_v53, %v1895_v40  ;;  %v5224_v49 = vld [vmem:[#allocation14_spill] sm:$0xff]  ;;  %v1902_v28 = vmul.f32 %v1897_v0, %v5202_v13  ;;  %v2009_v53 = vrot.slane %v1885_v22, 6 }
 0x6cf   :  { %v1901_v63 = vmul.f32 %v1898_v54, %v5224_v49  ;;  %v1900_v26 = vmul.f32 %v1899_v4, %v5225_v56  ;;  %v1903_v12 = vmul.f32 %v1896_v20, %v5201_v10  ;;  %v2057_v54 = vsel %vm39_vm10, %v1845_v33, %v2001_v42 }
 0x6d0   :  { %v1917_v50 = vpop.permute.xlu0 %1916  ;;  %v2054_v0 = vsel %vm39_vm10, %v1844_v1, %v2000_v29  ;;  %v1906_v9 = vpack.c.bf16 %v1902_v28, %v1902_v28  ;;  %v2067_v33 = vsel %vm470_vm4, %v2057_v54, %v2009_v53 }
 0x6d1   :  { %v1919_v41 = vpop.permute.xlu1 %1918  ;;  %v1905_v4 = vpack.c.bf16 %v1901_v63, %v1901_v63  ;;  %v1904_v30 = vpack.c.bf16 %v1900_v26, %v1900_v26  ;;  %v1907_v56 = vpack.c.bf16 %v1903_v12, %v1903_v12  ;;  %v2063_v26 = vsel %vm39_vm10, %v1847_v51, %v2003_v3 }
 0x6d2   :  { %v1926_v34 = vsel %vm260_vm7, %v1917_v50, %v1919_v41  ;;  %v2065_v22 = vsel %vm470_vm4, %v2054_v0, %v2008_v31  ;;  %v2018_v35 = vrot.slane %v1906_v9, 5  ;;  %v2071_v28 = vsel %vm470_vm4, %v2063_v26, %v2011_v19 }
 0x6d3   :  { %v2017_v12 = vrot.slane %v1905_v4, 5  ;;  %v2016_v17 = vrot.slane %v1904_v30, 5  ;;  %v1928_v38 = vmul.f32 %v1926_v34, %v3582_v58  ;;  %v2019_v6 = vrot.slane %v1907_v56, 5 }
 0x6d4   :  { %v1921_v40 = vpop.permute.xlu0 %1920 }
 0x6d5   :  { %v1923_v25 = vpop.permute.xlu1 %1922  ;;  %v1925_v20 = vsel %vm260_vm7, %v1919_v41, %v1921_v40  ;;  %v2069_v41 = vsel %vm470_vm4, %v2060_v36, %v2010_v27  ;;  %v2075_v51 = vsel %vm1673_vm15, %v2067_v33, %v2017_v12  ;;  %v2073_v27 = vsel %vm1673_vm15, %v2065_v22, %v2016_v17 }
 0x6d6   :  { %v1924_v63 = vsel %vm260_vm7, %v1921_v40, %v1923_v25  ;;  %v1927_v24 = vsel %vm260_vm7, %v1923_v25, %v1917_v50  ;;  %v1929_v42 = vmul.f32 %v1925_v20, %v3590_v60  ;;  %v1932_v54 = vpack.c.bf16 %v1928_v38, %v1928_v38 }
 0x6d7   :  { %v1930_v40 = vmul.f32 %v1924_v63, %v3597_v61  ;;  %v1931_v50 = vmul.f32 %v1927_v24, %v3587_v59  ;;  %v2079_v30 = vsel %vm1673_vm15, %v2071_v28, %v2019_v6  ;;  %v2077_v0 = vsel %vm1673_vm15, %v2069_v41, %v2018_v35 }
 0x6d8   :  { %v1937_v15 = vpop.permute.xlu0 %1936  ;;  %v1933_v31 = vpack.c.bf16 %v1929_v42, %v1929_v42  ;;  %v2083_v24 = vsel %vm483_vm5, %v2075_v51, %v4508_v43  ;;  %v2081_v12 = vsel %vm483_vm5, %v2073_v27, %v4495_v39  ;;  %v2032_v17 = vrot.slane %v1932_v54, 3 }
 0x6d9   :  { %v1939_v45 = vpop.permute.xlu1 %1938  ;;  %v1934_v9 = vpack.c.bf16 %v1930_v40, %v1930_v40  ;;  %v1935_v20 = vpack.c.bf16 %v1931_v50, %v1931_v50 }
 0x6da   :  { %v1946_v29 = vsel %vm302_vm8, %v1937_v15, %v1939_v45  ;;  %v2033_v22 = vrot.slane %v1933_v31, 3  ;;  %v2089_v51 = vsel %vm1690_vm11, %v2081_v12, %v2032_v17 }
 0x6db   :  { %v1948_v3 = vmul.f32 %v1946_v29, %v3600_v5  ;;  %v2034_v35 = vrot.slane %v1934_v9, 3  ;;  %v2035_v40 = vrot.slane %v1935_v20, 3 }
 0x6dc   :  { %v1941_v23 = vpop.permute.xlu0 %1940  ;;  %v2091_v9 = vsel %vm1690_vm11, %v2083_v24, %v2033_v22 }
 0x6dd   :  { %v1945_v25 = vsel %vm302_vm8, %v1939_v45, %v1941_v23  ;;  %v1943_v1 = vpop.permute.xlu1 %1942  ;;  %v5226_v45 = vpack.c.bf16 %v4488_v21, %v4488_v21  ;;  %v1952_v26 = vpack.c.bf16 %v1948_v3, %v1948_v3 }
 0x6de   :  { %v1944_v53 = vsel %vm302_vm8, %v1941_v23, %v1943_v1  ;;  %v1947_v56 = vsel %vm302_vm8, %v1943_v1, %v1937_v15  ;;  %v1949_v4 = vmul.f32 %v1945_v25, %v3623_v16  ;;  %v2085_v23 = vsel %vm483_vm5, %v2077_v0, %v4510_v32 }
 0x6df   :  { %v1950_v19 = vmul.f32 %v1944_v53, %v5181_v8  ;;  %v1951_v34 = vmul.f32 %v1947_v56, %v5190_v62  ;;  %v2027_v33 = vrot.slane %v5226_v45, 4  ;;  %v2040_v25 = vrot.slane %v1952_v26, 2 }
 0x6e0   :  { %v1957_v36 = vpop.permute.xlu0 %1956  ;;  %v1953_v38 = vpack.c.bf16 %v1949_v4, %v1949_v4 }
 0x6e1   :  { %v1959_v15 = vpop.permute.xlu1 %1958  ;;  %v2087_v41 = vsel %vm483_vm5, %v2079_v30, %v2027_v33  ;;  %v1954_v6 = vpack.c.bf16 %v1950_v19, %v1950_v19  ;;  %v1955_v21 = vpack.c.bf16 %v1951_v34, %v1951_v34  ;;  %v2097_v45 = vsel %vm492_vm6, %v2089_v51, %v2040_v25 }
 0x6e2   :  { %v1966_v63 = vsel %vm344_vm9, %v1957_v36, %v1959_v15  ;;  %v2041_v53 = vrot.slane %v1953_v38, 2  ;;  %v2095_v20 = vsel %vm1690_vm11, %v2087_v41, %v2035_v40  ;;  %v2093_v33 = vsel %vm1690_vm11, %v2085_v23, %v2034_v35 }
 0x6e3   :  { %v1968_v29 = vmul.f32 %v1966_v63, %v5184_v18  ;;  %v2042_v27 = vrot.slane %v1954_v6, 2  ;;  %v2043_v54 = vrot.slane %v1955_v21, 2 }
 0x6e4   :  { %v1961_v42 = vpop.permute.xlu0 %1960  ;;  %v2099_v17 = vsel %vm492_vm6, %v2091_v9, %v2041_v53 }
 0x6e5   :  { %v1972_v50 = vpack.c.bf16 %v1968_v29, %v1968_v29  ;;  %v1965_v43 = vsel %vm344_vm9, %v1959_v15, %v1961_v42  ;;  %v1963_v39 = vpop.permute.xlu1 %1962  ;;  %v2103_v41 = vsel %vm492_vm6, %v2095_v20, %v2043_v54  ;;  %v2101_v22 = vsel %vm492_vm6, %v2093_v33, %v2042_v27 }
 0x6e6   :  { %v1969_v1 = vmul.f32 %v1965_v43, %v3659_v7  ;;  %v1964_v28 = vsel %vm344_vm9, %v1961_v42, %v1963_v39  ;;  %v1967_v3 = vsel %vm344_vm9, %v1963_v39, %v1957_v36 }
 0x6e7   :  { %v1970_v56 = vmul.f32 %v1964_v28, %v3668_v2  ;;  %v1971_v32 = vmul.f32 %v1967_v3, %v3656_v55  ;;  %v2048_v4 = vrot.slane %v1972_v50, 1 }
 0x6e8   :  { %v1973_v30 = vpack.c.bf16 %v1969_v1, %v1969_v1  ;;  %v1977_v31 = vpop.permute.xlu0 %1976 }
 0x6e9   :  { %v1974_v19 = vpack.c.bf16 %v1970_v56, %v1970_v56  ;;  %v1975_v34 = vpack.c.bf16 %v1971_v32, %v1971_v32  ;;  %v1979_v0 = vpop.permute.xlu1 %1978  ;;  %v2105_v24 = vsel %vm1707_vm12, %v2097_v45, %v2048_v4  ;;  %v1827_v4 = vld [vmem:[%s5085_s4] sm:$0x3] }
 0x6ea   :  { %v2049_v36 = vrot.slane %v1973_v30, 1  ;;  %v1986_v15 = vsel %vm386_vm13, %v1977_v31, %v1979_v0 }
 0x6eb   :  { %v2050_v26 = vrot.slane %v1974_v19, 1  ;;  %v2051_v63 = vrot.slane %v1975_v34, 1  ;;  %v1988_v12 = vmul.f32 %v1986_v15, %v3678_v48 }
 0x6ec   :  { %v1981_v38 = vpop.permute.xlu0 %1980  ;;  %v2108_v29 = vsel %vm1707_vm12, %v2099_v17, %v2049_v36 }
 0x6ed   :  { %v1992_v6 = vpack.c.bf16 %v1988_v12, %v1988_v12  ;;  %v1985_v21 = vsel %vm386_vm13, %v1979_v0, %v1981_v38  ;;  %v1983_v42 = vpop.permute.xlu1 %1982  ;;  %2135 = vmatprep.subr.bf16.mxu0 %v2108_v29  ;;  %v2114_v23 = vsel %vm1707_vm12, %v2103_v41, %v2051_v63  ;;  %v2111_v35 = vsel %vm1707_vm12, %v2101_v22, %v2050_v26 }
 0x6ee   :  { %v1989_v40 = vmul.f32 %v1985_v21, %v3685_v37  ;;  %v1984_v50 = vsel %vm386_vm13, %v1981_v38, %v1983_v42  ;;  %v1987_v43 = vsel %vm386_vm13, %v1983_v42, %v1977_v31  ;;  %2136 = vmatpush1.bf16.msra.mxu0 %v2105_v24  ;;  %2176 = vmatprep.subr.bf16.mxu1 %v2114_v23 }
 0x6ef   :  { %v1990_v39 = vmul.f32 %v1984_v50, %v3688_v46  ;;  %v1991_v25 = vmul.f32 %v1987_v43, %v3681_v14  ;;  %2177 = vmatpush1.bf16.msra.mxu1 %v2111_v35  ;;  %v2117_v28 = vsel %vm39_vm10, %v1992_v6, %v4250_v47 }
 0x6f0   :  { %v1993_v1 = vpack.c.bf16 %v1989_v40, %v1989_v40  ;;  %v2127_v32 = vsel %vm483_vm5, %v2117_v28, 0 }
 0x6f1   :  { %v1994_v3 = vpack.c.bf16 %v1990_v39, %v1990_v39  ;;  %v1995_v53 = vpack.c.bf16 %v1991_v25, %v1991_v25 }
 0x6f2   :  { %v2119_v56 = vsel %vm39_vm10, %v1993_v1, %v4250_v47 }
 0x6f3   :  { %3195 = vmatprep.subr.msk.bf16.mxu0 %vm483_vm5, %v2119_v56  ;;  %v2123_v51 = vsel %vm39_vm10, %v1995_v53, %v4250_v47  ;;  %v2121_v27 = vsel %vm39_vm10, %v1994_v3, %v4250_v47 }
 0x6f4   :  { %2138 = vmatpush1.bf16.msra.mxu0 %v2127_v32  ;;  %3197 = vmatprep.subr.msk.bf16.mxu1 %vm483_vm5, %v2123_v51  ;;  %v2131_v54 = vsel %vm483_vm5, %v2121_v27, 0 }
 0x6f5   :  { %2179 = vmatpush1.bf16.msra.mxu1 %v2131_v54 }
 0x6f7   :  { %3196 = vmatmul.mubr.msk.bf16.vlgmr.msra.gmra.mrb[16].mxu0 %vm1729_vm14, %v1827_v4 }
 0x6f8   :  { %3198 = vmatmul.mubr.msk.bf16.vlgmr.msra.gmra.mrb[16].mxu1 %vm1729_vm14, %v1827_v4  ;;  %2634 = vmatprep.mubr.bf16.mxu0 %v5179_v52 }
 0x6f9   :  { %2675 = vmatprep.mubr.bf16.mxu1 %v5179_v52 }
 0x7ca   :  { %v2169_v30 = vpop.f32.mrb[16].mxu0 }
 0x7cb   :  { %v3199_v31 = vmul.f32 -1.442695, %v2169_v30  ;;  %v2171_v19 = vpop.f32.mrb[17].mxu0  ;;  %v4645_v34 = vpop.f32.mrb[16].mxu1 }
 0x7cc   :  { %v3200_v0 = vmul.f32 -1.442695, %v2171_v19  ;;  %v3201_v9 = vmul.f32 -1.442695, %v4645_v34  ;;  %v2173_v20 = vpop.f32.mrb[18].mxu0  ;;  %v2212_v36 = vpop.f32.mrb[17].mxu1 }
 0x7cd   :  { %3238 = vpow2.f32 %v3199_v31  ;;  %v3202_v15 = vmul.f32 -1.442695, %v2212_v36  ;;  %v2174_v45 = vpop.f32.mrb[19].mxu0  ;;  %v2214_v33 = vpop.f32.mrb[18].mxu1 }
 0x7ce   :  { %3240 = vpow2.f32 %v3200_v0  ;;  %v2215_v26 = vpop.f32.mrb[19].mxu1 }
 0x7cf   :  { %3242 = vpow2.f32 %v3201_v9 }
 0x7d0   :  { %3244 = vpow2.f32 %v3202_v15 }
 0x7d7   :  { %v3239_v63 = vpop.eup %3238 }
 0x7d8   :  { %v3241_v12 = vpop.eup %3240  ;;  %v2229_v17 = vadd.f32 1.0, %v3239_v63 }
 0x7d9   :  { %v3243_v38 = vpop.eup %3242  ;;  %v2230_v29 = vadd.f32 1.0, %v3241_v12 }
 0x7da   :  { %v3245_v24 = vpop.eup %3244  ;;  %3246 = vrcp.f32 %v2229_v17  ;;  %v2231_v41 = vadd.f32 1.0, %v3243_v38  ;;  %v5228_v38 = vld [vmem:[#allocation23_spill] sm:$0xff] }
 0x7db   :  { %3248 = vrcp.f32 %v2230_v29  ;;  %v2232_v22 = vadd.f32 1.0, %v3245_v24 }
 0x7dc   :  { %3250 = vrcp.f32 %v2231_v41  ;;  %v5230_v41 = vld [vmem:[#allocation24_spill] sm:$0xff] }
 0x7dd   :  { %3252 = vrcp.f32 %v2232_v22 }
 0x7e4   :  { %v3247_v6 = vpop.eup %3246 }
 0x7e5   :  { %v3249_v21 = vpop.eup %3248  ;;  %v2241_v42 = vmul.f32 2.0, %v3247_v6 }
 0x7e6   :  { %v3251_v23 = vpop.eup %3250  ;;  %v2242_v35 = vmul.f32 2.0, %v3249_v21 }
 0x7e7   :  { %v3253_v40 = vpop.eup %3252  ;;  %v3203_v50 = vadd.f32 -1.0, %v2241_v42  ;;  %v2243_v43 = vmul.f32 2.0, %v3251_v23 }
 0x7e8   :  { %v3204_v39 = vadd.f32 -1.0, %v2242_v35  ;;  %v2244_v25 = vmul.f32 2.0, %v3253_v40 }
 0x7e9   :  { %v2249_v1 = vmul.f32 2.0, %v3203_v50  ;;  %v3205_v28 = vadd.f32 -1.0, %v2243_v43 }
 0x7ea   :  { %v2250_v3 = vmul.f32 2.0, %v3204_v39  ;;  %v3206_v53 = vadd.f32 -1.0, %v2244_v25 }
 0x7eb   :  { %v2253_v56 = vmul.f32 1.442695, %v2249_v1  ;;  %v2251_v32 = vmul.f32 2.0, %v3205_v28  ;;  %v5233_v1 = vld [vmem:[#allocation18_spill] sm:$0xff] }
 0x7ec   :  { %v2255_v51 = vmul.f32 1.442695, %v2250_v3  ;;  %v2252_v27 = vmul.f32 2.0, %v3206_v53  ;;  %v5234_v3 = vld [vmem:[#allocation19_spill] sm:$0xff] }
 0x7ed   :  { %3254 = vpow2.f32 %v2253_v56  ;;  %v2257_v54 = vmul.f32 1.442695, %v2251_v32  ;;  %v5235_v56 = vld [vmem:[#allocation21_spill] sm:$0xff] }
 0x7ee   :  { %3256 = vpow2.f32 %v2255_v51  ;;  %v2259_v4 = vmul.f32 1.442695, %v2252_v27 }
 0x7ef   :  { %3258 = vpow2.f32 %v2257_v54 }
 0x7f0   :  { %3260 = vpow2.f32 %v2259_v4 }
 0x7f7   :  { %v3255_v31 = vpop.eup %3254 }
 0x7f8   :  { %v3257_v0 = vpop.eup %3256  ;;  %v2265_v9 = vrot.slane %v3255_v31, 6 }
 0x7f9   :  { %v3259_v20 = vpop.eup %3258  ;;  %v2266_v15 = vrot.slane %v3257_v0, 6 }
 0x7fa   :  { %v3261_v45 = vpop.eup %3260  ;;  %v2273_v33 = vmul.f32 %v2265_v9, %v4192_v44  ;;  %v2267_v26 = vrot.slane %v3259_v20, 6  ;;  %v5236_v9 = vld [vmem:[#allocation20_spill] sm:$0xff] }
 0x7fb   :  { %v2274_v63 = vmul.f32 %v2266_v15, %v4195_v57  ;;  %v2268_v12 = vrot.slane %v3261_v45, 6 }
 0x7fc   :  { %v4650_v17 = vadd.f32 %v2273_v33, %v2169_v30  ;;  %v2275_v29 = vmul.f32 %v2267_v26, %v5228_v38  ;;  %v5237_v33 = vld [vmem:[#allocation4_spill] sm:$0xff] }
 0x7fd   :  { %v4653_v24 = vadd.f32 %v2274_v63, %v2171_v19  ;;  %v2276_v22 = vmul.f32 %v2268_v12, %v5230_v41  ;;  %v5238_v41 = vld [vmem:[#allocation5_spill] sm:$0xff] }
 0x7fe   :  { %5227 = vst [vmem:[#allocation14_spill] sm:$0xff] %v4650_v17  ;;  %v2287_v6 = vrot.slane %v4650_v17, 2  ;;  %v4658_v21 = vadd.f32 %v2275_v29, %v4645_v34  ;;  %v2375_v28 = vmul.f32 %v4650_v17, %v5233_v1 }
 0x7ff   :  { %5229 = vst [vmem:[#allocation23_spill] sm:$0xff] %v4653_v24  ;;  %v2288_v42 = vrot.slane %v4653_v24, 2  ;;  %v4661_v44 = vadd.f32 %v2276_v22, %v2212_v36  ;;  %v2376_v53 = vmul.f32 %v4653_v24, %v5234_v3  ;;  %v5243_v24 = vld [vmem:[#allocation10_spill] sm:$0xff] }
 0x800   :  { %5231 = vst [vmem:[#allocation24_spill] sm:$0xff] %v4658_v21  ;;  %2315 = vrot.lane.b32.xlu0 %v2287_v6, %s3286_s22  ;;  %v2289_v57 = vrot.slane %v4658_v21, 2  ;;  %v2377_v32 = vmul.f32 %v4658_v21, %v5235_v56  ;;  %v2379_v54 = vpack.c.bf16 %v2375_v28, %v2375_v28  ;;  %v5242_v21 = vld [vmem:[#allocation9_spill] sm:$0xff] }
 0x801   :  { %5232 = vst [vmem:[#allocation26_spill] sm:$0xff] %v4661_v44  ;;  %2317 = vrot.lane.b32.xlu1 %v2288_v42, %s3286_s22  ;;  %v2290_v30 = vrot.slane %v4661_v44, 2  ;;  %v2380_v31 = vpack.c.bf16 %v2376_v53, %v2376_v53  ;;  %v4707_v20 = vmul.f32 %v4661_v44, %v5236_v9 }
 0x802   :  { %v2381_v0 = vpack.c.bf16 %v2377_v32, %v2377_v32  ;;  %v4712_v12 = vrot.slane %v2379_v54, 5  ;;  %v5239_v32 = vld [vmem:[#allocation2_spill] sm:$0xff] }
 0x803   :  { %v4716_v29 = vrot.slane %v2380_v31, 5  ;;  %v5240_v31 = vld [vmem:[#allocation3_spill] sm:$0xff] }
 0x804   :  { %2319 = vrot.lane.b32.xlu0 %v2289_v57, %s3286_s22 }
 0x805   :  { %2321 = vrot.lane.b32.xlu1 %v2290_v30, %s3286_s22 }
 0x808   :  { %2335 = vrot.lane.b32.xlu0 %v2287_v6, %s3287_s1 }
 0x809   :  { %2337 = vrot.lane.b32.xlu1 %v2288_v42, %s3287_s1 }
 0x80c   :  { %2339 = vrot.lane.b32.xlu0 %v2289_v57, %s3287_s1 }
 0x80d   :  { %2341 = vrot.lane.b32.xlu1 %v2290_v30, %s3287_s1 }
 0x810   :  { %2295 = vrot.lane.b32.xlu0 %v2287_v6, %s3288_s23 }
 0x811   :  { %2297 = vrot.lane.b32.xlu1 %v2288_v42, %s3288_s23 }
 0x814   :  { %2299 = vrot.lane.b32.xlu0 %v2289_v57, %s3288_s23 }
 0x815   :  { %2301 = vrot.lane.b32.xlu1 %v2290_v30, %s3288_s23 }
 0x818   :  { %2355 = vrot.lane.b32.xlu0 %v2287_v6, %s3289_s24 }
 0x819   :  { %2357 = vrot.lane.b32.xlu1 %v2288_v42, %s3289_s24 }
 0x81c   :  { %2359 = vrot.lane.b32.xlu0 %v2289_v57, %s3289_s24 }
 0x81d   :  { %2361 = vrot.lane.b32.xlu1 %v2290_v30, %s3289_s24 }
 0x820   :  { %2383 = vrot.lane.b32.xlu0 %v2287_v6, %s3290_s25 }
 0x821   :  { %2385 = vrot.lane.b32.xlu1 %v2288_v42, %s3290_s25 }
 0x824   :  { %2387 = vrot.lane.b32.xlu0 %v2289_v57, %s3290_s25 }
 0x825   :  { %2389 = vrot.lane.b32.xlu1 %v2290_v30, %s3290_s25 }
 0x828   :  { %2403 = vrot.lane.b32.xlu0 %v2287_v6, %s3291_s26 }
 0x829   :  { %2405 = vrot.lane.b32.xlu1 %v2288_v42, %s3291_s26 }
 0x82c   :  { %2407 = vrot.lane.b32.xlu0 %v2289_v57, %s3291_s26 }
 0x82d   :  { %2409 = vrot.lane.b32.xlu1 %v2290_v30, %s3291_s26 }
 0x830   :  { %2423 = vrot.lane.b32.xlu0 %v2287_v6, %s3293_s27 }
 0x831   :  { %2425 = vrot.lane.b32.xlu1 %v2288_v42, %s3293_s27 }
 0x834   :  { %2427 = vrot.lane.b32.xlu0 %v2289_v57, %s3293_s27 }
 0x835   :  { %2429 = vrot.lane.b32.xlu1 %v2290_v30, %s3293_s27 }
 0x838   :  { %2443 = vrot.lane.b32.xlu0 %v2287_v6, %s3294_s28 }
 0x839   :  { %2445 = vrot.lane.b32.xlu1 %v2288_v42, %s3294_s28 }
 0x83c   :  { %2447 = vrot.lane.b32.xlu0 %v2289_v57, %s3294_s28  ;;  %v4723_v57 = vrot.slane %v2381_v0, 5 }
 0x83d   :  { %2449 = vrot.lane.b32.xlu1 %v2290_v30, %s3294_s28 }
 0x872   :  { %v2316_v19 = vpop.permute.xlu0 %2315 }
 0x873   :  { %v2318_v34 = vpop.permute.xlu1 %2317 }
 0x874   :  { %v2325_v4 = vsel %vm105_vm0, %v2316_v19, %v2318_v34 }
 0x875   :  { %v2328_v26 = vmul.f32 %v2325_v4, %v5237_v33 }
 0x876   :  { %v2320_v36 = vpop.permute.xlu0 %2319 }
 0x877   :  { %v2322_v23 = vpop.permute.xlu1 %2321  ;;  %v2324_v15 = vsel %vm105_vm0, %v2318_v34, %v2320_v36  ;;  %v2332_v53 = vpack.c.bf16 %v2328_v26, %v2328_v26 }
 0x878   :  { %v2326_v38 = vsel %vm105_vm0, %v2322_v23, %v2316_v19  ;;  %v2329_v22 = vmul.f32 %v2324_v15, %v5238_v41  ;;  %v2323_v6 = vsel %vm105_vm0, %v2320_v36, %v2322_v23  ;;  %v5241_v15 = vld [vmem:[#allocation8_spill] sm:$0xff] }
 0x879   :  { %v2327_v54 = vmul.f32 %v2326_v38, %v5239_v32  ;;  %v2330_v0 = vmul.f32 %v2323_v6, %v5240_v31  ;;  %v5245_v32 = vld [vmem:[#allocation7_spill] sm:$0xff] }
 0x87a   :  { %v2336_v35 = vpop.permute.xlu0 %2335  ;;  %v2333_v26 = vpack.c.bf16 %v2329_v22, %v2329_v22  ;;  %v5246_v22 = vld [vmem:[#allocation12_spill] sm:$0xff] }
 0x87b   :  { %v2338_v40 = vpop.permute.xlu1 %2337 }
 0x87c   :  { %v2345_v42 = vsel %vm147_vm2, %v2336_v35, %v2338_v40  ;;  %v2469_v9 = vrot.slane %v2333_v26, 7 }
 0x87d   :  { %v2348_v30 = vmul.f32 %v2345_v42, %v5241_v15 }
 0x87e   :  { %v2340_v50 = vpop.permute.xlu0 %2339 }
 0x87f   :  { %v2342_v43 = vpop.permute.xlu1 %2341  ;;  %v2344_v34 = vsel %vm147_vm2, %v2338_v40, %v2340_v50 }
 0x880   :  { %v2343_v36 = vsel %vm147_vm2, %v2340_v50, %v2342_v43  ;;  %v2346_v23 = vsel %vm147_vm2, %v2342_v43, %v2336_v35  ;;  %v2349_v38 = vmul.f32 %v2344_v34, %v5242_v21  ;;  %v5244_v35 = vld [vmem:[#allocation6_spill] sm:$0xff]  ;;  %v5247_v34 = vld [vmem:[#allocation11_spill] sm:$0xff] }
 0x881   :  { %v2347_v43 = vmul.f32 %v2346_v23, %v5244_v35  ;;  %v2350_v6 = vmul.f32 %v2343_v36, %v5245_v32  ;;  %v2352_v23 = vpack.c.bf16 %v2348_v30, %v2348_v30  ;;  %v5248_v35 = vld [vmem:[#allocation13_spill] sm:$0xff] }
 0x882   :  { %v2296_v39 = vpop.permute.xlu0 %2295 }
 0x883   :  { %v2298_v25 = vpop.permute.xlu1 %2297 }
 0x884   :  { %v2305_v19 = vsel %vm63_vm1, %v2296_v39, %v2298_v25 }
 0x885   :  { %v2308_v17 = vmul.f32 %v2305_v19, %v5243_v24  ;;  %v2353_v24 = vpack.c.bf16 %v2349_v38, %v2349_v38 }
 0x886   :  { %v2300_v51 = vpop.permute.xlu0 %2299 }
 0x887   :  { %v2302_v27 = vpop.permute.xlu1 %2301  ;;  %v2304_v40 = vsel %vm63_vm1, %v2298_v25, %v2300_v51  ;;  %v2312_v41 = vpack.c.bf16 %v2308_v17, %v2308_v17  ;;  %v2477_v38 = vrot.slane %v2353_v24, 6 }
 0x888   :  { %v2306_v44 = vsel %vm63_vm1, %v2302_v27, %v2296_v39  ;;  %v2303_v50 = vsel %vm63_vm1, %v2300_v51, %v2302_v27  ;;  %v2331_v39 = vpack.c.bf16 %v2327_v54, %v2327_v54  ;;  %v2309_v31 = vmul.f32 %v2304_v40, %v5246_v22  ;;  %v5249_v54 = vld [vmem:[#allocation15_spill] sm:$0xff] }
 0x889   :  { %v2307_v21 = vmul.f32 %v2306_v44, %v5247_v34  ;;  %v2334_v27 = vpack.c.bf16 %v2330_v0, %v2330_v0  ;;  %v2310_v36 = vmul.f32 %v2303_v50, %v5248_v35  ;;  %v2468_v40 = vrot.slane %v2332_v53, 7 }
 0x88a   :  { %v2356_v45 = vpop.permute.xlu0 %2355  ;;  %v2351_v22 = vpack.c.bf16 %v2347_v43, %v2347_v43  ;;  %v2354_v44 = vpack.c.bf16 %v2350_v6, %v2350_v6  ;;  %v2313_v0 = vpack.c.bf16 %v2309_v31, %v2309_v31  ;;  %v2467_v56 = vrot.slane %v2331_v39, 7 }
 0x88b   :  { %v2358_v63 = vpop.permute.xlu1 %2357  ;;  %v2311_v30 = vpack.c.bf16 %v2307_v21, %v2307_v21  ;;  %v2314_v17 = vpack.c.bf16 %v2310_v36, %v2310_v36 }
 0x88c   :  { %v2365_v42 = vsel %vm189_vm3, %v2356_v45, %v2358_v63  ;;  %v2475_v43 = vrot.slane %v2351_v22, 6  ;;  %v2478_v6 = vrot.slane %v2354_v44, 6  ;;  %v2527_v21 = vsel %vm39_vm10, %v2313_v0, %v2469_v9 }
 0x88e   :  { %v2360_v28 = vpop.permute.xlu0 %2359 }
 0x88f   :  { %v2362_v4 = vpop.permute.xlu1 %2361  ;;  %v2364_v32 = vsel %vm189_vm3, %v2358_v63, %v2360_v28  ;;  %v2470_v63 = vrot.slane %v2334_v27, 7 }
 0x890   :  { %v2366_v25 = vsel %vm189_vm3, %v2362_v4, %v2356_v45  ;;  %v2363_v19 = vsel %vm189_vm3, %v2360_v28, %v2362_v4  ;;  %v2368_v45 = vmul.f32 %v2365_v42, %v5224_v49  ;;  %v2369_v50 = vmul.f32 %v2364_v32, %v5202_v13 }
 0x891   :  { %v2367_v33 = vmul.f32 %v2366_v25, %v5249_v54  ;;  %v2370_v34 = vmul.f32 %v2363_v19, %v5201_v10  ;;  %v2476_v28 = vrot.slane %v2352_v23, 6  ;;  %v2524_v42 = vsel %vm39_vm10, %v2312_v41, %v2468_v40 }
 0x892   :  { %v2384_v15 = vpop.permute.xlu0 %2383  ;;  %v2372_v25 = vpack.c.bf16 %v2368_v45, %v2368_v45  ;;  %v2521_v32 = vsel %vm39_vm10, %v2311_v30, %v2467_v56  ;;  %v2373_v39 = vpack.c.bf16 %v2369_v50, %v2369_v50 }
 0x893   :  { %v2386_v51 = vpop.permute.xlu1 %2385  ;;  %v2371_v53 = vpack.c.bf16 %v2367_v33, %v2367_v33  ;;  %v2374_v54 = vpack.c.bf16 %v2370_v34, %v2370_v34  ;;  %v2534_v41 = vsel %vm470_vm4, %v2524_v42, %v2476_v28  ;;  %v2530_v33 = vsel %vm39_vm10, %v2314_v17, %v2470_v63 }
 0x894   :  { %v2393_v26 = vsel %vm260_vm7, %v2384_v15, %v2386_v51  ;;  %v2484_v27 = vrot.slane %v2372_v25, 5  ;;  %v2532_v36 = vsel %vm470_vm4, %v2521_v32, %v2475_v43  ;;  %v2485_v0 = vrot.slane %v2373_v39, 5 }
 0x895   :  { %v2483_v23 = vrot.slane %v2371_v53, 5  ;;  %v2395_v9 = vmul.f32 %v2393_v26, %v3582_v58  ;;  %v2486_v45 = vrot.slane %v2374_v54, 5  ;;  %v2538_v50 = vsel %vm470_vm4, %v2530_v33, %v2478_v6 }
 0x896   :  { %v2388_v4 = vpop.permute.xlu0 %2387  ;;  %v2542_v17 = vsel %vm1673_vm15, %v2534_v41, %v2484_v27  ;;  %v5250_v32 = vpack.c.bf16 %v4707_v20, %v4707_v20 }
 0x897   :  { %v2390_v35 = vpop.permute.xlu1 %2389  ;;  %v2392_v19 = vsel %vm260_vm7, %v2386_v51, %v2388_v4  ;;  %v2536_v51 = vsel %vm470_vm4, %v2527_v21, %v2477_v38  ;;  %v2540_v38 = vsel %vm1673_vm15, %v2532_v36, %v2483_v23  ;;  %v2399_v42 = vpack.c.bf16 %v2395_v9, %v2395_v9 }
 0x898   :  { %v2391_v22 = vsel %vm260_vm7, %v2388_v4, %v2390_v35  ;;  %v2394_v34 = vsel %vm260_vm7, %v2390_v35, %v2384_v15  ;;  %v2396_v40 = vmul.f32 %v2392_v19, %v3590_v60  ;;  %v2546_v53 = vsel %vm1673_vm15, %v2538_v50, %v2486_v45 }
 0x899   :  { %v2397_v4 = vmul.f32 %v2391_v22, %v3597_v61  ;;  %v2398_v15 = vmul.f32 %v2394_v34, %v3587_v59  ;;  %v2494_v39 = vrot.slane %v5250_v32, 5  ;;  %v2550_v34 = vsel %vm483_vm5, %v2542_v17, %v4716_v29 }
 0x89a   :  { %v2404_v31 = vpop.permute.xlu0 %2403  ;;  %v2400_v43 = vpack.c.bf16 %v2396_v40, %v2396_v40  ;;  %v2548_v27 = vsel %vm483_vm5, %v2540_v38, %v4712_v12  ;;  %v2499_v23 = vrot.slane %v2399_v42, 3 }
 0x89b   :  { %v2406_v24 = vpop.permute.xlu1 %2405  ;;  %v2401_v19 = vpack.c.bf16 %v2397_v4, %v2397_v4 }
 0x89c   :  { %v2413_v56 = vsel %vm302_vm8, %v2404_v31, %v2406_v24  ;;  %v2556_v17 = vsel %vm1690_vm11, %v2548_v27, %v2499_v23 }
 0x89d   :  { %v2415_v63 = vmul.f32 %v2413_v56, %v3600_v5  ;;  %v2554_v56 = vsel %vm483_vm5, %v2546_v53, %v2494_v39 }
 0x89e   :  { %v2408_v44 = vpop.permute.xlu0 %2407 }
 0x89f   :  { %v2412_v35 = vsel %vm302_vm8, %v2406_v24, %v2408_v44  ;;  %v2410_v30 = vpop.permute.xlu1 %2409  ;;  %v2402_v24 = vpack.c.bf16 %v2398_v15, %v2398_v15  ;;  %v2419_v33 = vpack.c.bf16 %v2415_v63, %v2415_v63 }
 0x8a0   :  { %v2411_v28 = vsel %vm302_vm8, %v2408_v44, %v2410_v30  ;;  %v2414_v54 = vsel %vm302_vm8, %v2410_v30, %v2404_v31  ;;  %v2416_v25 = vmul.f32 %v2412_v35, %v3623_v16  ;;  %v2544_v31 = vsel %vm1673_vm15, %v2536_v51, %v2485_v0 }
 0x8a1   :  { %v2417_v6 = vmul.f32 %v2411_v28, %v5181_v8  ;;  %v2418_v26 = vmul.f32 %v2414_v54, %v5190_v62  ;;  %v2500_v51 = vrot.slane %v2400_v43, 3  ;;  %v2552_v44 = vsel %vm483_vm5, %v2544_v31, %v4723_v57 }
 0x8a2   :  { %v2424_v21 = vpop.permute.xlu0 %2423  ;;  %v2420_v9 = vpack.c.bf16 %v2416_v25, %v2416_v25  ;;  %v2501_v0 = vrot.slane %v2401_v19, 3  ;;  %v2502_v4 = vrot.slane %v2402_v24, 3  ;;  %v2507_v35 = vrot.slane %v2419_v33, 2 }
 0x8a3   :  { %v2426_v41 = vpop.permute.xlu1 %2425  ;;  %v2421_v36 = vpack.c.bf16 %v2417_v6, %v2417_v6  ;;  %v2422_v45 = vpack.c.bf16 %v2418_v26, %v2418_v26  ;;  %v2558_v39 = vsel %vm1690_vm11, %v2550_v34, %v2500_v51 }
 0x8a4   :  { %v2433_v22 = vsel %vm344_vm9, %v2424_v21, %v2426_v41  ;;  %v2508_v28 = vrot.slane %v2420_v9, 2  ;;  %v2562_v31 = vsel %vm1690_vm11, %v2554_v56, %v2502_v4  ;;  %v2564_v24 = vsel %vm492_vm6, %v2556_v17, %v2507_v35 }
 0x8a5   :  { %v2435_v20 = vmul.f32 %v2433_v22, %v5184_v18  ;;  %v2509_v38 = vrot.slane %v2421_v36, 2  ;;  %v2510_v42 = vrot.slane %v2422_v45, 2 }
 0x8a6   :  { %v2428_v40 = vpop.permute.xlu0 %2427  ;;  %v2566_v23 = vsel %vm492_vm6, %v2558_v39, %v2508_v28  ;;  %v5252_v39 = vld [vmem:[#allocation25_spill] sm:$0xff] }
 0x8a7   :  { %v2439_v15 = vpack.c.bf16 %v2435_v20, %v2435_v20  ;;  %v2432_v29 = vsel %vm344_vm9, %v2426_v41, %v2428_v40  ;;  %v2430_v12 = vpop.permute.xlu1 %2429  ;;  %v2560_v41 = vsel %vm1690_vm11, %v2552_v44, %v2501_v0  ;;  %v2570_v56 = vsel %vm492_vm6, %v2562_v31, %v2510_v42 }
 0x8a8   :  { %v2436_v30 = vmul.f32 %v2432_v29, %v3659_v7  ;;  %v2431_v50 = vsel %vm344_vm9, %v2428_v40, %v2430_v12  ;;  %v2434_v63 = vsel %vm344_vm9, %v2430_v12, %v2424_v21  ;;  %v2568_v51 = vsel %vm492_vm6, %v2560_v41, %v2509_v38 }
 0x8a9   :  { %v2437_v54 = vmul.f32 %v2431_v50, %v3668_v2  ;;  %v2438_v57 = vmul.f32 %v2434_v63, %v3656_v55  ;;  %v2515_v25 = vrot.slane %v2439_v15, 1 }
 0x8aa   :  { %v2440_v53 = vpack.c.bf16 %v2436_v30, %v2436_v30  ;;  %v2444_v43 = vpop.permute.xlu0 %2443 }
 0x8ab   :  { %v2441_v6 = vpack.c.bf16 %v2437_v54, %v2437_v54  ;;  %v2442_v26 = vpack.c.bf16 %v2438_v57, %v2438_v57  ;;  %v2446_v32 = vpop.permute.xlu1 %2445  ;;  %v2572_v34 = vsel %vm1707_vm12, %v2564_v24, %v2515_v25  ;;  %v3207_v25 = vld [vmem:[%s5084_s3 + $0x1] sm:$0x1] }
 0x8ac   :  { %v2516_v21 = vrot.slane %v2440_v53, 1  ;;  %v2453_v19 = vsel %vm386_vm13, %v2444_v43, %v2446_v32 }
 0x8ad   :  { %v2517_v33 = vrot.slane %v2441_v6, 1  ;;  %v2518_v22 = vrot.slane %v2442_v26, 1  ;;  %v2455_v27 = vmul.f32 %v2453_v19, %v3678_v48 }
 0x8ae   :  { %v2448_v9 = vpop.permute.xlu0 %2447  ;;  %v2575_v20 = vsel %vm1707_vm12, %v2566_v23, %v2516_v21  ;;  %v5253_v21 = vld [vmem:[#allocation17_spill] sm:$0xff] }
 0x8af   :  { %v2459_v36 = vpack.c.bf16 %v2455_v27, %v2455_v27  ;;  %v2452_v45 = vsel %vm386_vm13, %v2446_v32, %v2448_v9  ;;  %2602 = vmatprep.subr.bf16.mxu0 %v2575_v20  ;;  %v2450_v40 = vpop.permute.xlu1 %2449  ;;  %v2581_v44 = vsel %vm1707_vm12, %v2570_v56, %v2518_v22  ;;  %v2578_v0 = vsel %vm1707_vm12, %v2568_v51, %v2517_v33  ;;  %v5254_v33 = vld [vmem:[#allocation16_spill] sm:$0xff] }
 0x8b0   :  { %v2456_v4 = vmul.f32 %v2452_v45, %v3685_v37  ;;  %v2451_v15 = vsel %vm386_vm13, %v2448_v9, %v2450_v40  ;;  %v2454_v29 = vsel %vm386_vm13, %v2450_v40, %v2444_v43  ;;  %2603 = vmatpush1.bf16.msra.mxu0 %v2572_v34  ;;  %2643 = vmatprep.subr.bf16.mxu1 %v2581_v44  ;;  %v5251_v43 = vld [vmem:[#allocation22_spill] sm:$0xff] }
 0x8b1   :  { %v2457_v12 = vmul.f32 %v2451_v15, %v3688_v46  ;;  %v2458_v35 = vmul.f32 %v2454_v29, %v3681_v14  ;;  %2644 = vmatpush1.bf16.msra.mxu1 %v2578_v0  ;;  %v2584_v50 = vsel %vm39_vm10, %v2459_v36, %v4250_v47 }
 0x8b2   :  { %v2460_v30 = vpack.c.bf16 %v2456_v4, %v2456_v4  ;;  %v2594_v57 = vsel %vm483_vm5, %v2584_v50, 0 }
 0x8b3   :  { %v2461_v63 = vpack.c.bf16 %v2457_v12, %v2457_v12  ;;  %v2462_v28 = vpack.c.bf16 %v2458_v35, %v2458_v35 }
 0x8b4   :  { %v2586_v54 = vsel %vm39_vm10, %v2460_v30, %v4250_v47  ;;  %v5255_v30 = vld [vmem:[#allocation21_spill] sm:$0xff] }
 0x8b5   :  { %3208 = vmatprep.subr.msk.bf16.mxu0 %vm483_vm5, %v2586_v54  ;;  %v2590_v17 = vsel %vm39_vm10, %v2462_v28, %v4250_v47  ;;  %v2588_v38 = vsel %vm39_vm10, %v2461_v63, %v4250_v47 }
 0x8b6   :  { %2605 = vmatpush1.bf16.msra.mxu0 %v2594_v57  ;;  %3210 = vmatprep.subr.msk.bf16.mxu1 %vm483_vm5, %v2590_v17  ;;  %v2598_v42 = vsel %vm483_vm5, %v2588_v38, 0  ;;  %v5256_v57 = vld [vmem:[#allocation20_spill] sm:$0xff] }
 0x8b7   :  { %2646 = vmatpush1.bf16.msra.mxu1 %v2598_v42 }
 0x8b9   :  { %3209 = vmatmul.mubr.msk.bf16.vlgmr.msra.gmra.mrb[20].mxu0 %vm1729_vm14, %v3207_v25 }
 0x8ba   :  { %3211 = vmatmul.mubr.msk.bf16.vlgmr.msra.gmra.mrb[20].mxu1 %vm1729_vm14, %v3207_v25  ;;  %3029 = vmatprep.mubr.bf16.mxu0 %v5179_v52 }
 0x8bb   :  { %3070 = vmatprep.mubr.bf16.mxu1 %v5179_v52 }
 0x98c   :  { %v2636_v53 = vpop.f32.mrb[20].mxu0 }
 0x98d   :  { %v2684_v6 = vadd.f32 %v2636_v53, %v5251_v43  ;;  %v2638_v26 = vpop.f32.mrb[21].mxu0  ;;  %v2677_v32 = vpop.f32.mrb[20].mxu1 }
 0x98e   :  { %v2685_v31 = vadd.f32 %v2638_v26, %v5252_v39  ;;  %v2686_v19 = vadd.f32 %v2677_v32, %v5253_v21  ;;  %v2640_v24 = vpop.f32.mrb[22].mxu0  ;;  %v2679_v41 = vpop.f32.mrb[21].mxu1  ;;  %v5258_v32 = vld [vmem:[#allocation5_spill] sm:$0xff] }
 0x98f   :  { %v2687_v22 = vadd.f32 %v2679_v41, %v5254_v33  ;;  %v2681_v27 = vpop.f32.mrb[22].mxu1  ;;  %2710 = vrot.lane.b32.xlu0 %v2684_v6, %s3286_s22  ;;  %v2641_v23 = vpop.f32.mrb[23].mxu0  ;;  %v2770_v29 = vmul.f32 %v2684_v6, %v5233_v1  ;;  %v5257_v1 = vld [vmem:[#allocation4_spill] sm:$0xff] }
 0x990   :  { %v2682_v9 = vpop.f32.mrb[23].mxu1  ;;  %2712 = vrot.lane.b32.xlu1 %v2685_v31, %s3286_s22  ;;  %v3145_v52 = vcombine.low %v2684_v6, %v2685_v31  ;;  %v2771_v35 = vmul.f32 %v2685_v31, %v5234_v3  ;;  %v2772_v50 = vmul.f32 %v2686_v19, %v5255_v30 }
 0x991   :  { %v3155_v20 = vcombine.low %v2686_v19, %v2687_v22  ;;  %v2774_v54 = vpack.c.bf16 %v2770_v29, %v2770_v29  ;;  %v4912_v17 = vmul.f32 %v2687_v22, %v5256_v57  ;;  %v5259_v9 = vld [vmem:[#allocation2_spill] sm:$0xff] }
 0x992   :  { %3147 = vst [vmem:[%s5086_s5] sm:$0x33] %v3145_v52  ;;  %v2775_v25 = vpack.c.bf16 %v2771_v35, %v2771_v35  ;;  %v2776_v53 = vpack.c.bf16 %v2772_v50, %v2772_v50  ;;  %v5263_v57 = vld [vmem:[#allocation10_spill] sm:$0xff] }
 0x993   :  { %2714 = vrot.lane.b32.xlu0 %v2686_v19, %s3286_s22  ;;  %3225 = vst [vmem:[%s5086_s5 + $0x8] sm:$0x33] %v3155_v20  ;;  %v4919_v26 = vrot.slane %v2774_v54, 4 }
 0x994   :  { %2716 = vrot.lane.b32.xlu1 %v2687_v22, %s3286_s22  ;;  %v4934_v27 = vrot.slane %v2776_v53, 4 }
 0x997   :  { %2730 = vrot.lane.b32.xlu0 %v2684_v6, %s3287_s1 }
 0x998   :  { %2732 = vrot.lane.b32.xlu1 %v2685_v31, %s3287_s1 }
 0x99b   :  { %2734 = vrot.lane.b32.xlu0 %v2686_v19, %s3287_s1 }
 0x99c   :  { %2736 = vrot.lane.b32.xlu1 %v2687_v22, %s3287_s1 }
 0x99f   :  { %2690 = vrot.lane.b32.xlu0 %v2684_v6, %s3288_s23 }
 0x9a0   :  { %2692 = vrot.lane.b32.xlu1 %v2685_v31, %s3288_s23 }
 0x9a3   :  { %2694 = vrot.lane.b32.xlu0 %v2686_v19, %s3288_s23 }
 0x9a4   :  { %2696 = vrot.lane.b32.xlu1 %v2687_v22, %s3288_s23 }
 0x9a7   :  { %2750 = vrot.lane.b32.xlu0 %v2684_v6, %s3289_s24 }
 0x9a8   :  { %2752 = vrot.lane.b32.xlu1 %v2685_v31, %s3289_s24 }
 0x9ab   :  { %2754 = vrot.lane.b32.xlu0 %v2686_v19, %s3289_s24 }
 0x9ac   :  { %2756 = vrot.lane.b32.xlu1 %v2687_v22, %s3289_s24 }
 0x9af   :  { %2778 = vrot.lane.b32.xlu0 %v2684_v6, %s3290_s25 }
 0x9b0   :  { %2780 = vrot.lane.b32.xlu1 %v2685_v31, %s3290_s25 }
 0x9b3   :  { %2782 = vrot.lane.b32.xlu0 %v2686_v19, %s3290_s25 }
 0x9b4   :  { %2784 = vrot.lane.b32.xlu1 %v2687_v22, %s3290_s25 }
 0x9b7   :  { %2798 = vrot.lane.b32.xlu0 %v2684_v6, %s3291_s26 }
 0x9b8   :  { %2800 = vrot.lane.b32.xlu1 %v2685_v31, %s3291_s26 }
 0x9bb   :  { %2802 = vrot.lane.b32.xlu0 %v2686_v19, %s3291_s26 }
 0x9bc   :  { %2804 = vrot.lane.b32.xlu1 %v2687_v22, %s3291_s26 }
 0x9bf   :  { %2818 = vrot.lane.b32.xlu0 %v2684_v6, %s3293_s27 }
 0x9c0   :  { %2820 = vrot.lane.b32.xlu1 %v2685_v31, %s3293_s27 }
 0x9c3   :  { %2822 = vrot.lane.b32.xlu0 %v2686_v19, %s3293_s27 }
 0x9c4   :  { %2824 = vrot.lane.b32.xlu1 %v2687_v22, %s3293_s27 }
 0x9c7   :  { %2838 = vrot.lane.b32.xlu0 %v2684_v6, %s3294_s28 }
 0x9c8   :  { %2840 = vrot.lane.b32.xlu1 %v2685_v31, %s3294_s28 }
 0x9cb   :  { %2842 = vrot.lane.b32.xlu0 %v2686_v19, %s3294_s28  ;;  %v2777_v19 = vpack.c.bf16 %v4912_v17, %v4912_v17 }
 0x9cc   :  { %2844 = vrot.lane.b32.xlu1 %v2687_v22, %s3294_s28  ;;  %v4932_v22 = vrot.slane %v2775_v25, 4  ;;  %v5265_v25 = vld [vmem:[#allocation7_spill] sm:$0xff] }
 0xa01   :  { %v2711_v34 = vpop.permute.xlu0 %2710 }
 0xa02   :  { %v2713_v56 = vpop.permute.xlu1 %2712 }
 0xa03   :  { %v2720_v28 = vsel %vm105_vm0, %v2711_v34, %v2713_v56 }
 0xa04   :  { %v2723_v43 = vmul.f32 %v2720_v28, %v5257_v1  ;;  %v5262_v28 = vld [vmem:[#allocation9_spill] sm:$0xff] }
 0xa05   :  { %v2715_v51 = vpop.permute.xlu0 %2714 }
 0xa06   :  { %v2717_v36 = vpop.permute.xlu1 %2716  ;;  %v2719_v38 = vsel %vm105_vm0, %v2713_v56, %v2715_v51  ;;  %v2727_v23 = vpack.c.bf16 %v2723_v43, %v2723_v43 }
 0xa07   :  { %v2721_v3 = vsel %vm105_vm0, %v2717_v36, %v2711_v34  ;;  %v2724_v39 = vmul.f32 %v2719_v38, %v5258_v32  ;;  %v2718_v31 = vsel %vm105_vm0, %v2715_v51, %v2717_v36  ;;  %v5260_v51 = vld [vmem:[#allocation3_spill] sm:$0xff] }
 0xa08   :  { %v2722_v52 = vmul.f32 %v2721_v3, %v5259_v9  ;;  %v2725_v36 = vmul.f32 %v2718_v31, %v5260_v51  ;;  %v5266_v3 = vld [vmem:[#allocation12_spill] sm:$0xff] }
 0xa09   :  { %v2731_v45 = vpop.permute.xlu0 %2730  ;;  %v2728_v50 = vpack.c.bf16 %v2724_v39, %v2724_v39  ;;  %v5267_v39 = vld [vmem:[#allocation11_spill] sm:$0xff] }
 0xa0a   :  { %v2733_v40 = vpop.permute.xlu1 %2732 }
 0xa0b   :  { %v2740_v21 = vsel %vm147_vm2, %v2731_v45, %v2733_v40 }
 0xa0d   :  { %v2735_v44 = vpop.permute.xlu0 %2734 }
 0xa0e   :  { %v2737_v0 = vpop.permute.xlu1 %2736  ;;  %v2739_v24 = vsel %vm147_vm2, %v2733_v40, %v2735_v44  ;;  %v5261_v40 = vld [vmem:[#allocation8_spill] sm:$0xff] }
 0xa0f   :  { %v2738_v20 = vsel %vm147_vm2, %v2735_v44, %v2737_v0  ;;  %v2741_v34 = vsel %vm147_vm2, %v2737_v0, %v2731_v45  ;;  %v2743_v29 = vmul.f32 %v2740_v21, %v5261_v40  ;;  %v2744_v54 = vmul.f32 %v2739_v24, %v5262_v28  ;;  %v5264_v45 = vld [vmem:[#allocation6_spill] sm:$0xff] }
 0xa10   :  { %v2742_v0 = vmul.f32 %v2741_v34, %v5264_v45  ;;  %v2745_v53 = vmul.f32 %v2738_v20, %v5265_v25  ;;  %v2864_v45 = vrot.slane %v2728_v50, 7 }
 0xa11   :  { %v2691_v4 = vpop.permute.xlu0 %2690  ;;  %v2747_v24 = vpack.c.bf16 %v2743_v29, %v2743_v29  ;;  %v2748_v34 = vpack.c.bf16 %v2744_v54, %v2744_v54 }
 0xa12   :  { %v2693_v15 = vpop.permute.xlu1 %2692  ;;  %v2746_v28 = vpack.c.bf16 %v2742_v0, %v2742_v0 }
 0xa13   :  { %v2700_v41 = vsel %vm63_vm1, %v2691_v4, %v2693_v15 }
 0xa14   :  { %v2703_v38 = vmul.f32 %v2700_v41, %v5263_v57  ;;  %v5268_v41 = vld [vmem:[#allocation13_spill] sm:$0xff]  ;;  %v2870_v0 = vrot.slane %v2746_v28, 6 }
 0xa15   :  { %v2695_v12 = vpop.permute.xlu0 %2694 }
 0xa16   :  { %v2697_v63 = vpop.permute.xlu1 %2696  ;;  %v2699_v35 = vsel %vm63_vm1, %v2693_v15, %v2695_v12  ;;  %v2707_v51 = vpack.c.bf16 %v2703_v38, %v2703_v38  ;;  %v2872_v38 = vrot.slane %v2748_v34, 6 }
 0xa17   :  { %v2701_v30 = vsel %vm63_vm1, %v2697_v63, %v2691_v4  ;;  %v2698_v44 = vsel %vm63_vm1, %v2695_v12, %v2697_v63  ;;  %v2726_v4 = vpack.c.bf16 %v2722_v52, %v2722_v52  ;;  %v2704_v32 = vmul.f32 %v2699_v35, %v5266_v3  ;;  %v5269_v52 = vld [vmem:[#allocation15_spill] sm:$0xff] }
 0xa18   :  { %v2702_v31 = vmul.f32 %v2701_v30, %v5267_v39  ;;  %v2729_v63 = vpack.c.bf16 %v2725_v36, %v2725_v36  ;;  %v2705_v9 = vmul.f32 %v2698_v44, %v5268_v41  ;;  %v2863_v35 = vrot.slane %v2727_v23, 7 }
 0xa19   :  { %v2751_v42 = vpop.permute.xlu0 %2750  ;;  %v2749_v30 = vpack.c.bf16 %v2745_v53, %v2745_v53  ;;  %v2708_v36 = vpack.c.bf16 %v2704_v32, %v2704_v32  ;;  %v2862_v3 = vrot.slane %v2726_v4, 7 }
 0xa1a   :  { %v2753_v6 = vpop.permute.xlu1 %2752  ;;  %v2706_v29 = vpack.c.bf16 %v2702_v31, %v2702_v31  ;;  %v2709_v54 = vpack.c.bf16 %v2705_v9, %v2705_v9 }
 0xa1b   :  { %v2760_v1 = vsel %vm189_vm3, %v2751_v42, %v2753_v6  ;;  %v2873_v53 = vrot.slane %v2749_v30, 6  ;;  %v2922_v32 = vsel %vm39_vm10, %v2708_v36, %v2864_v45 }
 0xa1d   :  { %v2755_v33 = vpop.permute.xlu0 %2754 }
 0xa1e   :  { %v2757_v56 = vpop.permute.xlu1 %2756  ;;  %v2759_v20 = vsel %vm189_vm3, %v2753_v6, %v2755_v33  ;;  %v2865_v6 = vrot.slane %v2729_v63, 7 }
 0xa1f   :  { %v2761_v15 = vsel %vm189_vm3, %v2757_v56, %v2751_v42  ;;  %v2758_v21 = vsel %vm189_vm3, %v2755_v33, %v2757_v56  ;;  %v2763_v42 = vmul.f32 %v2760_v1, %v5224_v49  ;;  %v2764_v44 = vmul.f32 %v2759_v20, %v5202_v13 }
 0xa20   :  { %v2762_v40 = vmul.f32 %v2761_v15, %v5269_v52  ;;  %v2765_v57 = vmul.f32 %v2758_v21, %v5201_v10  ;;  %v2871_v33 = vrot.slane %v2747_v24, 6  ;;  %v2919_v49 = vsel %vm39_vm10, %v2707_v51, %v2863_v35 }
 0xa21   :  { %v2779_v43 = vpop.permute.xlu0 %2778  ;;  %v2767_v1 = vpack.c.bf16 %v2763_v42, %v2763_v42  ;;  %v2916_v13 = vsel %vm39_vm10, %v2706_v29, %v2862_v3  ;;  %v2768_v4 = vpack.c.bf16 %v2764_v44, %v2764_v44  ;;  %v2925_v63 = vsel %vm39_vm10, %v2709_v54, %v2865_v6 }
 0xa22   :  { %v2781_v12 = vpop.permute.xlu1 %2780  ;;  %v2766_v23 = vpack.c.bf16 %v2762_v40, %v2762_v40  ;;  %v2769_v15 = vpack.c.bf16 %v2765_v57, %v2765_v57  ;;  %v2929_v21 = vsel %vm470_vm4, %v2919_v49, %v2871_v33  ;;  %v2927_v42 = vsel %vm470_vm4, %v2916_v13, %v2870_v0 }
 0xa23   :  { %v2788_v10 = vsel %vm260_vm7, %v2779_v43, %v2781_v12  ;;  %v2879_v9 = vrot.slane %v2767_v1, 5  ;;  %v2880_v28 = vrot.slane %v2768_v4, 5 }
 0xa24   :  { %v2878_v20 = vrot.slane %v2766_v23, 5  ;;  %v2790_v34 = vmul.f32 %v2788_v10, %v3582_v58  ;;  %v2881_v52 = vrot.slane %v2769_v15, 5  ;;  %v2889_v23 = vrot.slane %v2777_v19, 4 }
 0xa25   :  { %v2783_v56 = vpop.permute.xlu0 %2782  ;;  %v2937_v29 = vsel %vm1673_vm15, %v2929_v21, %v2879_v9 }
 0xa26   :  { %v2785_v25 = vpop.permute.xlu1 %2784  ;;  %v2787_v39 = vsel %vm260_vm7, %v2781_v12, %v2783_v56  ;;  %v2931_v12 = vsel %vm470_vm4, %v2922_v32, %v2872_v38  ;;  %v2794_v44 = vpack.c.bf16 %v2790_v34, %v2790_v34 }
 0xa27   :  { %v2786_v24 = vsel %vm260_vm7, %v2783_v56, %v2785_v25  ;;  %v2789_v41 = vsel %vm260_vm7, %v2785_v25, %v2779_v43  ;;  %v2791_v40 = vmul.f32 %v2787_v39, %v3590_v60  ;;  %v2933_v56 = vsel %vm470_vm4, %v2925_v63, %v2873_v53 }
 0xa28   :  { %v2792_v30 = vmul.f32 %v2786_v24, %v3597_v61  ;;  %v2793_v43 = vmul.f32 %v2789_v41, %v3587_v59  ;;  %v2935_v61 = vsel %vm1673_vm15, %v2927_v42, %v2878_v20  ;;  %v2941_v25 = vsel %vm1673_vm15, %v2933_v56, %v2881_v52 }
 0xa29   :  { %v2799_v50 = vpop.permute.xlu0 %2798  ;;  %v2795_v3 = vpack.c.bf16 %v2791_v40, %v2791_v40  ;;  %v2939_v54 = vsel %vm1673_vm15, %v2931_v12, %v2880_v28  ;;  %v2945_v53 = vsel %vm483_vm5, %v2937_v29, %v4932_v22 }
 0xa2a   :  { %v2801_v31 = vpop.permute.xlu1 %2800  ;;  %v2796_v38 = vpack.c.bf16 %v2792_v30, %v2792_v30  ;;  %v2797_v49 = vpack.c.bf16 %v2793_v43, %v2793_v43  ;;  %v2947_v4 = vsel %vm483_vm5, %v2939_v54, %v4934_v27 }
 0xa2b   :  { %v2808_v51 = vsel %vm302_vm8, %v2799_v50, %v2801_v31  ;;  %v2895_v32 = vrot.slane %v2795_v3, 3 }
 0xa2c   :  { %v2810_v45 = vmul.f32 %v2808_v51, %v3600_v5  ;;  %v2896_v39 = vrot.slane %v2796_v38, 3 }
 0xa2d   :  { %v2803_v35 = vpop.permute.xlu0 %2802  ;;  %v2953_v30 = vsel %vm1690_vm11, %v2945_v53, %v2895_v32 }
 0xa2e   :  { %v2807_v57 = vsel %vm302_vm8, %v2801_v31, %v2803_v35  ;;  %v2805_v58 = vpop.permute.xlu1 %2804  ;;  %v2814_v0 = vpack.c.bf16 %v2810_v45, %v2810_v45  ;;  %v2897_v31 = vrot.slane %v2797_v49, 3 }
 0xa2f   :  { %v2806_v36 = vsel %vm302_vm8, %v2803_v35, %v2805_v58  ;;  %v2809_v60 = vsel %vm302_vm8, %v2805_v58, %v2799_v50  ;;  %v2811_v59 = vmul.f32 %v2807_v57, %v3623_v16  ;;  %v2949_v50 = vsel %vm483_vm5, %v2941_v25, %v2889_v23 }
 0xa30   :  { %v2812_v6 = vmul.f32 %v2806_v36, %v5181_v8  ;;  %v2813_v5 = vmul.f32 %v2809_v60, %v5190_v62  ;;  %v2943_v8 = vsel %vm483_vm5, %v2935_v61, %v4919_v26  ;;  %v2894_v62 = vrot.slane %v2794_v44, 3 }
 0xa31   :  { %v2819_v33 = vpop.permute.xlu0 %2818  ;;  %v2815_v15 = vpack.c.bf16 %v2811_v59, %v2811_v59  ;;  %v2902_v63 = vrot.slane %v2814_v0, 2  ;;  %v2957_v43 = vsel %vm1690_vm11, %v2949_v50, %v2897_v31  ;;  %v2955_v58 = vsel %vm1690_vm11, %v2947_v4, %v2896_v39 }
 0xa32   :  { %v2821_v1 = vpop.permute.xlu1 %2820  ;;  %v2816_v13 = vpack.c.bf16 %v2812_v6, %v2812_v6  ;;  %v2817_v17 = vpack.c.bf16 %v2813_v5, %v2813_v5  ;;  %v2951_v34 = vsel %vm1690_vm11, %v2943_v8, %v2894_v62 }
 0xa33   :  { %v2828_v16 = vsel %vm344_vm9, %v2819_v33, %v2821_v1  ;;  %v2903_v9 = vrot.slane %v2815_v15, 2  ;;  %v3212_v15 = vld [vmem:[%s5085_s4 + $0x2] sm:$0x3] }
 0xa34   :  { %v2830_v10 = vmul.f32 %v2828_v16, %v5184_v18  ;;  %v2904_v51 = vrot.slane %v2816_v13, 2  ;;  %v2905_v12 = vrot.slane %v2817_v17, 2 }
 0xa35   :  { %v2823_v19 = vpop.permute.xlu0 %2822  ;;  %v2961_v60 = vsel %vm492_vm6, %v2953_v30, %v2903_v9 }
 0xa36   :  { %v2834_v21 = vpack.c.bf16 %v2830_v10, %v2830_v10  ;;  %v2827_v22 = vsel %vm344_vm9, %v2821_v1, %v2823_v19  ;;  %v2825_v26 = vpop.permute.xlu1 %2824  ;;  %v2965_v59 = vsel %vm492_vm6, %v2957_v43, %v2905_v12  ;;  %v2963_v25 = vsel %vm492_vm6, %v2955_v58, %v2904_v51 }
 0xa37   :  { %v2831_v24 = vmul.f32 %v2827_v22, %v3659_v7  ;;  %v2826_v18 = vsel %vm344_vm9, %v2823_v19, %v2825_v26  ;;  %v2829_v41 = vsel %vm344_vm9, %v2825_v26, %v2819_v33 }
 0xa38   :  { %v2832_v20 = vmul.f32 %v2826_v18, %v3668_v2  ;;  %v2833_v27 = vmul.f32 %v2829_v41, %v3656_v55  ;;  %v2910_v42 = vrot.slane %v2834_v21, 1  ;;  %v2959_v55 = vsel %vm492_vm6, %v2951_v34, %v2902_v63 }
 0xa39   :  { %v2835_v52 = vpack.c.bf16 %v2831_v24, %v2831_v24  ;;  %v2839_v40 = vpop.permute.xlu0 %2838 }
 0xa3a   :  { %v2836_v35 = vpack.c.bf16 %v2832_v20, %v2832_v20  ;;  %v2837_v7 = vpack.c.bf16 %v2833_v27, %v2833_v27  ;;  %v2841_v28 = vpop.permute.xlu1 %2840  ;;  %v2967_v44 = vsel %vm1707_vm12, %v2959_v55, %v2910_v42 }
 0xa3b   :  { %v2911_v57 = vrot.slane %v2835_v52, 1  ;;  %v2848_v2 = vsel %vm386_vm13, %v2839_v40, %v2841_v28 }
 0xa3c   :  { %v2912_v56 = vrot.slane %v2836_v35, 1  ;;  %v2913_v45 = vrot.slane %v2837_v7, 1  ;;  %v2850_v36 = vmul.f32 %v2848_v2, %v3678_v48 }
 0xa3d   :  { %v2843_v29 = vpop.permute.xlu0 %2842  ;;  %v2970_v61 = vsel %vm1707_vm12, %v2961_v60, %v2911_v57 }
 0xa3e   :  { %v2854_v3 = vpack.c.bf16 %v2850_v36, %v2850_v36  ;;  %v2847_v6 = vsel %vm386_vm13, %v2841_v28, %v2843_v29  ;;  %v2845_v5 = vpop.permute.xlu1 %2844  ;;  %2997 = vmatprep.subr.bf16.mxu0 %v2970_v61  ;;  %v2976_v33 = vsel %vm1707_vm12, %v2965_v59, %v2913_v45  ;;  %v2973_v48 = vsel %vm1707_vm12, %v2963_v25, %v2912_v56 }
 0xa3f   :  { %v2851_v54 = vmul.f32 %v2847_v6, %v3685_v37  ;;  %v2846_v38 = vsel %vm386_vm13, %v2843_v29, %v2845_v5  ;;  %v2849_v49 = vsel %vm386_vm13, %v2845_v5, %v2839_v40  ;;  %2998 = vmatpush1.bf16.msra.mxu0 %v2967_v44  ;;  %3038 = vmatprep.subr.bf16.mxu1 %v2976_v33  ;;  %v5270_v5 = vld [vmem:[#allocation14_spill] sm:$0xff] }
 0xa40   :  { %v2852_v1 = vmul.f32 %v2846_v38, %v3688_v46  ;;  %v2853_v23 = vmul.f32 %v2849_v49, %v3681_v14  ;;  %3039 = vmatpush1.bf16.msra.mxu1 %v2973_v48  ;;  %v2979_v16 = vsel %vm39_vm10, %v2854_v3, %v4250_v47 }
 0xa41   :  { %v2855_v0 = vpack.c.bf16 %v2851_v54, %v2851_v54  ;;  %v2989_v11 = vsel %vm483_vm5, %v2979_v16, 0  ;;  %v5271_v54 = vld [vmem:[#allocation23_spill] sm:$0xff] }
 0xa42   :  { %v2856_v53 = vpack.c.bf16 %v2852_v1, %v2852_v1  ;;  %v2857_v8 = vpack.c.bf16 %v2853_v23, %v2853_v23  ;;  %v5272_v23 = vld [vmem:[#allocation24_spill] sm:$0xff] }
 0xa43   :  { %v2981_v37 = vsel %vm39_vm10, %v2855_v0, %v4250_v47 }
 0xa44   :  { %3213 = vmatprep.subr.msk.bf16.mxu0 %vm483_vm5, %v2981_v37  ;;  %v2985_v62 = vsel %vm39_vm10, %v2857_v8, %v4250_v47  ;;  %v2983_v14 = vsel %vm39_vm10, %v2856_v53, %v4250_v47  ;;  %v5273_v53 = vld [vmem:[#allocation26_spill] sm:$0xff] }
 0xa45   :  { %3000 = vmatpush1.bf16.msra.mxu0 %v2989_v11  ;;  %3215 = vmatprep.subr.msk.bf16.mxu1 %vm483_vm5, %v2985_v62  ;;  %v2993_v46 = vsel %vm483_vm5, %v2983_v14, 0 }
 0xa46   :  { %3041 = vmatpush1.bf16.msra.mxu1 %v2993_v46 }
 0xa48   :  { %3214 = vmatmul.mubr.msk.bf16.vlgmr.msra.gmra.mrb[24].mxu0 %vm1729_vm14, %v3212_v15 }
 0xa49   :  { %3216 = vmatmul.mubr.msk.bf16.vlgmr.msra.gmra.mrb[24].mxu1 %vm1729_vm14, %v3212_v15 }
 0xb1b   :  { %v3031_v10 = vpop.f32.mrb[24].mxu0 }
 0xb1c   :  { %v3217_v50 = vmul.f32 -1.442695, %v3031_v10  ;;  %v3033_v32 = vpop.f32.mrb[25].mxu0  ;;  %v5067_v13 = vpop.f32.mrb[24].mxu1 }
 0xb1d   :  { %v3218_v47 = vmul.f32 -1.442695, %v3033_v32  ;;  %v3219_v17 = vmul.f32 -1.442695, %v5067_v13  ;;  %v3035_v19 = vpop.f32.mrb[26].mxu0  ;;  %v3074_v4 = vpop.f32.mrb[25].mxu1 }
 0xb1e   :  { %3262 = vpow2.f32 %v3217_v50  ;;  %v3220_v39 = vmul.f32 -1.442695, %v3074_v4  ;;  %v3036_v31 = vpop.f32.mrb[27].mxu0  ;;  %v3076_v21 = vpop.f32.mrb[26].mxu1 }
 0xb1f   :  { %3264 = vpow2.f32 %v3218_v47  ;;  %v3077_v22 = vpop.f32.mrb[27].mxu1 }
 0xb20   :  { %3266 = vpow2.f32 %v3219_v17 }
 0xb21   :  { %3268 = vpow2.f32 %v3220_v39 }
 0xb28   :  { %v3263_v26 = vpop.eup %3262 }
 0xb29   :  { %v3265_v63 = vpop.eup %3264  ;;  %v3091_v24 = vadd.f32 1.0, %v3263_v26 }
 0xb2a   :  { %v3267_v18 = vpop.eup %3266  ;;  %v3092_v41 = vadd.f32 1.0, %v3265_v63 }
 0xb2b   :  { %v3269_v9 = vpop.eup %3268  ;;  %3270 = vrcp.f32 %v3091_v24  ;;  %v3093_v20 = vadd.f32 1.0, %v3267_v18 }
 0xb2c   :  { %3272 = vrcp.f32 %v3092_v41  ;;  %v3094_v27 = vadd.f32 1.0, %v3269_v9 }
 0xb2d   :  { %3274 = vrcp.f32 %v3093_v20 }
 0xb2e   :  { %3276 = vrcp.f32 %v3094_v27 }
 0xb35   :  { %v3271_v34 = vpop.eup %3270 }
 0xb36   :  { %v3273_v51 = vpop.eup %3272  ;;  %v3103_v12 = vmul.f32 2.0, %v3271_v34 }
 0xb37   :  { %v3275_v42 = vpop.eup %3274  ;;  %v3104_v52 = vmul.f32 2.0, %v3273_v51 }
 0xb38   :  { %v3277_v40 = vpop.eup %3276  ;;  %v3221_v35 = vadd.f32 -1.0, %v3103_v12  ;;  %v3105_v7 = vmul.f32 2.0, %v3275_v42 }
 0xb39   :  { %v3222_v28 = vadd.f32 -1.0, %v3104_v52  ;;  %v3106_v30 = vmul.f32 2.0, %v3277_v40 }
 0xb3a   :  { %v3111_v43 = vmul.f32 2.0, %v3221_v35  ;;  %v3223_v57 = vadd.f32 -1.0, %v3105_v7 }
 0xb3b   :  { %v3112_v2 = vmul.f32 2.0, %v3222_v28  ;;  %v3224_v55 = vadd.f32 -1.0, %v3106_v30 }
 0xb3c   :  { %v3115_v58 = vmul.f32 1.442695, %v3111_v43  ;;  %v3113_v56 = vmul.f32 2.0, %v3223_v57 }
 0xb3d   :  { %v3117_v45 = vmul.f32 1.442695, %v3112_v2  ;;  %v3114_v36 = vmul.f32 2.0, %v3224_v55 }
 0xb3e   :  { %3278 = vpow2.f32 %v3115_v58  ;;  %v3119_v60 = vmul.f32 1.442695, %v3113_v56 }
 0xb3f   :  { %3280 = vpow2.f32 %v3117_v45  ;;  %v3121_v29 = vmul.f32 1.442695, %v3114_v36 }
 0xb40   :  { %3282 = vpow2.f32 %v3119_v60 }
 0xb41   :  { %3284 = vpow2.f32 %v3121_v29 }
 0xb48   :  { %v3279_v61 = vpop.eup %3278 }
 0xb49   :  { %v3281_v44 = vpop.eup %3280  ;;  %v3127_v59 = vrot.slane %v3279_v61, 6 }
 0xb4a   :  { %v3283_v25 = vpop.eup %3282  ;;  %v3128_v3 = vrot.slane %v3281_v44, 6 }
 0xb4b   :  { %v3285_v6 = vpop.eup %3284  ;;  %v3135_v33 = vmul.f32 %v3127_v59, %v5270_v5  ;;  %v3129_v48 = vrot.slane %v3283_v25, 6 }
 0xb4c   :  { %v3136_v38 = vmul.f32 %v3128_v3, %v5271_v54  ;;  %v3130_v49 = vrot.slane %v3285_v6, 6 }
 0xb4d   :  { %v3139_v1 = vadd.f32 %v3135_v33, %v3031_v10  ;;  %v3137_v0 = vmul.f32 %v3129_v48, %v5272_v23 }
 0xb4e   :  { %v3140_v16 = vadd.f32 %v3136_v38, %v3033_v32  ;;  %v3138_v8 = vmul.f32 %v3130_v49, %v5273_v53 }
 0xb4f   :  { %v3141_v37 = vadd.f32 %v3137_v0, %v5067_v13 }
 0xb50   :  { %v3150_v11 = vcombine.low %v3139_v1, %v3140_v16  ;;  %v3142_v62 = vadd.f32 %v3138_v8, %v3074_v4 }
 0xb52   :  { %3152 = vst [vmem:[%s5086_s5] sm:$0xcc] %v3150_v11  ;;  %v3161_v14 = vcombine.low %v3141_v37, %v3142_v62 }
 0xb54   :  { %3226 = vst [vmem:[%s5086_s5 + $0x8] sm:$0xcc] %v3161_v14 }

</bundles_post_ra>
